<compile_context>
chip_gen: v6e
topology: v6e:2x2x1
jax: 0.10.0
libtpu: 0.0.40
codegen_flags: <defaults>
</compile_context>

<pallas_src>
import functools

import jax
import jax.numpy as jnp
from jax.experimental import pallas as pl
from jax.experimental.pallas import tpu as pltpu


# MXU operand dtype (accumulation is always f32 via preferred_element_type).
MATMUL_DTYPE = jnp.bfloat16

_SQRT_HALF = 0.7071067811865476  # 1/sqrt(2)


# ----------------------------------------------------------------------------
# In-kernel helpers (f32 in, f32 out; MXU operands cast to MATMUL_DTYPE)
# ----------------------------------------------------------------------------

def _mm(a, b):
    """Matmul with bf16 MXU operands and f32 accumulation."""
    return jnp.dot(a.astype(MATMUL_DTYPE), b.astype(MATMUL_DTYPE),
                   preferred_element_type=jnp.float32)


def _ln_f32(x, g, b, eps):
    """LayerNorm over the last dim (matches torch.nn.LayerNorm, eps=1e-5)."""
    mu = jnp.mean(x, axis=-1, keepdims=True)
    var = jnp.mean((x - mu) ** 2, axis=-1, keepdims=True)
    return (x - mu) * jax.lax.rsqrt(var + eps) * g + b


def _gelu(x):
    """Exact (erf) GELU, matching torch.nn.GELU() default."""
    return 0.5 * x * (1.0 + jax.lax.erf(x * _SQRT_HALF))


def _mha_f32(q, k, v, num_heads):
    """Batched multi-head attention on (tokens, H*D) slabs.

    q: (N, H*D), k/v: (M, H*D) -> (N, H*D).  Heads are handled with a single
    batched einsum pair over an (H, tokens, D) layout (no per-head lane slices,
    no concat), matching torch's
      einsum('bnkc,bmkc->bknm') -> softmax -> einsum('bknm,bmkc->bnkc').reshape
    """
    n, c = q.shape
    m = k.shape[0]
    d = c // num_heads
    scale = d ** -0.5

    qh = jnp.transpose((q * scale).reshape(n, num_heads, d), (1, 0, 2))  # (H,N,D)
    kh = jnp.transpose(k.reshape(m, num_heads, d), (1, 0, 2))            # (H,M,D)
    vh = jnp.transpose(v.reshape(m, num_heads, d), (1, 0, 2))            # (H,M,D)

    s = jnp.einsum('hnd,hmd->hnm',
                   qh.astype(MATMUL_DTYPE), kh.astype(MATMUL_DTYPE),
                   preferred_element_type=jnp.float32)
    s = s - jnp.max(s, axis=-1, keepdims=True)
    p = jnp.exp(s)
    p = p * pl.reciprocal(jnp.sum(p, axis=-1, keepdims=True), approx=True)

    o = jnp.einsum('hnm,hmd->hnd',
                   p.astype(MATMUL_DTYPE), vh.astype(MATMUL_DTYPE),
                   preferred_element_type=jnp.float32)                   # (H,N,D)
    return jnp.transpose(o, (1, 0, 2)).reshape(n, c)


# ----------------------------------------------------------------------------
# Fully-fused ContextDecoder kernel: grid=(B, L)
# ----------------------------------------------------------------------------

def _context_decoder_kernel(
        # activations (indexed by batch axis b)
        text_ref, vis_ref,
        # memory_proj / text_proj params (constant block index)
        mln1_g, mln1_b, mem_w, mem_b, mln2_g, mln2_b,
        tln_g, tln_b, txt_w, txt_b,
        # per-layer params, stacked on leading L axis (indexed by layer axis l)
        ln1_g, ln1_b, sa_wqkv, sa_wo, sa_bo,
        ln2_g, ln2_b, ca_wq, ca_wkv, ca_wo, ca_bo,
        ln3_g, ln3_b, mlp_w1, mlp_b1, mlp_w2, mlp_b2,
        # out_proj params (constant block index)
        oln_g, oln_b, out_w, out_b,
        # output
        o_ref,
        # VMEM scratch persisting across the L grid axis
        x_scr, mem_scr,
        *, num_heads, eps):
    l = pl.program_id(1)

    # ---- prologue (layer 0 only): memory_proj(visual), text_proj(text) ----
    @pl.when(l == 0)
    def _():
        vis = vis_ref[0].astype(jnp.float32)
        h = _ln_f32(vis, mln1_g[...], mln1_b[...], eps)
        h = _mm(h, mem_w[...]) + mem_b[...]
        mem_scr[...] = _ln_f32(h, mln2_g[...], mln2_b[...], eps)

        txt = text_ref[0].astype(jnp.float32)
        h = _ln_f32(txt, tln_g[...], tln_b[...], eps)
        x_scr[...] = _mm(h, txt_w[...]) + txt_b[...]

    x = x_scr[...]          # (N, W) residual stream, f32, lives in VMEM
    mem = mem_scr[...]      # (M, W) projected memory, f32, lives in VMEM
    W = x.shape[-1]

    # ---- self-attention block: x = x + proj(MHA(LN1(x))) ----
    h = _ln_f32(x, ln1_g[0], ln1_b[0], eps)
    qkv = _mm(h, sa_wqkv[0])                               # (N, 3W), qkv_bias=False
    a = _mha_f32(qkv[:, :W], qkv[:, W:2 * W], qkv[:, 2 * W:], num_heads)
    x = x + _mm(a, sa_wo[0]) + sa_bo[0]

    # ---- cross-attention block: x = x + proj(MHA(LN2(x), mem, mem)) ----
    h = _ln_f32(x, ln2_g[0], ln2_b[0], eps)
    q = _mm(h, ca_wq[0])                                   # (N, W)
    kv = _mm(mem, ca_wkv[0])                               # (M, 2W)
    a = _mha_f32(q, kv[:, :W], kv[:, W:], num_heads)
    x = x + _mm(a, ca_wo[0]) + ca_bo[0]

    # ---- MLP block: x = x + W2(GELU(W1(LN3(x)))) ----
    h = _ln_f32(x, ln3_g[0], ln3_b[0], eps)
    h = _gelu(_mm(h, mlp_w1[0]) + mlp_b1[0])               # (N, 4W), stays in vregs
    x = x + _mm(h, mlp_w2[0]) + mlp_b2[0]

    x_scr[...] = x

    # ---- epilogue (last layer only): out_proj + single HBM store ----
    @pl.when(l == pl.num_programs(1) - 1)
    def _():
        h = _ln_f32(x, oln_g[...], oln_b[...], eps)
        o_ref[0] = (_mm(h, out_w[...]) + out_b[...]).astype(o_ref.dtype)


# ----------------------------------------------------------------------------
# Wrapper
# ----------------------------------------------------------------------------

def context_decoder_forward(text, visual, params, num_heads, eps=1e-5):
    """Matches torch `ContextDecoder.forward(text, visual)` (eval mode)."""
    B, N, Cv = text.shape
    _, M, _ = visual.shape
    W = params["txt_w"].shape[-1]
    L = params["sa_wqkv"].shape[0]

    def cspec(arr):   # whole 2D param, constant block index
        return pl.BlockSpec(arr.shape, lambda b, l: (0, 0))

    def lspec(arr):   # stacked per-layer param, streamed along the L grid axis
        return pl.BlockSpec((1,) + arr.shape[1:], lambda b, l: (l, 0, 0))

    def aspec(arr):   # batched activation, indexed by the batch grid axis
        return pl.BlockSpec((1,) + arr.shape[1:], lambda b, l: (b, 0, 0))

    prologue = [params[k] for k in (
        "mem_ln1_g", "mem_ln1_b", "mem_w", "mem_b", "mem_ln2_g", "mem_ln2_b",
        "txt_ln_g", "txt_ln_b", "txt_w", "txt_b")]
    per_layer = [params[k] for k in (
        "ln1_g", "ln1_b", "sa_wqkv", "sa_wo", "sa_bo",
        "ln2_g", "ln2_b", "ca_wq", "ca_wkv", "ca_wo", "ca_bo",
        "ln3_g", "ln3_b", "mlp_w1", "mlp_b1", "mlp_w2", "mlp_b2")]
    epilogue = [params[k] for k in ("out_ln_g", "out_ln_b", "out_w", "out_b")]

    in_specs = ([aspec(text), aspec(visual)]
                + [cspec(p) for p in prologue]
                + [lspec(p) for p in per_layer]
                + [cspec(p) for p in epilogue])

    # TODO(synk): on v7x, constant-index weight BlockSpecs could additionally use
    # pipeline_mode=pl.Buffered(1) to halve their VMEM footprint.
    return pl.pallas_call(
        functools.partial(_context_decoder_kernel, num_heads=num_heads, eps=eps),
        out_shape=jax.ShapeDtypeStruct((B, N, Cv), text.dtype),
        grid=(B, L),
        in_specs=in_specs,
        out_specs=pl.BlockSpec((1, N, Cv), lambda b, l: (b, 0, 0)),
        scratch_shapes=[pltpu.VMEM((N, W), jnp.float32),   # residual stream x
                        pltpu.VMEM((M, W), jnp.float32)],  # projected memory
        compiler_params=pltpu.CompilerParams(
            dimension_semantics=("parallel", "arbitrary"),
            vmem_limit_bytes=48 * 1024 * 1024),
    )(text, visual, *prologue, *per_layer, *epilogue)


# ----------------------------------------------------------------------------
# Deterministic parameter initialization (mimics _init_weights: LN=identity,
# Linear weights ~ N(0, 0.02), Linear biases = 0).  Matmul weights are stored
# in MATMUL_DTYPE (bf16) in HBM, QKV / KV fused along the output dim, and all
# per-layer tensors stacked on a leading L axis for the fused kernel.
# ----------------------------------------------------------------------------

def _make_params(key, visual_dim, width, num_layers):
    def nxt():
        nonlocal key
        key, sub = jax.random.split(key)
        return sub

    def lin_w(*shape):
        w = 0.02 * jax.random.normal(nxt(), shape, jnp.float32)
        return w.astype(MATMUL_DTYPE)   # cast once, outside the kernel

    def zeros(*s):
        return jnp.zeros(s, jnp.float32)

    def ones(*s):
        return jnp.ones(s, jnp.float32)

    L, W, Cv = num_layers, width, visual_dim
    return {
        # memory_proj: LN(Cv) -> Linear(Cv, W) -> LN(W)
        "mem_ln1_g": ones(1, Cv), "mem_ln1_b": zeros(1, Cv),
        "mem_w": lin_w(Cv, W), "mem_b": zeros(1, W),
        "mem_ln2_g": ones(1, W), "mem_ln2_b": zeros(1, W),
        # text_proj: LN(Cv) -> Linear(Cv, W)
        "txt_ln_g": ones(1, Cv), "txt_ln_b": zeros(1, Cv),
        "txt_w": lin_w(Cv, W), "txt_b": zeros(1, W),
        # decoder layers (stacked)
        "ln1_g": ones(L, 1, W), "ln1_b": zeros(L, 1, W),
        "sa_wqkv": lin_w(L, W, 3 * W),                      # qkv_bias=False
        "sa_wo": lin_w(L, W, W), "sa_bo": zeros(L, 1, W),
        "ln2_g": ones(L, 1, W), "ln2_b": zeros(L, 1, W),
        "ca_wq": lin_w(L, W, W),
        "ca_wkv": lin_w(L, W, 2 * W),
        "ca_wo": lin_w(L, W, W), "ca_bo": zeros(L, 1, W),
        "ln3_g": ones(L, 1, W), "ln3_b": zeros(L, 1, W),
        "mlp_w1": lin_w(L, W, 4 * W), "mlp_b1": zeros(L, 1, 4 * W),
        "mlp_w2": lin_w(L, 4 * W, W), "mlp_b2": zeros(L, 1, W),
        # out_proj: LN(W) -> Linear(W, Cv)
        "out_ln_g": ones(1, W), "out_ln_b": zeros(1, W),
        "out_w": lin_w(W, Cv), "out_b": zeros(1, Cv),
    }


# ----------------------------------------------------------------------------
# Main
# ----------------------------------------------------------------------------

if __name__ == "__main__":
    # Small shapes consistent with the module's forward:
    #   visual: (B, M_visual_tokens, visual_dim), text: (B, N_text_tokens, visual_dim)
    # (Production should use 128-multiple widths for lane-dense stores.)
    B = 2
    N_TEXT = 8
    M_VIS = 16
    VISUAL_DIM = 64
    WIDTH = 32
    HEADS = 4
    LAYERS = 2

    key = jax.random.PRNGKey(0)
    k_text, k_vis, k_params = jax.random.split(key, 3)

    text = jax.random.normal(k_text, (B, N_TEXT, VISUAL_DIM), dtype=jnp.float32)
    visual = jax.random.normal(k_vis, (B, M_VIS, VISUAL_DIM), dtype=jnp.float32)
    params = _make_params(k_params, VISUAL_DIM, WIDTH, LAYERS)

    fwd = jax.jit(functools.partial(context_decoder_forward, num_heads=HEADS))
    out = jax.block_until_ready(fwd(text, visual, params))

    assert out.shape == (B, N_TEXT, VISUAL_DIM), out.shape
    assert bool(jnp.all(jnp.isfinite(out)))
    print("KERNEL_OK")
</pallas_src>

<mosaic_0001>
module attributes {stable_mosaic.version = 11 : i64} {
  func.func @_context_decoder_kernel(%arg0: i32, %arg1: i32, %arg2: memref<1x8x64xf32, #tpu.memory_space<vmem>>, %arg3: memref<1x16x64xf32, #tpu.memory_space<vmem>>, %arg4: memref<1x64xf32, #tpu.memory_space<vmem>>, %arg5: memref<1x64xf32, #tpu.memory_space<vmem>>, %arg6: memref<64x32xbf16, #tpu.memory_space<vmem>>, %arg7: memref<1x32xf32, #tpu.memory_space<vmem>>, %arg8: memref<1x32xf32, #tpu.memory_space<vmem>>, %arg9: memref<1x32xf32, #tpu.memory_space<vmem>>, %arg10: memref<1x64xf32, #tpu.memory_space<vmem>>, %arg11: memref<1x64xf32, #tpu.memory_space<vmem>>, %arg12: memref<64x32xbf16, #tpu.memory_space<vmem>>, %arg13: memref<1x32xf32, #tpu.memory_space<vmem>>, %arg14: memref<1x1x32xf32, #tpu.memory_space<vmem>>, %arg15: memref<1x1x32xf32, #tpu.memory_space<vmem>>, %arg16: memref<1x32x96xbf16, #tpu.memory_space<vmem>>, %arg17: memref<1x32x32xbf16, #tpu.memory_space<vmem>>, %arg18: memref<1x1x32xf32, #tpu.memory_space<vmem>>, %arg19: memref<1x1x32xf32, #tpu.memory_space<vmem>>, %arg20: memref<1x1x32xf32, #tpu.memory_space<vmem>>, %arg21: memref<1x32x32xbf16, #tpu.memory_space<vmem>>, %arg22: memref<1x32x64xbf16, #tpu.memory_space<vmem>>, %arg23: memref<1x32x32xbf16, #tpu.memory_space<vmem>>, %arg24: memref<1x1x32xf32, #tpu.memory_space<vmem>>, %arg25: memref<1x1x32xf32, #tpu.memory_space<vmem>>, %arg26: memref<1x1x32xf32, #tpu.memory_space<vmem>>, %arg27: memref<1x32x128xbf16, #tpu.memory_space<vmem>>, %arg28: memref<1x1x128xf32, #tpu.memory_space<vmem>>, %arg29: memref<1x128x32xbf16, #tpu.memory_space<vmem>>, %arg30: memref<1x1x32xf32, #tpu.memory_space<vmem>>, %arg31: memref<1x32xf32, #tpu.memory_space<vmem>>, %arg32: memref<1x32xf32, #tpu.memory_space<vmem>>, %arg33: memref<32x64xbf16, #tpu.memory_space<vmem>>, %arg34: memref<1x64xf32, #tpu.memory_space<vmem>>, %arg35: memref<1x8x64xf32, #tpu.memory_space<vmem>>, %arg36: memref<8x32xf32, #tpu.memory_space<vmem>>, %arg37: memref<16x32xf32, #tpu.memory_space<vmem>>) attributes {dimension_semantics = [#tpu.dimension_semantics<parallel>, #tpu.dimension_semantics<arbitrary>], iteration_bounds = array<i64: 2, 2>, scalar_prefetch = 0 : i64, scratch_operands = 2 : i64, tpu.core_type = #tpu.core_type<tc>, window_params = [{transform_indices = @transform_0, window_bounds = array<i64: 1, 8, 64>}, {transform_indices = @transform_1, window_bounds = array<i64: 1, 16, 64>}, {pipeline_mode = #tpu.pipeline_mode<synchronous>, transform_indices = @transform_2, window_bounds = array<i64: 1, 64>}, {pipeline_mode = #tpu.pipeline_mode<synchronous>, transform_indices = @transform_3, window_bounds = array<i64: 1, 64>}, {pipeline_mode = #tpu.pipeline_mode<synchronous>, transform_indices = @transform_4, window_bounds = array<i64: 64, 32>}, {pipeline_mode = #tpu.pipeline_mode<synchronous>, transform_indices = @transform_5, window_bounds = array<i64: 1, 32>}, {pipeline_mode = #tpu.pipeline_mode<synchronous>, transform_indices = @transform_6, window_bounds = array<i64: 1, 32>}, {pipeline_mode = #tpu.pipeline_mode<synchronous>, transform_indices = @transform_7, window_bounds = array<i64: 1, 32>}, {pipeline_mode = #tpu.pipeline_mode<synchronous>, transform_indices = @transform_8, window_bounds = array<i64: 1, 64>}, {pipeline_mode = #tpu.pipeline_mode<synchronous>, transform_indices = @transform_9, window_bounds = array<i64: 1, 64>}, {pipeline_mode = #tpu.pipeline_mode<synchronous>, transform_indices = @transform_10, window_bounds = array<i64: 64, 32>}, {pipeline_mode = #tpu.pipeline_mode<synchronous>, transform_indices = @transform_11, window_bounds = array<i64: 1, 32>}, {transform_indices = @transform_12, window_bounds = array<i64: 1, 1, 32>}, {transform_indices = @transform_13, window_bounds = array<i64: 1, 1, 32>}, {transform_indices = @transform_14, window_bounds = array<i64: 1, 32, 96>}, {transform_indices = @transform_15, window_bounds = array<i64: 1, 32, 32>}, {transform_indices = @transform_16, window_bounds = array<i64: 1, 1, 32>}, {transform_indices = @transform_17, window_bounds = array<i64: 1, 1, 32>}, {transform_indices = @transform_18, window_bounds = array<i64: 1, 1, 32>}, {transform_indices = @transform_19, window_bounds = array<i64: 1, 32, 32>}, {transform_indices = @transform_20, window_bounds = array<i64: 1, 32, 64>}, {transform_indices = @transform_21, window_bounds = array<i64: 1, 32, 32>}, {transform_indices = @transform_22, window_bounds = array<i64: 1, 1, 32>}, {transform_indices = @transform_23, window_bounds = array<i64: 1, 1, 32>}, {transform_indices = @transform_24, window_bounds = array<i64: 1, 1, 32>}, {transform_indices = @transform_25, window_bounds = array<i64: 1, 32, 128>}, {transform_indices = @transform_26, window_bounds = array<i64: 1, 1, 128>}, {transform_indices = @transform_27, window_bounds = array<i64: 1, 128, 32>}, {transform_indices = @transform_28, window_bounds = array<i64: 1, 1, 32>}, {pipeline_mode = #tpu.pipeline_mode<synchronous>, transform_indices = @transform_29, window_bounds = array<i64: 1, 32>}, {pipeline_mode = #tpu.pipeline_mode<synchronous>, transform_indices = @transform_30, window_bounds = array<i64: 1, 32>}, {pipeline_mode = #tpu.pipeline_mode<synchronous>, transform_indices = @transform_31, window_bounds = array<i64: 32, 64>}, {pipeline_mode = #tpu.pipeline_mode<synchronous>, transform_indices = @transform_32, window_bounds = array<i64: 1, 64>}, {transform_indices = @transform_33, window_bounds = array<i64: 1, 8, 64>}]} {
    %c0_i32 = arith.constant 0 : i32
    %0 = arith.cmpi eq, %arg1, %c0_i32 : i32
    %1 = arith.extui %0 : i1 to i32
    %c0_i32_0 = arith.constant 0 : i32
    %2 = arith.cmpi ne, %1, %c0_i32_0 : i32
    scf.if %2 {
      %c0_92 = arith.constant 0 : index
      %c0_93 = arith.constant 0 : index
      %c0_94 = arith.constant 0 : index
      %199 = vector.load %arg3[%c0_92, %c0_93, %c0_94] : memref<1x16x64xf32, #tpu.memory_space<vmem>>, vector<1x16x64xf32>
      %200 = vector.shape_cast %199 : vector<1x16x64xf32> to vector<16x64xf32>
      %c0_95 = arith.constant 0 : index
      %c0_96 = arith.constant 0 : index
      %201 = vector.load %arg4[%c0_95, %c0_96] : memref<1x64xf32, #tpu.memory_space<vmem>>, vector<1x64xf32>
      %c0_97 = arith.constant 0 : index
      %c0_98 = arith.constant 0 : index
      %202 = vector.load %arg5[%c0_97, %c0_98] : memref<1x64xf32, #tpu.memory_space<vmem>>, vector<1x64xf32>
      %cst_99 = arith.constant dense<0.000000e+00> : vector<16xf32>
      %203 = vector.multi_reduction <add>, %200, %cst_99 [1] : vector<16x64xf32> to vector<16xf32>
      %204 = vector.shape_cast %203 : vector<16xf32> to vector<16x1xf32>
      %cst_100 = arith.constant 6.400000e+01 : f32
      %205 = vector.broadcast %cst_100 : f32 to vector<16x1xf32>
      %206 = arith.divf %204, %205 : vector<16x1xf32>
      %207 = vector.broadcast %206 : vector<16x1xf32> to vector<16x64xf32>
      %208 = arith.subf %200, %207 : vector<16x64xf32>
      %209 = arith.mulf %208, %208 : vector<16x64xf32>
      %cst_101 = arith.constant dense<0.000000e+00> : vector<16xf32>
      %210 = vector.multi_reduction <add>, %209, %cst_101 [1] : vector<16x64xf32> to vector<16xf32>
      %211 = vector.shape_cast %210 : vector<16xf32> to vector<16x1xf32>
      %cst_102 = arith.constant 6.400000e+01 : f32
      %212 = vector.broadcast %cst_102 : f32 to vector<16x1xf32>
      %213 = arith.divf %211, %212 : vector<16x1xf32>
      %214 = vector.broadcast %206 : vector<16x1xf32> to vector<16x64xf32>
      %215 = arith.subf %200, %214 : vector<16x64xf32>
      %cst_103 = arith.constant 9.99999974E-6 : f32
      %216 = vector.broadcast %cst_103 : f32 to vector<16x1xf32>
      %217 = arith.addf %213, %216 : vector<16x1xf32>
      %218 = math.rsqrt %217 : vector<16x1xf32>
      %219 = vector.broadcast %218 : vector<16x1xf32> to vector<16x64xf32>
      %220 = arith.mulf %215, %219 : vector<16x64xf32>
      %221 = vector.broadcast %201 : vector<1x64xf32> to vector<16x64xf32>
      %222 = arith.mulf %220, %221 : vector<16x64xf32>
      %223 = vector.broadcast %202 : vector<1x64xf32> to vector<16x64xf32>
      %224 = arith.addf %222, %223 : vector<16x64xf32>
      %c0_104 = arith.constant 0 : index
      %c0_105 = arith.constant 0 : index
      %225 = vector.load %arg6[%c0_104, %c0_105] : memref<64x32xbf16, #tpu.memory_space<vmem>>, vector<64x32xbf16>
      %226 = arith.truncf %224 : vector<16x64xf32> to vector<16x64xbf16>
      %cst_106 = arith.constant dense<0.000000e+00> : vector<16x32xf32>
      %227 = tpu.matmul %226, %225, %cst_106 {dimension_numbers = #tpu.dot_dimension_numbers<[1], [0], [0], [1], [0, 0, 1, 1], [], []>} : vector<16x64xbf16>, vector<64x32xbf16>, vector<16x32xf32> -> vector<16x32xf32>
      %c0_107 = arith.constant 0 : index
      %c0_108 = arith.constant 0 : index
      %228 = vector.load %arg7[%c0_107, %c0_108] : memref<1x32xf32, #tpu.memory_space<vmem>>, vector<1x32xf32>
      %229 = vector.broadcast %228 : vector<1x32xf32> to vector<16x32xf32>
      %230 = arith.addf %227, %229 : vector<16x32xf32>
      %c0_109 = arith.constant 0 : index
      %c0_110 = arith.constant 0 : index
      %231 = vector.load %arg8[%c0_109, %c0_110] : memref<1x32xf32, #tpu.memory_space<vmem>>, vector<1x32xf32>
      %c0_111 = arith.constant 0 : index
      %c0_112 = arith.constant 0 : index
      %232 = vector.load %arg9[%c0_111, %c0_112] : memref<1x32xf32, #tpu.memory_space<vmem>>, vector<1x32xf32>
      %cst_113 = arith.constant dense<0.000000e+00> : vector<16xf32>
      %233 = vector.multi_reduction <add>, %230, %cst_113 [1] : vector<16x32xf32> to vector<16xf32>
      %234 = vector.shape_cast %233 : vector<16xf32> to vector<16x1xf32>
      %cst_114 = arith.constant 3.200000e+01 : f32
      %235 = vector.broadcast %cst_114 : f32 to vector<16x1xf32>
      %236 = arith.divf %234, %235 : vector<16x1xf32>
      %237 = vector.broadcast %236 : vector<16x1xf32> to vector<16x32xf32>
      %238 = arith.subf %230, %237 : vector<16x32xf32>
      %239 = arith.mulf %238, %238 : vector<16x32xf32>
      %cst_115 = arith.constant dense<0.000000e+00> : vector<16xf32>
      %240 = vector.multi_reduction <add>, %239, %cst_115 [1] : vector<16x32xf32> to vector<16xf32>
      %241 = vector.shape_cast %240 : vector<16xf32> to vector<16x1xf32>
      %cst_116 = arith.constant 3.200000e+01 : f32
      %242 = vector.broadcast %cst_116 : f32 to vector<16x1xf32>
      %243 = arith.divf %241, %242 : vector<16x1xf32>
      %244 = vector.broadcast %236 : vector<16x1xf32> to vector<16x32xf32>
      %245 = arith.subf %230, %244 : vector<16x32xf32>
      %cst_117 = arith.constant 9.99999974E-6 : f32
      %246 = vector.broadcast %cst_117 : f32 to vector<16x1xf32>
      %247 = arith.addf %243, %246 : vector<16x1xf32>
      %248 = math.rsqrt %247 : vector<16x1xf32>
      %249 = vector.broadcast %248 : vector<16x1xf32> to vector<16x32xf32>
      %250 = arith.mulf %245, %249 : vector<16x32xf32>
      %251 = vector.broadcast %231 : vector<1x32xf32> to vector<16x32xf32>
      %252 = arith.mulf %250, %251 : vector<16x32xf32>
      %253 = vector.broadcast %232 : vector<1x32xf32> to vector<16x32xf32>
      %254 = arith.addf %252, %253 : vector<16x32xf32>
      %c0_118 = arith.constant 0 : index
      %c0_119 = arith.constant 0 : index
      %255 = vector.load %arg37[%c0_118, %c0_119] : memref<16x32xf32, #tpu.memory_space<vmem>>, vector<16x32xf32>
      tpu.vector_store %arg37[%c0_118, %c0_119], %254 {strides = array<i32>} : memref<16x32xf32, #tpu.memory_space<vmem>>, vector<16x32xf32>,
      %c0_120 = arith.constant 0 : index
      %c0_121 = arith.constant 0 : index
      %c0_122 = arith.constant 0 : index
      %256 = vector.load %arg2[%c0_120, %c0_121, %c0_122] : memref<1x8x64xf32, #tpu.memory_space<vmem>>, vector<1x8x64xf32>
      %257 = vector.shape_cast %256 : vector<1x8x64xf32> to vector<8x64xf32>
      %c0_123 = arith.constant 0 : index
      %c0_124 = arith.constant 0 : index
      %258 = vector.load %arg10[%c0_123, %c0_124] : memref<1x64xf32, #tpu.memory_space<vmem>>, vector<1x64xf32>
      %c0_125 = arith.constant 0 : index
      %c0_126 = arith.constant 0 : index
      %259 = vector.load %arg11[%c0_125, %c0_126] : memref<1x64xf32, #tpu.memory_space<vmem>>, vector<1x64xf32>
      %cst_127 = arith.constant dense<0.000000e+00> : vector<8xf32>
      %260 = vector.multi_reduction <add>, %257, %cst_127 [1] : vector<8x64xf32> to vector<8xf32>
      %261 = vector.shape_cast %260 : vector<8xf32> to vector<8x1xf32>
      %cst_128 = arith.constant 6.400000e+01 : f32
      %262 = vector.broadcast %cst_128 : f32 to vector<8x1xf32>
      %263 = arith.divf %261, %262 : vector<8x1xf32>
      %264 = vector.broadcast %263 : vector<8x1xf32> to vector<8x64xf32>
      %265 = arith.subf %257, %264 : vector<8x64xf32>
      %266 = arith.mulf %265, %265 : vector<8x64xf32>
      %cst_129 = arith.constant dense<0.000000e+00> : vector<8xf32>
      %267 = vector.multi_reduction <add>, %266, %cst_129 [1] : vector<8x64xf32> to vector<8xf32>
      %268 = vector.shape_cast %267 : vector<8xf32> to vector<8x1xf32>
      %cst_130 = arith.constant 6.400000e+01 : f32
      %269 = vector.broadcast %cst_130 : f32 to vector<8x1xf32>
      %270 = arith.divf %268, %269 : vector<8x1xf32>
      %271 = vector.broadcast %263 : vector<8x1xf32> to vector<8x64xf32>
      %272 = arith.subf %257, %271 : vector<8x64xf32>
      %cst_131 = arith.constant 9.99999974E-6 : f32
      %273 = vector.broadcast %cst_131 : f32 to vector<8x1xf32>
      %274 = arith.addf %270, %273 : vector<8x1xf32>
      %275 = math.rsqrt %274 : vector<8x1xf32>
      %276 = vector.broadcast %275 : vector<8x1xf32> to vector<8x64xf32>
      %277 = arith.mulf %272, %276 : vector<8x64xf32>
      %278 = vector.broadcast %258 : vector<1x64xf32> to vector<8x64xf32>
      %279 = arith.mulf %277, %278 : vector<8x64xf32>
      %280 = vector.broadcast %259 : vector<1x64xf32> to vector<8x64xf32>
      %281 = arith.addf %279, %280 : vector<8x64xf32>
      %c0_132 = arith.constant 0 : index
      %c0_133 = arith.constant 0 : index
      %282 = vector.load %arg12[%c0_132, %c0_133] : memref<64x32xbf16, #tpu.memory_space<vmem>>, vector<64x32xbf16>
      %283 = arith.truncf %281 : vector<8x64xf32> to vector<8x64xbf16>
      %cst_134 = arith.constant dense<0.000000e+00> : vector<8x32xf32>
      %284 = tpu.matmul %283, %282, %cst_134 {dimension_numbers = #tpu.dot_dimension_numbers<[1], [0], [0], [1], [0, 0, 1, 1], [], []>} : vector<8x64xbf16>, vector<64x32xbf16>, vector<8x32xf32> -> vector<8x32xf32>
      %c0_135 = arith.constant 0 : index
      %c0_136 = arith.constant 0 : index
      %285 = vector.load %arg13[%c0_135, %c0_136] : memref<1x32xf32, #tpu.memory_space<vmem>>, vector<1x32xf32>
      %286 = vector.broadcast %285 : vector<1x32xf32> to vector<8x32xf32>
      %287 = arith.addf %284, %286 : vector<8x32xf32>
      %c0_137 = arith.constant 0 : index
      %c0_138 = arith.constant 0 : index
      %288 = vector.load %arg36[%c0_137, %c0_138] : memref<8x32xf32, #tpu.memory_space<vmem>>, vector<8x32xf32>
      tpu.vector_store %arg36[%c0_137, %c0_138], %287 {strides = array<i32>} : memref<8x32xf32, #tpu.memory_space<vmem>>, vector<8x32xf32>,
    } else {
    }
    %c0 = arith.constant 0 : index
    %c0_1 = arith.constant 0 : index
    %3 = vector.load %arg36[%c0, %c0_1] : memref<8x32xf32, #tpu.memory_space<vmem>>, vector<8x32xf32>
    %c0_2 = arith.constant 0 : index
    %c0_3 = arith.constant 0 : index
    %4 = vector.load %arg37[%c0_2, %c0_3] : memref<16x32xf32, #tpu.memory_space<vmem>>, vector<16x32xf32>
    %c0_4 = arith.constant 0 : index
    %c0_5 = arith.constant 0 : index
    %c0_6 = arith.constant 0 : index
    %5 = vector.load %arg14[%c0_4, %c0_5, %c0_6] : memref<1x1x32xf32, #tpu.memory_space<vmem>>, vector<1x1x32xf32>
    %6 = vector.shape_cast %5 : vector<1x1x32xf32> to vector<1x32xf32>
    %c0_7 = arith.constant 0 : index
    %c0_8 = arith.constant 0 : index
    %c0_9 = arith.constant 0 : index
    %7 = vector.load %arg15[%c0_7, %c0_8, %c0_9] : memref<1x1x32xf32, #tpu.memory_space<vmem>>, vector<1x1x32xf32>
    %8 = vector.shape_cast %7 : vector<1x1x32xf32> to vector<1x32xf32>
    %cst = arith.constant dense<0.000000e+00> : vector<8xf32>
    %9 = vector.multi_reduction <add>, %3, %cst [1] : vector<8x32xf32> to vector<8xf32>
    %10 = vector.shape_cast %9 : vector<8xf32> to vector<8x1xf32>
    %cst_10 = arith.constant 3.200000e+01 : f32
    %11 = vector.broadcast %cst_10 : f32 to vector<8x1xf32>
    %12 = arith.divf %10, %11 : vector<8x1xf32>
    %13 = vector.broadcast %12 : vector<8x1xf32> to vector<8x32xf32>
    %14 = arith.subf %3, %13 : vector<8x32xf32>
    %15 = arith.mulf %14, %14 : vector<8x32xf32>
    %cst_11 = arith.constant dense<0.000000e+00> : vector<8xf32>
    %16 = vector.multi_reduction <add>, %15, %cst_11 [1] : vector<8x32xf32> to vector<8xf32>
    %17 = vector.shape_cast %16 : vector<8xf32> to vector<8x1xf32>
    %cst_12 = arith.constant 3.200000e+01 : f32
    %18 = vector.broadcast %cst_12 : f32 to vector<8x1xf32>
    %19 = arith.divf %17, %18 : vector<8x1xf32>
    %20 = vector.broadcast %12 : vector<8x1xf32> to vector<8x32xf32>
    %21 = arith.subf %3, %20 : vector<8x32xf32>
    %cst_13 = arith.constant 9.99999974E-6 : f32
    %22 = vector.broadcast %cst_13 : f32 to vector<8x1xf32>
    %23 = arith.addf %19, %22 : vector<8x1xf32>
    %24 = math.rsqrt %23 : vector<8x1xf32>
    %25 = vector.broadcast %24 : vector<8x1xf32> to vector<8x32xf32>
    %26 = arith.mulf %21, %25 : vector<8x32xf32>
    %27 = vector.broadcast %6 : vector<1x32xf32> to vector<8x32xf32>
    %28 = arith.mulf %26, %27 : vector<8x32xf32>
    %29 = vector.broadcast %8 : vector<1x32xf32> to vector<8x32xf32>
    %30 = arith.addf %28, %29 : vector<8x32xf32>
    %c0_14 = arith.constant 0 : index
    %c0_15 = arith.constant 0 : index
    %c0_16 = arith.constant 0 : index
    %31 = vector.load %arg16[%c0_14, %c0_15, %c0_16] : memref<1x32x96xbf16, #tpu.memory_space<vmem>>, vector<1x32x96xbf16>
    %32 = vector.shape_cast %31 : vector<1x32x96xbf16> to vector<32x96xbf16>
    %33 = arith.truncf %30 : vector<8x32xf32> to vector<8x32xbf16>
    %cst_17 = arith.constant dense<0.000000e+00> : vector<8x96xf32>
    %34 = tpu.matmul %33, %32, %cst_17 {dimension_numbers = #tpu.dot_dimension_numbers<[1], [0], [0], [1], [0, 0, 1, 1], [], []>} : vector<8x32xbf16>, vector<32x96xbf16>, vector<8x96xf32> -> vector<8x96xf32>
    %35 = vector.extract_strided_slice %34 {offsets = [0, 0], sizes = [8, 32], strides = [1, 1]} : vector<8x96xf32> to vector<8x32xf32>
    %36 = vector.extract_strided_slice %34 {offsets = [0, 32], sizes = [8, 32], strides = [1, 1]} : vector<8x96xf32> to vector<8x32xf32>
    %37 = vector.extract_strided_slice %34 {offsets = [0, 64], sizes = [8, 32], strides = [1, 1]} : vector<8x96xf32> to vector<8x32xf32>
    %cst_18 = arith.constant 0.353553385 : f32
    %38 = vector.broadcast %cst_18 : f32 to vector<8x32xf32>
    %39 = arith.mulf %35, %38 : vector<8x32xf32>
    %40 = vector.shape_cast %39 : vector<8x32xf32> to vector<8x4x8xf32>
    %41 = tpu.transpose %40, [1, 0, 2] : vector<8x4x8xf32> -> vector<4x8x8xf32>
    %42 = vector.shape_cast %36 : vector<8x32xf32> to vector<8x4x8xf32>
    %43 = tpu.transpose %42, [1, 0, 2] : vector<8x4x8xf32> -> vector<4x8x8xf32>
    %44 = vector.shape_cast %37 : vector<8x32xf32> to vector<8x4x8xf32>
    %45 = tpu.transpose %44, [1, 0, 2] : vector<8x4x8xf32> -> vector<4x8x8xf32>
    %46 = arith.truncf %41 : vector<4x8x8xf32> to vector<4x8x8xbf16>
    %47 = arith.truncf %43 : vector<4x8x8xf32> to vector<4x8x8xbf16>
    "tpu.trace_start"() <{level = 10 : i32, message = "hnd,hmd->hnm"}> : () -> ()
    %cst_19 = arith.constant dense<0.000000e+00> : vector<4x8x8xf32>
    %48 = tpu.matmul %46, %47, %cst_19 {dimension_numbers = #tpu.dot_dimension_numbers<[2], [2], [1], [1], [0, 0, 0, 1, 1, 1], [0], [0]>} : vector<4x8x8xbf16>, vector<4x8x8xbf16>, vector<4x8x8xf32> -> vector<4x8x8xf32>
    "tpu.trace_stop"() : () -> ()
    %cst_20 = arith.constant dense<0xFF800000> : vector<4x8xf32>
    %49 = vector.multi_reduction <maximumf>, %48, %cst_20 [2] : vector<4x8x8xf32> to vector<4x8xf32>
    %50 = vector.shape_cast %49 : vector<4x8xf32> to vector<4x8x1xf32>
    %51 = vector.broadcast %50 : vector<4x8x1xf32> to vector<4x8x8xf32>
    %52 = arith.subf %48, %51 : vector<4x8x8xf32>
    %53 = math.exp %52 : vector<4x8x8xf32>
    %cst_21 = arith.constant dense<0.000000e+00> : vector<4x8xf32>
    %54 = vector.multi_reduction <add>, %53, %cst_21 [2] : vector<4x8x8xf32> to vector<4x8xf32>
    %55 = vector.shape_cast %54 : vector<4x8xf32> to vector<4x8x1xf32>
    %56 = tpu.reciprocal %55 {approx = true} : vector<4x8x1xf32> -> vector<4x8x1xf32>
    %57 = vector.broadcast %56 : vector<4x8x1xf32> to vector<4x8x8xf32>
    %58 = arith.mulf %53, %57 : vector<4x8x8xf32>
    %59 = arith.truncf %58 : vector<4x8x8xf32> to vector<4x8x8xbf16>
    %60 = arith.truncf %45 : vector<4x8x8xf32> to vector<4x8x8xbf16>
    "tpu.trace_start"() <{level = 10 : i32, message = "hnm,hmd->hnd"}> : () -> ()
    %cst_22 = arith.constant dense<0.000000e+00> : vector<4x8x8xf32>
    %61 = tpu.matmul %59, %60, %cst_22 {dimension_numbers = #tpu.dot_dimension_numbers<[2], [1], [1], [2], [0, 0, 0, 1, 1, 2], [0], [0]>} : vector<4x8x8xbf16>, vector<4x8x8xbf16>, vector<4x8x8xf32> -> vector<4x8x8xf32>
    "tpu.trace_stop"() : () -> ()
    %62 = tpu.transpose %61, [1, 0, 2] : vector<4x8x8xf32> -> vector<8x4x8xf32>
    %63 = vector.shape_cast %62 : vector<8x4x8xf32> to vector<8x32xf32>
    %c0_23 = arith.constant 0 : index
    %c0_24 = arith.constant 0 : index
    %c0_25 = arith.constant 0 : index
    %64 = vector.load %arg17[%c0_23, %c0_24, %c0_25] : memref<1x32x32xbf16, #tpu.memory_space<vmem>>, vector<1x32x32xbf16>
    %65 = vector.shape_cast %64 : vector<1x32x32xbf16> to vector<32x32xbf16>
    %66 = arith.truncf %63 : vector<8x32xf32> to vector<8x32xbf16>
    %cst_26 = arith.constant dense<0.000000e+00> : vector<8x32xf32>
    %67 = tpu.matmul %66, %65, %cst_26 {dimension_numbers = #tpu.dot_dimension_numbers<[1], [0], [0], [1], [0, 0, 1, 1], [], []>} : vector<8x32xbf16>, vector<32x32xbf16>, vector<8x32xf32> -> vector<8x32xf32>
    %68 = arith.addf %3, %67 : vector<8x32xf32>
    %c0_27 = arith.constant 0 : index
    %c0_28 = arith.constant 0 : index
    %c0_29 = arith.constant 0 : index
    %69 = vector.load %arg18[%c0_27, %c0_28, %c0_29] : memref<1x1x32xf32, #tpu.memory_space<vmem>>, vector<1x1x32xf32>
    %70 = vector.shape_cast %69 : vector<1x1x32xf32> to vector<1x32xf32>
    %71 = vector.broadcast %70 : vector<1x32xf32> to vector<8x32xf32>
    %72 = arith.addf %68, %71 : vector<8x32xf32>
    %c0_30 = arith.constant 0 : index
    %c0_31 = arith.constant 0 : index
    %c0_32 = arith.constant 0 : index
    %73 = vector.load %arg19[%c0_30, %c0_31, %c0_32] : memref<1x1x32xf32, #tpu.memory_space<vmem>>, vector<1x1x32xf32>
    %74 = vector.shape_cast %73 : vector<1x1x32xf32> to vector<1x32xf32>
    %c0_33 = arith.constant 0 : index
    %c0_34 = arith.constant 0 : index
    %c0_35 = arith.constant 0 : index
    %75 = vector.load %arg20[%c0_33, %c0_34, %c0_35] : memref<1x1x32xf32, #tpu.memory_space<vmem>>, vector<1x1x32xf32>
    %76 = vector.shape_cast %75 : vector<1x1x32xf32> to vector<1x32xf32>
    %cst_36 = arith.constant dense<0.000000e+00> : vector<8xf32>
    %77 = vector.multi_reduction <add>, %72, %cst_36 [1] : vector<8x32xf32> to vector<8xf32>
    %78 = vector.shape_cast %77 : vector<8xf32> to vector<8x1xf32>
    %cst_37 = arith.constant 3.200000e+01 : f32
    %79 = vector.broadcast %cst_37 : f32 to vector<8x1xf32>
    %80 = arith.divf %78, %79 : vector<8x1xf32>
    %81 = vector.broadcast %80 : vector<8x1xf32> to vector<8x32xf32>
    %82 = arith.subf %72, %81 : vector<8x32xf32>
    %83 = arith.mulf %82, %82 : vector<8x32xf32>
    %cst_38 = arith.constant dense<0.000000e+00> : vector<8xf32>
    %84 = vector.multi_reduction <add>, %83, %cst_38 [1] : vector<8x32xf32> to vector<8xf32>
    %85 = vector.shape_cast %84 : vector<8xf32> to vector<8x1xf32>
    %cst_39 = arith.constant 3.200000e+01 : f32
    %86 = vector.broadcast %cst_39 : f32 to vector<8x1xf32>
    %87 = arith.divf %85, %86 : vector<8x1xf32>
    %88 = vector.broadcast %80 : vector<8x1xf32> to vector<8x32xf32>
    %89 = arith.subf %72, %88 : vector<8x32xf32>
    %cst_40 = arith.constant 9.99999974E-6 : f32
    %90 = vector.broadcast %cst_40 : f32 to vector<8x1xf32>
    %91 = arith.addf %87, %90 : vector<8x1xf32>
    %92 = math.rsqrt %91 : vector<8x1xf32>
    %93 = vector.broadcast %92 : vector<8x1xf32> to vector<8x32xf32>
    %94 = arith.mulf %89, %93 : vector<8x32xf32>
    %95 = vector.broadcast %74 : vector<1x32xf32> to vector<8x32xf32>
    %96 = arith.mulf %94, %95 : vector<8x32xf32>
    %97 = vector.broadcast %76 : vector<1x32xf32> to vector<8x32xf32>
    %98 = arith.addf %96, %97 : vector<8x32xf32>
    %c0_41 = arith.constant 0 : index
    %c0_42 = arith.constant 0 : index
    %c0_43 = arith.constant 0 : index
    %99 = vector.load %arg21[%c0_41, %c0_42, %c0_43] : memref<1x32x32xbf16, #tpu.memory_space<vmem>>, vector<1x32x32xbf16>
    %100 = vector.shape_cast %99 : vector<1x32x32xbf16> to vector<32x32xbf16>
    %101 = arith.truncf %98 : vector<8x32xf32> to vector<8x32xbf16>
    %cst_44 = arith.constant dense<0.000000e+00> : vector<8x32xf32>
    %102 = tpu.matmul %101, %100, %cst_44 {dimension_numbers = #tpu.dot_dimension_numbers<[1], [0], [0], [1], [0, 0, 1, 1], [], []>} : vector<8x32xbf16>, vector<32x32xbf16>, vector<8x32xf32> -> vector<8x32xf32>
    %c0_45 = arith.constant 0 : index
    %c0_46 = arith.constant 0 : index
    %c0_47 = arith.constant 0 : index
    %103 = vector.load %arg22[%c0_45, %c0_46, %c0_47] : memref<1x32x64xbf16, #tpu.memory_space<vmem>>, vector<1x32x64xbf16>
    %104 = vector.shape_cast %103 : vector<1x32x64xbf16> to vector<32x64xbf16>
    %105 = arith.truncf %4 : vector<16x32xf32> to vector<16x32xbf16>
    %cst_48 = arith.constant dense<0.000000e+00> : vector<16x64xf32>
    %106 = tpu.matmul %105, %104, %cst_48 {dimension_numbers = #tpu.dot_dimension_numbers<[1], [0], [0], [1], [0, 0, 1, 1], [], []>} : vector<16x32xbf16>, vector<32x64xbf16>, vector<16x64xf32> -> vector<16x64xf32>
    %107 = vector.extract_strided_slice %106 {offsets = [0, 0], sizes = [16, 32], strides = [1, 1]} : vector<16x64xf32> to vector<16x32xf32>
    %108 = vector.extract_strided_slice %106 {offsets = [0, 32], sizes = [16, 32], strides = [1, 1]} : vector<16x64xf32> to vector<16x32xf32>
    %cst_49 = arith.constant 0.353553385 : f32
    %109 = vector.broadcast %cst_49 : f32 to vector<8x32xf32>
    %110 = arith.mulf %102, %109 : vector<8x32xf32>
    %111 = vector.shape_cast %110 : vector<8x32xf32> to vector<8x4x8xf32>
    %112 = tpu.transpose %111, [1, 0, 2] : vector<8x4x8xf32> -> vector<4x8x8xf32>
    %113 = vector.shape_cast %107 : vector<16x32xf32> to vector<16x4x8xf32>
    %114 = tpu.transpose %113, [1, 0, 2] : vector<16x4x8xf32> -> vector<4x16x8xf32>
    %115 = vector.shape_cast %108 : vector<16x32xf32> to vector<16x4x8xf32>
    %116 = tpu.transpose %115, [1, 0, 2] : vector<16x4x8xf32> -> vector<4x16x8xf32>
    %117 = arith.truncf %112 : vector<4x8x8xf32> to vector<4x8x8xbf16>
    %118 = arith.truncf %114 : vector<4x16x8xf32> to vector<4x16x8xbf16>
    "tpu.trace_start"() <{level = 10 : i32, message = "hnd,hmd->hnm"}> : () -> ()
    %cst_50 = arith.constant dense<0.000000e+00> : vector<4x8x16xf32>
    %119 = tpu.matmul %117, %118, %cst_50 {dimension_numbers = #tpu.dot_dimension_numbers<[2], [2], [1], [1], [0, 0, 0, 1, 1, 1], [0], [0]>} : vector<4x8x8xbf16>, vector<4x16x8xbf16>, vector<4x8x16xf32> -> vector<4x8x16xf32>
    "tpu.trace_stop"() : () -> ()
    %cst_51 = arith.constant dense<0xFF800000> : vector<4x8xf32>
    %120 = vector.multi_reduction <maximumf>, %119, %cst_51 [2] : vector<4x8x16xf32> to vector<4x8xf32>
    %121 = vector.shape_cast %120 : vector<4x8xf32> to vector<4x8x1xf32>
    %122 = vector.broadcast %121 : vector<4x8x1xf32> to vector<4x8x16xf32>
    %123 = arith.subf %119, %122 : vector<4x8x16xf32>
    %124 = math.exp %123 : vector<4x8x16xf32>
    %cst_52 = arith.constant dense<0.000000e+00> : vector<4x8xf32>
    %125 = vector.multi_reduction <add>, %124, %cst_52 [2] : vector<4x8x16xf32> to vector<4x8xf32>
    %126 = vector.shape_cast %125 : vector<4x8xf32> to vector<4x8x1xf32>
    %127 = tpu.reciprocal %126 {approx = true} : vector<4x8x1xf32> -> vector<4x8x1xf32>
    %128 = vector.broadcast %127 : vector<4x8x1xf32> to vector<4x8x16xf32>
    %129 = arith.mulf %124, %128 : vector<4x8x16xf32>
    %130 = arith.truncf %129 : vector<4x8x16xf32> to vector<4x8x16xbf16>
    %131 = arith.truncf %116 : vector<4x16x8xf32> to vector<4x16x8xbf16>
    "tpu.trace_start"() <{level = 10 : i32, message = "hnm,hmd->hnd"}> : () -> ()
    %cst_53 = arith.constant dense<0.000000e+00> : vector<4x8x8xf32>
    %132 = tpu.matmul %130, %131, %cst_53 {dimension_numbers = #tpu.dot_dimension_numbers<[2], [1], [1], [2], [0, 0, 0, 1, 1, 2], [0], [0]>} : vector<4x8x16xbf16>, vector<4x16x8xbf16>, vector<4x8x8xf32> -> vector<4x8x8xf32>
    "tpu.trace_stop"() : () -> ()
    %133 = tpu.transpose %132, [1, 0, 2] : vector<4x8x8xf32> -> vector<8x4x8xf32>
    %134 = vector.shape_cast %133 : vector<8x4x8xf32> to vector<8x32xf32>
    %c0_54 = arith.constant 0 : index
    %c0_55 = arith.constant 0 : index
    %c0_56 = arith.constant 0 : index
    %135 = vector.load %arg23[%c0_54, %c0_55, %c0_56] : memref<1x32x32xbf16, #tpu.memory_space<vmem>>, vector<1x32x32xbf16>
    %136 = vector.shape_cast %135 : vector<1x32x32xbf16> to vector<32x32xbf16>
    %137 = arith.truncf %134 : vector<8x32xf32> to vector<8x32xbf16>
    %cst_57 = arith.constant dense<0.000000e+00> : vector<8x32xf32>
    %138 = tpu.matmul %137, %136, %cst_57 {dimension_numbers = #tpu.dot_dimension_numbers<[1], [0], [0], [1], [0, 0, 1, 1], [], []>} : vector<8x32xbf16>, vector<32x32xbf16>, vector<8x32xf32> -> vector<8x32xf32>
    %139 = arith.addf %72, %138 : vector<8x32xf32>
    %c0_58 = arith.constant 0 : index
    %c0_59 = arith.constant 0 : index
    %c0_60 = arith.constant 0 : index
    %140 = vector.load %arg24[%c0_58, %c0_59, %c0_60] : memref<1x1x32xf32, #tpu.memory_space<vmem>>, vector<1x1x32xf32>
    %141 = vector.shape_cast %140 : vector<1x1x32xf32> to vector<1x32xf32>
    %142 = vector.broadcast %141 : vector<1x32xf32> to vector<8x32xf32>
    %143 = arith.addf %139, %142 : vector<8x32xf32>
    %c0_61 = arith.constant 0 : index
    %c0_62 = arith.constant 0 : index
    %c0_63 = arith.constant 0 : index
    %144 = vector.load %arg25[%c0_61, %c0_62, %c0_63] : memref<1x1x32xf32, #tpu.memory_space<vmem>>, vector<1x1x32xf32>
    %145 = vector.shape_cast %144 : vector<1x1x32xf32> to vector<1x32xf32>
    %c0_64 = arith.constant 0 : index
    %c0_65 = arith.constant 0 : index
    %c0_66 = arith.constant 0 : index
    %146 = vector.load %arg26[%c0_64, %c0_65, %c0_66] : memref<1x1x32xf32, #tpu.memory_space<vmem>>, vector<1x1x32xf32>
    %147 = vector.shape_cast %146 : vector<1x1x32xf32> to vector<1x32xf32>
    %cst_67 = arith.constant dense<0.000000e+00> : vector<8xf32>
    %148 = vector.multi_reduction <add>, %143, %cst_67 [1] : vector<8x32xf32> to vector<8xf32>
    %149 = vector.shape_cast %148 : vector<8xf32> to vector<8x1xf32>
    %cst_68 = arith.constant 3.200000e+01 : f32
    %150 = vector.broadcast %cst_68 : f32 to vector<8x1xf32>
    %151 = arith.divf %149, %150 : vector<8x1xf32>
    %152 = vector.broadcast %151 : vector<8x1xf32> to vector<8x32xf32>
    %153 = arith.subf %143, %152 : vector<8x32xf32>
    %154 = arith.mulf %153, %153 : vector<8x32xf32>
    %cst_69 = arith.constant dense<0.000000e+00> : vector<8xf32>
    %155 = vector.multi_reduction <add>, %154, %cst_69 [1] : vector<8x32xf32> to vector<8xf32>
    %156 = vector.shape_cast %155 : vector<8xf32> to vector<8x1xf32>
    %cst_70 = arith.constant 3.200000e+01 : f32
    %157 = vector.broadcast %cst_70 : f32 to vector<8x1xf32>
    %158 = arith.divf %156, %157 : vector<8x1xf32>
    %159 = vector.broadcast %151 : vector<8x1xf32> to vector<8x32xf32>
    %160 = arith.subf %143, %159 : vector<8x32xf32>
    %cst_71 = arith.constant 9.99999974E-6 : f32
    %161 = vector.broadcast %cst_71 : f32 to vector<8x1xf32>
    %162 = arith.addf %158, %161 : vector<8x1xf32>
    %163 = math.rsqrt %162 : vector<8x1xf32>
    %164 = vector.broadcast %163 : vector<8x1xf32> to vector<8x32xf32>
    %165 = arith.mulf %160, %164 : vector<8x32xf32>
    %166 = vector.broadcast %145 : vector<1x32xf32> to vector<8x32xf32>
    %167 = arith.mulf %165, %166 : vector<8x32xf32>
    %168 = vector.broadcast %147 : vector<1x32xf32> to vector<8x32xf32>
    %169 = arith.addf %167, %168 : vector<8x32xf32>
    %c0_72 = arith.constant 0 : index
    %c0_73 = arith.constant 0 : index
    %c0_74 = arith.constant 0 : index
    %170 = vector.load %arg27[%c0_72, %c0_73, %c0_74] : memref<1x32x128xbf16, #tpu.memory_space<vmem>>, vector<1x32x128xbf16>
    %171 = vector.shape_cast %170 : vector<1x32x128xbf16> to vector<32x128xbf16>
    %172 = arith.truncf %169 : vector<8x32xf32> to vector<8x32xbf16>
    %cst_75 = arith.constant dense<0.000000e+00> : vector<8x128xf32>
    %173 = tpu.matmul %172, %171, %cst_75 {dimension_numbers = #tpu.dot_dimension_numbers<[1], [0], [0], [1], [0, 0, 1, 1], [], []>} : vector<8x32xbf16>, vector<32x128xbf16>, vector<8x128xf32> -> vector<8x128xf32>
    %c0_76 = arith.constant 0 : index
    %c0_77 = arith.constant 0 : index
    %c0_78 = arith.constant 0 : index
    %174 = vector.load %arg28[%c0_76, %c0_77, %c0_78] : memref<1x1x128xf32, #tpu.memory_space<vmem>>, vector<1x1x128xf32>
    %175 = vector.shape_cast %174 : vector<1x1x128xf32> to vector<1x128xf32>
    %176 = vector.broadcast %175 : vector<1x128xf32> to vector<8x128xf32>
    %177 = arith.addf %173, %176 : vector<8x128xf32>
    %cst_79 = arith.constant 5.000000e-01 : f32
    %178 = vector.broadcast %cst_79 : f32 to vector<8x128xf32>
    %179 = arith.mulf %178, %177 : vector<8x128xf32>
    %cst_80 = arith.constant 0.707106769 : f32
    %180 = vector.broadcast %cst_80 : f32 to vector<8x128xf32>
    %181 = arith.mulf %177, %180 : vector<8x128xf32>
    %182 = math.erf %181 : vector<8x128xf32>
    %cst_81 = arith.constant 1.000000e+00 : f32
    %183 = vector.broadcast %cst_81 : f32 to vector<8x128xf32>
    %184 = arith.addf %183, %182 : vector<8x128xf32>
    %185 = arith.mulf %179, %184 : vector<8x128xf32>
    %c0_82 = arith.constant 0 : index
    %c0_83 = arith.constant 0 : index
    %c0_84 = arith.constant 0 : index
    %186 = vector.load %arg29[%c0_82, %c0_83, %c0_84] : memref<1x128x32xbf16, #tpu.memory_space<vmem>>, vector<1x128x32xbf16>
    %187 = vector.shape_cast %186 : vector<1x128x32xbf16> to vector<128x32xbf16>
    %188 = arith.truncf %185 : vector<8x128xf32> to vector<8x128xbf16>
    %cst_85 = arith.constant dense<0.000000e+00> : vector<8x32xf32>
    %189 = tpu.matmul %188, %187, %cst_85 {dimension_numbers = #tpu.dot_dimension_numbers<[1], [0], [0], [1], [0, 0, 1, 1], [], []>} : vector<8x128xbf16>, vector<128x32xbf16>, vector<8x32xf32> -> vector<8x32xf32>
    %190 = arith.addf %143, %189 : vector<8x32xf32>
    %c0_86 = arith.constant 0 : index
    %c0_87 = arith.constant 0 : index
    %c0_88 = arith.constant 0 : index
    %191 = vector.load %arg30[%c0_86, %c0_87, %c0_88] : memref<1x1x32xf32, #tpu.memory_space<vmem>>, vector<1x1x32xf32>
    %192 = vector.shape_cast %191 : vector<1x1x32xf32> to vector<1x32xf32>
    %193 = vector.broadcast %192 : vector<1x32xf32> to vector<8x32xf32>
    %194 = arith.addf %190, %193 : vector<8x32xf32>
    %c0_89 = arith.constant 0 : index
    %c0_90 = arith.constant 0 : index
    %195 = vector.load %arg36[%c0_89, %c0_90] : memref<8x32xf32, #tpu.memory_space<vmem>>, vector<8x32xf32>
    tpu.vector_store %arg36[%c0_89, %c0_90], %194 {strides = array<i32>} : memref<8x32xf32, #tpu.memory_space<vmem>>, vector<8x32xf32>,
    %c1_i32 = arith.constant 1 : i32
    %196 = arith.cmpi eq, %arg1, %c1_i32 : i32
    %197 = arith.extui %196 : i1 to i32
    %c0_i32_91 = arith.constant 0 : i32
    %198 = arith.cmpi ne, %197, %c0_i32_91 : i32
    scf.if %198 {
      %c0_92 = arith.constant 0 : index
      %c0_93 = arith.constant 0 : index
      %199 = vector.load %arg31[%c0_92, %c0_93] : memref<1x32xf32, #tpu.memory_space<vmem>>, vector<1x32xf32>
      %c0_94 = arith.constant 0 : index
      %c0_95 = arith.constant 0 : index
      %200 = vector.load %arg32[%c0_94, %c0_95] : memref<1x32xf32, #tpu.memory_space<vmem>>, vector<1x32xf32>
      %cst_96 = arith.constant dense<0.000000e+00> : vector<8xf32>
      %201 = vector.multi_reduction <add>, %194, %cst_96 [1] : vector<8x32xf32> to vector<8xf32>
      %202 = vector.shape_cast %201 : vector<8xf32> to vector<8x1xf32>
      %cst_97 = arith.constant 3.200000e+01 : f32
      %203 = vector.broadcast %cst_97 : f32 to vector<8x1xf32>
      %204 = arith.divf %202, %203 : vector<8x1xf32>
      %205 = vector.broadcast %204 : vector<8x1xf32> to vector<8x32xf32>
      %206 = arith.subf %194, %205 : vector<8x32xf32>
      %207 = arith.mulf %206, %206 : vector<8x32xf32>
      %cst_98 = arith.constant dense<0.000000e+00> : vector<8xf32>
      %208 = vector.multi_reduction <add>, %207, %cst_98 [1] : vector<8x32xf32> to vector<8xf32>
      %209 = vector.shape_cast %208 : vector<8xf32> to vector<8x1xf32>
      %cst_99 = arith.constant 3.200000e+01 : f32
      %210 = vector.broadcast %cst_99 : f32 to vector<8x1xf32>
      %211 = arith.divf %209, %210 : vector<8x1xf32>
      %212 = vector.broadcast %204 : vector<8x1xf32> to vector<8x32xf32>
      %213 = arith.subf %194, %212 : vector<8x32xf32>
      %cst_100 = arith.constant 9.99999974E-6 : f32
      %214 = vector.broadcast %cst_100 : f32 to vector<8x1xf32>
      %215 = arith.addf %211, %214 : vector<8x1xf32>
      %216 = math.rsqrt %215 : vector<8x1xf32>
      %217 = vector.broadcast %216 : vector<8x1xf32> to vector<8x32xf32>
      %218 = arith.mulf %213, %217 : vector<8x32xf32>
      %219 = vector.broadcast %199 : vector<1x32xf32> to vector<8x32xf32>
      %220 = arith.mulf %218, %219 : vector<8x32xf32>
      %221 = vector.broadcast %200 : vector<1x32xf32> to vector<8x32xf32>
      %222 = arith.addf %220, %221 : vector<8x32xf32>
      %c0_101 = arith.constant 0 : index
      %c0_102 = arith.constant 0 : index
      %223 = vector.load %arg33[%c0_101, %c0_102] : memref<32x64xbf16, #tpu.memory_space<vmem>>, vector<32x64xbf16>
      %224 = arith.truncf %222 : vector<8x32xf32> to vector<8x32xbf16>
      %cst_103 = arith.constant dense<0.000000e+00> : vector<8x64xf32>
      %225 = tpu.matmul %224, %223, %cst_103 {dimension_numbers = #tpu.dot_dimension_numbers<[1], [0], [0], [1], [0, 0, 1, 1], [], []>} : vector<8x32xbf16>, vector<32x64xbf16>, vector<8x64xf32> -> vector<8x64xf32>
      %c0_104 = arith.constant 0 : index
      %c0_105 = arith.constant 0 : index
      %226 = vector.load %arg34[%c0_104, %c0_105] : memref<1x64xf32, #tpu.memory_space<vmem>>, vector<1x64xf32>
      %227 = vector.broadcast %226 : vector<1x64xf32> to vector<8x64xf32>
      %228 = arith.addf %225, %227 : vector<8x64xf32>
      %c0_106 = arith.constant 0 : index
      %c0_107 = arith.constant 0 : index
      %c0_108 = arith.constant 0 : index
      %229 = vector.load %arg35[%c0_106, %c0_107, %c0_108] : memref<1x8x64xf32, #tpu.memory_space<vmem>>, vector<1x8x64xf32>
      %230 = vector.shape_cast %229 : vector<1x8x64xf32> to vector<8x64xf32>
      %231 = vector.shape_cast %228 : vector<8x64xf32> to vector<1x8x64xf32>
      tpu.vector_store %arg35[%c0_106, %c0_107, %c0_108], %231 {strides = array<i32>} : memref<1x8x64xf32, #tpu.memory_space<vmem>>, vector<1x8x64xf32>,
    } else {
    }
    return
  }
  func.func @transform_0(%arg0: i32, %arg1: i32) -> (i32, i32, i32) {
    %c0_i32 = arith.constant 0 : i32
    %c0_i32_0 = arith.constant 0 : i32
    %c0_i32_1 = arith.constant 0 : i32
    return %arg0, %c0_i32, %c0_i32_0 : i32, i32, i32
  }
  func.func @transform_1(%arg0: i32, %arg1: i32) -> (i32, i32, i32) {
    %c0_i32 = arith.constant 0 : i32
    %c0_i32_0 = arith.constant 0 : i32
    %c0_i32_1 = arith.constant 0 : i32
    return %arg0, %c0_i32, %c0_i32_0 : i32, i32, i32
  }
  func.func @transform_2(%arg0: i32, %arg1: i32) -> (i32, i32) {
    %c0_i32 = arith.constant 0 : i32
    %c0_i32_0 = arith.constant 0 : i32
    %c0_i32_1 = arith.constant 0 : i32
    return %c0_i32, %c0_i32_0 : i32, i32
  }
  func.func @transform_3(%arg0: i32, %arg1: i32) -> (i32, i32) {
    %c0_i32 = arith.constant 0 : i32
    %c0_i32_0 = arith.constant 0 : i32
    %c0_i32_1 = arith.constant 0 : i32
    return %c0_i32, %c0_i32_0 : i32, i32
  }
  func.func @transform_4(%arg0: i32, %arg1: i32) -> (i32, i32) {
    %c0_i32 = arith.constant 0 : i32
    %c0_i32_0 = arith.constant 0 : i32
    %c0_i32_1 = arith.constant 0 : i32
    return %c0_i32, %c0_i32_0 : i32, i32
  }
  func.func @transform_5(%arg0: i32, %arg1: i32) -> (i32, i32) {
    %c0_i32 = arith.constant 0 : i32
    %c0_i32_0 = arith.constant 0 : i32
    %c0_i32_1 = arith.constant 0 : i32
    return %c0_i32, %c0_i32_0 : i32, i32
  }
  func.func @transform_6(%arg0: i32, %arg1: i32) -> (i32, i32) {
    %c0_i32 = arith.constant 0 : i32
    %c0_i32_0 = arith.constant 0 : i32
    %c0_i32_1 = arith.constant 0 : i32
    return %c0_i32, %c0_i32_0 : i32, i32
  }
  func.func @transform_7(%arg0: i32, %arg1: i32) -> (i32, i32) {
    %c0_i32 = arith.constant 0 : i32
    %c0_i32_0 = arith.constant 0 : i32
    %c0_i32_1 = arith.constant 0 : i32
    return %c0_i32, %c0_i32_0 : i32, i32
  }
  func.func @transform_8(%arg0: i32, %arg1: i32) -> (i32, i32) {
    %c0_i32 = arith.constant 0 : i32
    %c0_i32_0 = arith.constant 0 : i32
    %c0_i32_1 = arith.constant 0 : i32
    return %c0_i32, %c0_i32_0 : i32, i32
  }
  func.func @transform_9(%arg0: i32, %arg1: i32) -> (i32, i32) {
    %c0_i32 = arith.constant 0 : i32
    %c0_i32_0 = arith.constant 0 : i32
    %c0_i32_1 = arith.constant 0 : i32
    return %c0_i32, %c0_i32_0 : i32, i32
  }
  func.func @transform_10(%arg0: i32, %arg1: i32) -> (i32, i32) {
    %c0_i32 = arith.constant 0 : i32
    %c0_i32_0 = arith.constant 0 : i32
    %c0_i32_1 = arith.constant 0 : i32
    return %c0_i32, %c0_i32_0 : i32, i32
  }
  func.func @transform_11(%arg0: i32, %arg1: i32) -> (i32, i32) {
    %c0_i32 = arith.constant 0 : i32
    %c0_i32_0 = arith.constant 0 : i32
    %c0_i32_1 = arith.constant 0 : i32
    return %c0_i32, %c0_i32_0 : i32, i32
  }
  func.func @transform_12(%arg0: i32, %arg1: i32) -> (i32, i32, i32) {
    %c0_i32 = arith.constant 0 : i32
    %c0_i32_0 = arith.constant 0 : i32
    %c0_i32_1 = arith.constant 0 : i32
    return %arg1, %c0_i32, %c0_i32_0 : i32, i32, i32
  }
  func.func @transform_13(%arg0: i32, %arg1: i32) -> (i32, i32, i32) {
    %c0_i32 = arith.constant 0 : i32
    %c0_i32_0 = arith.constant 0 : i32
    %c0_i32_1 = arith.constant 0 : i32
    return %arg1, %c0_i32, %c0_i32_0 : i32, i32, i32
  }
  func.func @transform_14(%arg0: i32, %arg1: i32) -> (i32, i32, i32) {
    %c0_i32 = arith.constant 0 : i32
    %c0_i32_0 = arith.constant 0 : i32
    %c0_i32_1 = arith.constant 0 : i32
    return %arg1, %c0_i32, %c0_i32_0 : i32, i32, i32
  }
  func.func @transform_15(%arg0: i32, %arg1: i32) -> (i32, i32, i32) {
    %c0_i32 = arith.constant 0 : i32
    %c0_i32_0 = arith.constant 0 : i32
    %c0_i32_1 = arith.constant 0 : i32
    return %arg1, %c0_i32, %c0_i32_0 : i32, i32, i32
  }
  func.func @transform_16(%arg0: i32, %arg1: i32) -> (i32, i32, i32) {
    %c0_i32 = arith.constant 0 : i32
    %c0_i32_0 = arith.constant 0 : i32
    %c0_i32_1 = arith.constant 0 : i32
    return %arg1, %c0_i32, %c0_i32_0 : i32, i32, i32
  }
  func.func @transform_17(%arg0: i32, %arg1: i32) -> (i32, i32, i32) {
    %c0_i32 = arith.constant 0 : i32
    %c0_i32_0 = arith.constant 0 : i32
    %c0_i32_1 = arith.constant 0 : i32
    return %arg1, %c0_i32, %c0_i32_0 : i32, i32, i32
  }
  func.func @transform_18(%arg0: i32, %arg1: i32) -> (i32, i32, i32) {
    %c0_i32 = arith.constant 0 : i32
    %c0_i32_0 = arith.constant 0 : i32
    %c0_i32_1 = arith.constant 0 : i32
    return %arg1, %c0_i32, %c0_i32_0 : i32, i32, i32
  }
  func.func @transform_19(%arg0: i32, %arg1: i32) -> (i32, i32, i32) {
    %c0_i32 = arith.constant 0 : i32
    %c0_i32_0 = arith.constant 0 : i32
    %c0_i32_1 = arith.constant 0 : i32
    return %arg1, %c0_i32, %c0_i32_0 : i32, i32, i32
  }
  func.func @transform_20(%arg0: i32, %arg1: i32) -> (i32, i32, i32) {
    %c0_i32 = arith.constant 0 : i32
    %c0_i32_0 = arith.constant 0 : i32
    %c0_i32_1 = arith.constant 0 : i32
    return %arg1, %c0_i32, %c0_i32_0 : i32, i32, i32
  }
  func.func @transform_21(%arg0: i32, %arg1: i32) -> (i32, i32, i32) {
    %c0_i32 = arith.constant 0 : i32
    %c0_i32_0 = arith.constant 0 : i32
    %c0_i32_1 = arith.constant 0 : i32
    return %arg1, %c0_i32, %c0_i32_0 : i32, i32, i32
  }
  func.func @transform_22(%arg0: i32, %arg1: i32) -> (i32, i32, i32) {
    %c0_i32 = arith.constant 0 : i32
    %c0_i32_0 = arith.constant 0 : i32
    %c0_i32_1 = arith.constant 0 : i32
    return %arg1, %c0_i32, %c0_i32_0 : i32, i32, i32
  }
  func.func @transform_23(%arg0: i32, %arg1: i32) -> (i32, i32, i32) {
    %c0_i32 = arith.constant 0 : i32
    %c0_i32_0 = arith.constant 0 : i32
    %c0_i32_1 = arith.constant 0 : i32
    return %arg1, %c0_i32, %c0_i32_0 : i32, i32, i32
  }
  func.func @transform_24(%arg0: i32, %arg1: i32) -> (i32, i32, i32) {
    %c0_i32 = arith.constant 0 : i32
    %c0_i32_0 = arith.constant 0 : i32
    %c0_i32_1 = arith.constant 0 : i32
    return %arg1, %c0_i32, %c0_i32_0 : i32, i32, i32
  }
  func.func @transform_25(%arg0: i32, %arg1: i32) -> (i32, i32, i32) {
    %c0_i32 = arith.constant 0 : i32
    %c0_i32_0 = arith.constant 0 : i32
    %c0_i32_1 = arith.constant 0 : i32
    return %arg1, %c0_i32, %c0_i32_0 : i32, i32, i32
  }
  func.func @transform_26(%arg0: i32, %arg1: i32) -> (i32, i32, i32) {
    %c0_i32 = arith.constant 0 : i32
    %c0_i32_0 = arith.constant 0 : i32
    %c0_i32_1 = arith.constant 0 : i32
    return %arg1, %c0_i32, %c0_i32_0 : i32, i32, i32
  }
  func.func @transform_27(%arg0: i32, %arg1: i32) -> (i32, i32, i32) {
    %c0_i32 = arith.constant 0 : i32
    %c0_i32_0 = arith.constant 0 : i32
    %c0_i32_1 = arith.constant 0 : i32
    return %arg1, %c0_i32, %c0_i32_0 : i32, i32, i32
  }
  func.func @transform_28(%arg0: i32, %arg1: i32) -> (i32, i32, i32) {
    %c0_i32 = arith.constant 0 : i32
    %c0_i32_0 = arith.constant 0 : i32
    %c0_i32_1 = arith.constant 0 : i32
    return %arg1, %c0_i32, %c0_i32_0 : i32, i32, i32
  }
  func.func @transform_29(%arg0: i32, %arg1: i32) -> (i32, i32) {
    %c0_i32 = arith.constant 0 : i32
    %c0_i32_0 = arith.constant 0 : i32
    %c0_i32_1 = arith.constant 0 : i32
    return %c0_i32, %c0_i32_0 : i32, i32
  }
  func.func @transform_30(%arg0: i32, %arg1: i32) -> (i32, i32) {
    %c0_i32 = arith.constant 0 : i32
    %c0_i32_0 = arith.constant 0 : i32
    %c0_i32_1 = arith.constant 0 : i32
    return %c0_i32, %c0_i32_0 : i32, i32
  }
  func.func @transform_31(%arg0: i32, %arg1: i32) -> (i32, i32) {
    %c0_i32 = arith.constant 0 : i32
    %c0_i32_0 = arith.constant 0 : i32
    %c0_i32_1 = arith.constant 0 : i32
    return %c0_i32, %c0_i32_0 : i32, i32
  }
  func.func @transform_32(%arg0: i32, %arg1: i32) -> (i32, i32) {
    %c0_i32 = arith.constant 0 : i32
    %c0_i32_0 = arith.constant 0 : i32
    %c0_i32_1 = arith.constant 0 : i32
    return %c0_i32, %c0_i32_0 : i32, i32
  }
  func.func @transform_33(%arg0: i32, %arg1: i32) -> (i32, i32, i32) {
    %c0_i32 = arith.constant 0 : i32
    %c0_i32_0 = arith.constant 0 : i32
    %c0_i32_1 = arith.constant 0 : i32
    return %arg0, %c0_i32, %c0_i32_0 : i32, i32, i32
  }
}

</mosaic_0001>

<bundles_post_ra>
// kernel: context_decoder_forward.1
= control target key start
LH: loop header
LB: loop body
LE: loop exit
PB: predicated region body
PF: predicated region fallthrough
CT: control target
= control target key end

     0   :  { %s6692_s6 = smov 1   ;;  %s6693_s10 = smov 2   ;;  %s8006_s0 = inlined_call_operand.smem [shape: u32[34], index: -1, kind: input, shape index: {}] }
   0x1   :  { %s6768_s5 = sld [smem:[%s8006_s0]]   ;;  %s6694_s14 = smov 3  }
   0x2   :  { %s6773_s9 = sld [smem:[%s8006_s0 + %s6692_s6]]   ;;  %s6695_s18 = smov 4  }
   0x3   :  { %s6778_s13 = sld [smem:[%s8006_s0 + %s6693_s10]]   ;;  %s6696_s22 = smov 5  }
   0x4   :  { %s6783_s17 = sld [smem:[%s8006_s0 + %s6694_s14]]   ;;  %s6697_s26 = smov 6  }
   0x5   :  { %s6788_s21 = sld [smem:[%s8006_s0 + %s6695_s18]]   ;;  %s6698_s30 = smov 7  }
   0x6   :  { %s6793_s25 = sld [smem:[%s8006_s0 + %s6696_s22]]   ;;  %s6699_s4 = smov 8  }
   0x7   :  { %8050 = sst [smem:[#allocation33_spill]] %s6768_s5  ;;  %s6700_s10 = smov 9  }
   0x8   :  { %8051 = sst [smem:[#allocation34_spill]] %s6773_s9  ;;  %s6701_s15 = smov 10  }
   0x9   :  { %8052 = sst [smem:[#allocation35_spill]] %s6778_s13  ;;  %s6702_s20 = smov 11  }
   0xa   :  { %8053 = sst [smem:[#allocation36_spill]] %s6783_s17  ;;  %s6704_s1 = smov 13  }
   0xb   :  { %8054 = sst [smem:[#allocation37_spill]] %s6788_s21  ;;  %s6705_s7 = smov 14  }
   0xc   :  { %8055 = sst [smem:[#allocation38_spill]] %s6793_s25  ;;  %s6707_s22 = smov 16  }
   0xd   :  { %s6798_s29 = sld [smem:[%s8006_s0 + %s6697_s26]]   ;;  %s6703_s26 = smov 12  }
   0xe   :  { %s6803_s3 = sld [smem:[%s8006_s0 + %s6698_s30]]   ;;  %s6708_s28 = smov 17  }
   0xf   :  { %s6808_s8 = sld [smem:[%s8006_s0 + %s6699_s4]]  }
  0x10   :  { %s6813_s14 = sld [smem:[%s8006_s0 + %s6700_s10]]  }
  0x11   :  { %s6818_s19 = sld [smem:[%s8006_s0 + %s6701_s15]]   ;;  %s6706_s15 = smov 15  }
  0x12   :  { %s6823_s24 = sld [smem:[%s8006_s0 + %s6702_s20]]  }
  0x13   :  { %8056 = sst [smem:[#allocation39_spill]] %s6798_s29 }
  0x14   :  { %8057 = sst [smem:[#allocation40_spill]] %s6803_s3 }
  0x15   :  { %8058 = sst [smem:[#allocation41_spill]] %s6808_s8 }
  0x16   :  { %8059 = sst [smem:[#allocation42_spill]] %s6813_s14 }
  0x17   :  { %8060 = sst [smem:[#allocation43_spill]] %s6818_s19 }
  0x18   :  { %8061 = sst [smem:[#allocation44_spill]] %s6823_s24 }
  0x19   :  { %s6828_s30 = sld [smem:[%s8006_s0 + %s6703_s26]]  }
  0x1a   :  { %s6833_s6 = sld [smem:[%s8006_s0 + %s6704_s1]]  }
  0x1b   :  { %s6838_s12 = sld [smem:[%s8006_s0 + %s6705_s7]]   ;;  %s6709_s7 = smov 18  }
  0x1c   :  { %s6843_s20 = sld [smem:[%s8006_s0 + %s6706_s15]]   ;;  %s6710_s15 = smov 19  }
  0x1d   :  { %s6848_s27 = sld [smem:[%s8006_s0 + %s6707_s22]]   ;;  %s6711_s22 = smov 20  }
  0x1e   :  { %s6853_s4 = sld [smem:[%s8006_s0 + %s6708_s28]]   ;;  %s6712_s28 = smov 21  }
  0x1f   :  { %8062 = sst [smem:[#allocation45_spill]] %s6828_s30 }
  0x20   :  { %8063 = sst [smem:[#allocation46_spill]] %s6833_s6 }
  0x21   :  { %8064 = sst [smem:[#allocation47_spill]] %s6838_s12 }
  0x22   :  { %8065 = sst [smem:[#allocation48_spill]] %s6843_s20 }
  0x23   :  { %8066 = sst [smem:[#allocation49_spill]] %s6848_s27 }
  0x24   :  { %8067 = sst [smem:[#allocation50_spill]] %s6853_s4 }
  0x25   :  { %s6858_s24 = sld [smem:[%s8006_s0 + %s6709_s7]]   ;;  %s6713_s7 = smov 22  }
  0x26   :  { %s6863_s14 = sld [smem:[%s8006_s0 + %s6710_s15]]   ;;  %s6714_s15 = smov 23  }
  0x27   :  { %s6868_s8 = sld [smem:[%s8006_s0 + %s6711_s22]]   ;;  %s6715_s22 = smov 24  }
  0x28   :  { %s6873_s19 = sld [smem:[%s8006_s0 + %s6712_s28]]   ;;  %s6716_s28 = smov 25  }
  0x29   :  { %s6878_s21 = sld [smem:[%s8006_s0 + %s6713_s7]]   ;;  %s6717_s7 = smov 26  }
  0x2a   :  { %s6898_s27 = sld [smem:[%s8006_s0 + %s6717_s7]]   ;;  %s6721_s7 = smov 30  }
  0x2b   :  { %8068 = sst [smem:[#allocation51_spill]] %s6858_s24 }
  0x2c   :  { %8069 = sst [smem:[#allocation52_spill]] %s6863_s14 }
  0x2d   :  { %8070 = sst [smem:[#allocation53_spill]] %s6868_s8 }
  0x2e   :  { %8071 = sst [smem:[#allocation54_spill]] %s6873_s19 }
  0x2f   :  { %8072 = sst [smem:[#allocation55_spill]] %s6878_s21 }
  0x30   :  { %s6883_s14 = sld [smem:[%s8006_s0 + %s6714_s15]]   ;;  %s6718_s15 = smov 27  }
  0x31   :  { %s6888_s8 = sld [smem:[%s8006_s0 + %s6715_s22]]   ;;  %s6719_s22 = smov 28  }
  0x32   :  { %s6893_s19 = sld [smem:[%s8006_s0 + %s6716_s28]]   ;;  %s6720_s28 = smov 29  }
  0x33   :  { %8076 = sst [smem:[#allocation59_spill]] %s6898_s27 }
  0x34   :  { %s6903_s20 = sld [smem:[%s8006_s0 + %s6718_s15]]   ;;  %s6722_s15 = smov 31  }
  0x35   :  { %s6908_s12 = sld [smem:[%s8006_s0 + %s6719_s22]]   ;;  %s6723_s22 = smov 32  }
  0x36   :  { %8073 = sst [smem:[#allocation56_spill]] %s6883_s14 }
  0x37   :  { %8074 = sst [smem:[#allocation57_spill]] %s6888_s8 }
  0x38   :  { %8075 = sst [smem:[#allocation58_spill]] %s6893_s19 }
  0x39   :  { %s6913_s19 = sld [smem:[%s8006_s0 + %s6720_s28]]   ;;  %s6724_s28 = smov 33  }
  0x3a   :  { %8077 = sst [smem:[#allocation60_spill]] %s6903_s20 }
  0x3b   :  { %8078 = sst [smem:[#allocation61_spill]] %s6908_s12 }
  0x3c   :  { %s6918_s9 = sld [smem:[%s8006_s0 + %s6721_s7]]  }
  0x3d   :  { %s6923_s20 = sld [smem:[%s8006_s0 + %s6722_s15]]  }
  0x3e   :  { %s6928_s12 = sld [smem:[%s8006_s0 + %s6723_s22]]  }
  0x3f   :  { %8079 = sst [smem:[#allocation62_spill]] %s6913_s19 }
  0x40   :  { %s6933_s19 = sld [smem:[%s8006_s0 + %s6724_s28]]  }
  0x42   :  { %8080 = sst [smem:[#allocation63_spill]] %s6918_s9 }
  0x43   :  { %8081 = sst [smem:[#allocation64_spill]] %s6923_s20 }
  0x44   :  { %8082 = sst [smem:[#allocation65_spill]] %s6928_s12 }
  0x46   :  { %8083 = sst [smem:[#allocation66_spill]] %s6933_s19 }
  0x47   :  { %72 = vsyncpa [#allocation5], 0 }
  0x48   :  { %74 = vsyncpa [#allocation5 + $0x1], 0 }
  0x49   :  { %75 = vsyncpa [#allocation8], 0 }
  0x4a   :  { %76 = vsyncpa [#allocation11], 0 }
  0x4b   :  { %77 = vsyncpa [#allocation14], 0 }
  0x4c   :  { %78 = vsyncpa [#allocation6], 0 }
  0x4d   :  { %80 = vsyncpa [#allocation6 + $0x1], 0  ;;  %s6935_s7 = smov 0   ;;  %s6937_s10 = smov 0  }
  0x4e   :  { %s6939_s11 = smov 0   ;;  %s6941_s15 = smov 0  }
  0x4f   :  { %s6943_s16 = smov 0   ;;  %s6945_s18 = smov 0  }
  0x50   :  { %s6947_s0 = smov 0   ;;  %s6949_s22 = smov 0  }
  0x51   :  { %s6951_s23 = smov 0   ;;  %s6953_s26 = smov 0  }
  0x52   :  { %s6955_s28 = smov 0  }
  0x53 LB: > { %s8084_s30 = sld [smem:[#allocation45_spill]]  ;;  %s6991_s1 = sadd.s32 4294967295, %s6690_s28   ;;  %s6678_s22 = sphi %s6949_s22, %s8191_s22   ;;  %s6674_s0 = sphi %s6947_s0, %s8190_s0   ;;  %s6670_s18 = sphi %s6945_s18, %s8189_s18   ;;  %s6666_s16 = sphi %s6943_s16, %s8195_s16   ;;  %s6662_s15 = sphi %s6941_s15, %s8194_s15   ;;  %s6658_s11 = sphi %s6939_s11, %s8187_s11   ;;  %s6654_s10 = sphi %s6937_s10, %s8186_s10   ;;  %s6650_s7 = sphi %s6935_s7, %s8185_s7   ;;  %s6690_s28 = sphi %s6955_s28, %s86_s28   ;;  %s6686_s26 = sphi %s6953_s26, %s8193_s26   ;;  %s6682_s23 = sphi %s6951_s23, %s8192_s23  }
  0x54   : > { %s8085_s24 = sld [smem:[#allocation51_spill]]  ;;  %s5350_s2 = sadd.s32 4294967294, %s6690_s28  }
  0x55   : > { %s8086_s21 = sld [smem:[#allocation55_spill]]  ;;  %s95_s19 = sadd.s32 1, %s6682_s23 }
  0x56   : > { %s8087_s8 = sld [smem:[#allocation57_spill]]  ;;  %s98_s12 = sadd.s32 1, %s6686_s26 }
  0x57   : > { %s8088_s14 = sld [smem:[#allocation56_spill]]  ;;  %p96_p0 = scmp.ge.s32.totalorder %s95_s19, 2 }
  0x58   : > { %s8089_s6 = sld [smem:[#allocation46_spill]]  ;;  %s105_s9 = sadd.s32 1, %s6670_s18 }
  0x59   : > { %s8090_s4 = sld [smem:[#allocation50_spill]]  ;;  %p112_p1 = scmp.ne.s32.totalorder %s6670_s18, %s6666_s16 }
  0x5a   : > { %s8091_s5 = sld [smem:[#allocation33_spill]]  ;;  %p113_p2 = scmp.eq.s32.totalorder %s6690_s28, 0 }
  0x5b   : > { %8092 = sst [smem:[#allocation67_spill]] %s6654_s10  ;;  %s8197_s19 = smov (%p96_p0, %s95_s19), 0 }
  0x5c   : > { %8093 = sst [smem:[#allocation68_spill]] %s6658_s11  ;;  %s8199_s12 = smov (!%p96_p0, %s98_s12), %s6686_s26 }
  0x5d   : > { %8094 = sst [smem:[#allocation69_spill]] %s6662_s15  ;;  %p7008_p3 = por %p113_p2, %p112_p1 }
  0x5e   : > { %8095 = sst [smem:[#allocation70_spill]] %s6670_s18  ;;  %p118_p4 = scmp.ne.s32.totalorder %s6666_s16, %s6662_s15 }
  0x5f   : > { %8096 = sst [smem:[#allocation71_spill]] %s6674_s0  ;;  %p100_p5 = scmp.ge.s32.totalorder %s8199_s12, 2 }
  0x60   : > { %8097 = sst [smem:[#allocation72_spill]] %s6678_s22  ;;  %p8021_p6 = scmp.eq.s32.totalorder %s6991_s1, 0 }
  0x61   : > { %8098 = sst [smem:[#allocation73_spill]] %s6682_s23  ;;  %s364_s22 = ssub.s32 %s6682_s23, %s8197_s19 }
  0x62   : > { %8099 = sst [smem:[#allocation74_spill]] %s6686_s26  ;;  %s367_s20 = sadd.s32 1, %s6658_s11 }
  0x63   : > { %8100 = sst [smem:[#allocation75_spill]] %s8197_s19  ;;  %s8201_s12 = smov (%p100_p5, %s8199_s12), 0 }
  0x64   : > { %8102 = sst [smem:[#allocation76_spill]] %s8201_s12  ;;  %p7025_p7 = por %p8021_p6, %p118_p4 }
  0x65   : > { %p365_p8 = scmp.eq.s32.totalorder %s364_s22, 0  ;;  %s102_s29 = ssub.s32 %s6686_s26, %s8201_s12 }
  0x66   : > { %s8103_s3 = scalar_select %p7025_p7, 1, 0 }
  0x67   : > { %p374_p9 = scmp.ne.s32.totalorder %s6658_s11, %s6654_s10  ;;  %p103_p10 = scmp.eq.s32.totalorder %s102_s29, 0 }
  0x68   : > { %p380_p11 = scmp.ne.s32.totalorder %s6654_s10, %s6650_s7  ;;  %p904_p0 = scmp.eq.s32.totalorder %s6991_s1, 3 }
  0x69   : > { %s7036_s19 = scalar_select %p365_p8, %s6658_s11, %s367_s20  }
  0x6a   : > { %s7039_s25 = scalar_select %p103_p10, %s6670_s18, %s105_s9  }
  0x6b   : > { %8104 = sst [smem:[#allocation77_spill]] %s7036_s19  ;;  %p7043_p12 = por %p374_p9, %p113_p2 }
  0x6c   : > { %8105 = sst [smem:[#allocation78_spill]] %s7039_s25  ;;  %p7049_p13 = por %p380_p11, %p8021_p6 }
  0x6d   : > { %s8106_s27 = scalar_select %p7043_p12, 1, 0 }
  0x6e   : > { %s8107_s22 = scalar_select %p7049_p13, 1, 0 }
  0x6f   : > { %p910_p5 = scmp.eq.s32.totalorder %s5350_s2, 3  ;;  %p7057_p8 = por %p904_p0, %p112_p1 }
  0x70   : > { %8108 = sst [smem:[#allocation79_spill]] %s8107_s22  ;;  %p8022_p2 = scmp.lt.s32.totalorder %s6690_s28, 4 }
  0x71   : > { %s8109_s29 = scalar_select %p7057_p8, 1, 0 }
  0x72   : > { %p7064_p10 = por %p910_p5, %p118_p4  ;;  %s1022_s20 = sand.u32 1, %s6690_s28  }
  0x73   : > { %s1024_s7 = sand.u32 1, %s6670_s18   ;;  %s5360_s25 = sshll.u32 %s6686_s26, 7 }
  0x74   : > { %s8110_s9 = scalar_select %p7064_p10, 1, 0 }
  0x75   : > { %s5359_s12 = sshll.u32 %s1024_s7, 3  ;;  %s7073_s19 = scalar_lea.hbm %s8091_s5, %s5360_s25 }
  0x76   : > { %s1026_s2 = scalar_lea.vmem [#allocation4], %s5359_s12  ;;  %p7079_p1 = pnand %p8022_p2, %p7008_p3 }
  0x77   : > { %s1033_s22 = sshll.u32 %s1026_s2, 4  ;;  %s7086_s18 = sand.u32 1, %s6658_s11   ;;  %s7083_s22 = int_to_ptr.vmem [resolvable:$true] %s1033_s22 }
  0x78   : > { %s7089_s7 = sshll.u32 %s6682_s23, 4  ;;  %s7091_s25 = scalar_lea.sflag [#allocation5], %s1022_s20 }
  0x79   : > { %s6114_s26 = scalar_lea.hbm %s7073_s19, 128  ;;  %p6116_p9 = pneg %p7079_p1 }
  0x7a   : > { %p6115_p4 = scmp.ne.s32.totalorder %s7073_s19, %s6114_s26  ;;  %s6119_s12 = scalar_lea.hbm %s8091_s5, 256 }
  0x7b   : > { %p6120_p3 = scmp.lt.s32.totalorder %s7073_s19, %s8091_s5  ;;  %p6121_p5 = scmp.lt.s32.totalorder %s6119_s12, %s6114_s26 }
  0x7c   : > { %p6117_p11 = pnand %p6116_p9, %p6115_p4 }
  0x7d   : > { %p6122_p6 = por %p6121_p5, %p6120_p3 }
  0x7e   : > { %p6118_p0 = pneg %p6117_p11 }
  0x80   : > { %p6123_p2 = pnand %p6122_p6, %p6118_p0 }
  0x82   : > { %6126 = shalt.err (!%p6123_p2)
}
  0x83   : > { %s6127_s0 = scalar_lea.vmem %s7083_s22, 128  ;;  %s6725_s20 = smov [#allocation4]  }
  0x84   : > { %p6128_p10 = scmp.ne.s32.totalorder %s7083_s22, %s6127_s0  ;;  %s6132_s2 = sshll.u32 %s6725_s20, 4  ;;  %s6133_s2 = int_to_ptr.vmem [resolvable:$false] %s6132_s2 }
  0x85   : > { %s6134_s23 = scalar_lea.vmem %s6133_s2, 256  ;;  %p6135_p7 = scmp.lt.s32.totalorder %s7083_s22, %s6133_s2 }
  0x86   : > { %p6130_p8 = pnand %p6128_p10, %p6116_p9  ;;  %p6136_p4 = scmp.lt.s32.totalorder %s6134_s23, %s6127_s0 }
  0x88   : > { %p6131_p13 = pneg %p6130_p8  ;;  %p6137_p11 = por %p6136_p4, %p6135_p7 }
  0x8a   : > { %p6138_p12 = pnand %p6137_p11, %p6131_p13 }
  0x8c   : > { %6141 = shalt.err (!%p6138_p12)
}
  0x8d   : > { %5841 = dma.hbm_to_vmem [thread:$0]  (!%p7079_p1), %s7073_s19, 128, %s7083_s22, %s7091_s25  }
  0x8e   : > { %p8112_p6 = scmp.ne.s32.totalorder %s8106_s27, 0  ;;  %p8113_p8 = scmp.lt.s32.totalorder %s6690_s28, 4 }
  0x8f   : > { %s7118_s26 = scalar_lea.hbm %s8084_s30, %s7089_s7  ;;  %s1051_s15 = scalar_lea.vmem [#allocation15], %s7086_s18 }
  0x90   : > { %p7112_p10 = pnand %p8113_p8, %p8112_p6  ;;  %s1058_s12 = sshll.u32 %s1051_s15, 4  ;;  %s1059_s12 = int_to_ptr.vmem [resolvable:$true] %s1058_s12 }
  0x91   : > { %s6142_s0 = scalar_lea.hbm %s7118_s26, 16  ;;  %s6147_s27 = scalar_lea.hbm %s8084_s30, 32 }
  0x92   : > { %s8114_s23 = scalar_select %p7112_p10, 1, 0 }
  0x93   : > { %p6143_p7 = scmp.ne.s32.totalorder %s7118_s26, %s6142_s0  ;;  %p7125_p12 = pneg %p7112_p10 }
  0x94   : > { %p6148_p1 = scmp.lt.s32.totalorder %s7118_s26, %s8084_s30  ;;  %p6149_p9 = scmp.lt.s32.totalorder %s6147_s27, %s6142_s0 }
  0x95   : > { %s8115_s19 = scalar_select %p7125_p12, 1, 0 }
  0x96   : > { %p6145_p13 = pnand %p7125_p12, %p6143_p7  ;;  %p6150_p0 = por %p6149_p9, %p6148_p1 }
  0x98   : > { %p6146_p2 = pneg %p6145_p13 }
  0x9a   : > { %p6151_p3 = pnand %p6150_p0, %p6146_p2 }
  0x9c   : > { %6154 = shalt.err (!%p6151_p3)
}
  0x9d   : > { %s6155_s22 = scalar_lea.vmem %s1059_s12, 16  ;;  %s6726_s20 = smov [#allocation15]  }
  0x9e   : > { %p6156_p5 = scmp.ne.s32.totalorder %s1059_s12, %s6155_s22  ;;  %s6160_s2 = sshll.u32 %s6726_s20, 4  ;;  %s6161_s2 = int_to_ptr.vmem [resolvable:$false] %s6160_s2 }
  0x9f   : > { %s6162_s15 = scalar_lea.vmem %s6161_s2, 32  ;;  %p6163_p6 = scmp.lt.s32.totalorder %s1059_s12, %s6161_s2 }
  0xa0   : > { %p6158_p4 = pnand %p6156_p5, %p7125_p12  ;;  %p6164_p8 = scmp.lt.s32.totalorder %s6162_s15, %s6155_s22 }
  0xa2   : > { %p6159_p11 = pneg %p6158_p4  ;;  %p6165_p7 = por %p6164_p8, %p6163_p6 }
  0xa4   : > { %p6166_p13 = pnand %p6165_p7, %p6159_p11 }
  0xa6   : > { %6169 = shalt.err (!%p6166_p13)
}
  0xa7   : > { %5844 = dma.hbm_to_vmem [thread:$0]  (!%p7112_p10), %s7118_s26, 16, %s1059_s12, %s7091_s25  }
  0xa8   : > { %s7142_s0 = scalar_lea.hbm %s8089_s6, %s7089_s7  ;;  %s1068_s27 = scalar_lea.vmem [#allocation16], %s7086_s18 }
  0xa9   : > { %s1075_s22 = sshll.u32 %s1068_s27, 4  ;;  %s7147_s20 = scalar_lea.hbm %s8090_s4, %s7089_s7  ;;  %s1076_s22 = int_to_ptr.vmem [resolvable:$true] %s1075_s22 }
  0xaa   : > { %s6170_s2 = scalar_lea.hbm %s7142_s0, 16  ;;  %s6175_s15 = scalar_lea.hbm %s8089_s6, 32 }
  0xab   : > { %p6171_p2 = scmp.ne.s32.totalorder %s7142_s0, %s6170_s2  ;;  %p6176_p0 = scmp.lt.s32.totalorder %s7142_s0, %s8089_s6 }
  0xac   : > { %p6177_p3 = scmp.lt.s32.totalorder %s6175_s15, %s6170_s2 }
  0xad   : > { %p6173_p1 = pnand %p6171_p2, %p7125_p12 }
  0xae   : > { %p6178_p5 = por %p6177_p3, %p6176_p0 }
  0xaf   : > { %p6174_p9 = pneg %p6173_p1 }
  0xb1   : > { %p6179_p4 = pnand %p6178_p5, %p6174_p9 }
  0xb3   : > { %6182 = shalt.err (!%p6179_p4)
}
  0xb4   : > { %s6183_s26 = scalar_lea.vmem %s1076_s22, 16  ;;  %s6727_s12 = smov [#allocation16]  }
  0xb5   : > { %p6184_p11 = scmp.ne.s32.totalorder %s1076_s22, %s6183_s26  ;;  %s6188_s27 = sshll.u32 %s6727_s12, 4  ;;  %s6189_s27 = int_to_ptr.vmem [resolvable:$false] %s6188_s27 }
  0xb6   : > { %s6190_s5 = scalar_lea.vmem %s6189_s27, 32  ;;  %p6191_p7 = scmp.lt.s32.totalorder %s1076_s22, %s6189_s27 }
  0xb7   : > { %p6186_p6 = pnand %p6184_p11, %p7125_p12  ;;  %p6192_p13 = scmp.lt.s32.totalorder %s6190_s5, %s6183_s26 }
  0xb9   : > { %p6187_p8 = pneg %p6186_p6  ;;  %p6193_p2 = por %p6192_p13, %p6191_p7 }
  0xbb   : > { %p6194_p1 = pnand %p6193_p2, %p6187_p8 }
  0xbd   : > { %6197 = shalt.err (!%p6194_p1)
}
  0xbe   : > { %5847 = dma.hbm_to_vmem [thread:$0]  (!%p7112_p10), %s7142_s0, 16, %s1076_s22, %s7091_s25  }
  0xbf   : > { %s1107_s2 = scalar_lea.vmem [#allocation17], %s7086_s18  ;;  %s7165_s5 = scalar_lea.hbm %s8085_s24, %s7089_s7 }
  0xc0   : > { %s1114_s15 = sshll.u32 %s1107_s2, 4  ;;  %s6198_s26 = scalar_lea.hbm %s7147_s20, 16  ;;  %s1115_s15 = int_to_ptr.vmem [resolvable:$true] %s1114_s15 }
  0xc1   : > { %p6199_p9 = scmp.ne.s32.totalorder %s7147_s20, %s6198_s26  ;;  %s6203_s12 = scalar_lea.hbm %s8090_s4, 32 }
  0xc2   : > { %p6204_p5 = scmp.lt.s32.totalorder %s7147_s20, %s8090_s4  ;;  %p6205_p4 = scmp.lt.s32.totalorder %s6203_s12, %s6198_s26 }
  0xc3   : > { %p6201_p0 = pnand %p6199_p9, %p7125_p12 }
  0xc4   : > { %p6206_p11 = por %p6205_p4, %p6204_p5 }
  0xc5   : > { %p6202_p3 = pneg %p6201_p0 }
  0xc7   : > { %p6207_p6 = pnand %p6206_p11, %p6202_p3 }
  0xc9   : > { %6210 = shalt.err (!%p6207_p6)
}
  0xca   : > { %s6211_s27 = scalar_lea.vmem %s1115_s15, 16  ;;  %s6728_s0 = smov [#allocation17]  }
  0xcb   : > { %p6212_p8 = scmp.ne.s32.totalorder %s1115_s15, %s6211_s27  ;;  %s6216_s22 = sshll.u32 %s6728_s0, 4  ;;  %s6217_s22 = int_to_ptr.vmem [resolvable:$false] %s6216_s22 }
  0xcc   : > { %s6218_s2 = scalar_lea.vmem %s6217_s22, 32  ;;  %p6219_p2 = scmp.lt.s32.totalorder %s1115_s15, %s6217_s22 }
  0xcd   : > { %p6214_p7 = pnand %p6212_p8, %p7125_p12  ;;  %p6220_p1 = scmp.lt.s32.totalorder %s6218_s2, %s6211_s27 }
  0xcf   : > { %p6215_p13 = pneg %p6214_p7  ;;  %p6221_p9 = por %p6220_p1, %p6219_p2 }
  0xd1   : > { %p6222_p0 = pnand %p6221_p9, %p6215_p13 }
  0xd3   : > { %6225 = shalt.err (!%p6222_p0)
}
  0xd4   : > { %5850 = dma.hbm_to_vmem [thread:$0]  (!%p7112_p10), %s7147_s20, 16, %s1115_s15, %s7091_s25  }
  0xd5   : > { %s1124_s26 = scalar_lea.vmem [#allocation18], %s7086_s18  ;;  %s7183_s27 = scalar_lea.hbm %s8086_s21, %s7089_s7 }
  0xd6   : > { %s1131_s12 = sshll.u32 %s1124_s26, 4  ;;  %s6226_s0 = scalar_lea.hbm %s7165_s5, 16  ;;  %s1132_s12 = int_to_ptr.vmem [resolvable:$true] %s1131_s12 }
  0xd7   : > { %p6227_p3 = scmp.ne.s32.totalorder %s7165_s5, %s6226_s0  ;;  %s6231_s22 = scalar_lea.hbm %s8085_s24, 32 }
  0xd8   : > { %p6232_p11 = scmp.lt.s32.totalorder %s7165_s5, %s8085_s24  ;;  %p6233_p6 = scmp.lt.s32.totalorder %s6231_s22, %s6226_s0 }
  0xd9   : > { %p6229_p5 = pnand %p6227_p3, %p7125_p12 }
  0xda   : > { %p6234_p8 = por %p6233_p6, %p6232_p11 }
  0xdb   : > { %p6230_p4 = pneg %p6229_p5 }
  0xdd   : > { %p6235_p7 = pnand %p6234_p8, %p6230_p4 }
  0xdf   : > { %6238 = shalt.err (!%p6235_p7)
}
  0xe0   : > { %s6239_s2 = scalar_lea.vmem %s1132_s12, 16  ;;  %s6729_s20 = smov [#allocation18]  }
  0xe1   : > { %p6240_p13 = scmp.ne.s32.totalorder %s1132_s12, %s6239_s2  ;;  %s6244_s15 = sshll.u32 %s6729_s20, 4  ;;  %s6245_s15 = int_to_ptr.vmem [resolvable:$false] %s6244_s15 }
  0xe2   : > { %s6246_s26 = scalar_lea.vmem %s6245_s15, 32  ;;  %p6247_p9 = scmp.lt.s32.totalorder %s1132_s12, %s6245_s15 }
  0xe3   : > { %p6242_p2 = pnand %p6240_p13, %p7125_p12  ;;  %p6248_p0 = scmp.lt.s32.totalorder %s6246_s26, %s6239_s2 }
  0xe5   : > { %p6243_p1 = pneg %p6242_p2  ;;  %p6249_p3 = por %p6248_p0, %p6247_p9 }
  0xe7   : > { %p6250_p5 = pnand %p6249_p3, %p6243_p1 }
  0xe9   : > { %6253 = shalt.err (!%p6250_p5)
}
  0xea   : > { %5853 = dma.hbm_to_vmem [thread:$0]  (!%p7112_p10), %s7165_s5, 16, %s1132_s12, %s7091_s25  }
  0xeb   : > { %s1165_s0 = scalar_lea.vmem [#allocation19], %s7086_s18  ;;  %s7201_s2 = scalar_lea.hbm %s8088_s14, %s7089_s7 }
  0xec   : > { %s1172_s22 = sshll.u32 %s1165_s0, 4  ;;  %s6254_s20 = scalar_lea.hbm %s7183_s27, 16  ;;  %s1173_s22 = int_to_ptr.vmem [resolvable:$true] %s1172_s22 }
  0xed   : > { %p6255_p4 = scmp.ne.s32.totalorder %s7183_s27, %s6254_s20  ;;  %s6259_s15 = scalar_lea.hbm %s8086_s21, 32 }
  0xee   : > { %p6260_p8 = scmp.lt.s32.totalorder %s7183_s27, %s8086_s21  ;;  %p6261_p7 = scmp.lt.s32.totalorder %s6259_s15, %s6254_s20 }
  0xef   : > { %p6257_p11 = pnand %p6255_p4, %p7125_p12 }
  0xf0   : > { %p6262_p13 = por %p6261_p7, %p6260_p8 }
  0xf1   : > { %p6258_p6 = pneg %p6257_p11 }
  0xf3   : > { %p6263_p2 = pnand %p6262_p13, %p6258_p6 }
  0xf5   : > { %6266 = shalt.err (!%p6263_p2)
}
  0xf6   : > { %s6267_s26 = scalar_lea.vmem %s1173_s22, 16  ;;  %s6730_s5 = smov [#allocation19]  }
  0xf7   : > { %p6268_p1 = scmp.ne.s32.totalorder %s1173_s22, %s6267_s26  ;;  %s6272_s12 = sshll.u32 %s6730_s5, 4  ;;  %s6273_s12 = int_to_ptr.vmem [resolvable:$false] %s6272_s12 }
  0xf8   : > { %s6274_s0 = scalar_lea.vmem %s6273_s12, 32  ;;  %p6275_p3 = scmp.lt.s32.totalorder %s1173_s22, %s6273_s12 }
  0xf9   : > { %p6270_p9 = pnand %p6268_p1, %p7125_p12  ;;  %p6276_p5 = scmp.lt.s32.totalorder %s6274_s0, %s6267_s26 }
  0xfb   : > { %p6271_p0 = pneg %p6270_p9  ;;  %p6277_p4 = por %p6276_p5, %p6275_p3 }
  0xfd   : > { %p6278_p11 = pnand %p6277_p4, %p6271_p0 }
  0xff   : > { %6281 = shalt.err (!%p6278_p11)
}
 0x100   : > { %5856 = dma.hbm_to_vmem [thread:$0]  (!%p7112_p10), %s7183_s27, 16, %s1173_s22, %s7091_s25  }
 0x101   : > { %s1182_s20 = scalar_lea.vmem [#allocation20], %s7086_s18  ;;  %s6282_s5 = scalar_lea.hbm %s7201_s2, 16 }
 0x102   : > { %s1189_s15 = sshll.u32 %s1182_s20, 4  ;;  %p6283_p6 = scmp.ne.s32.totalorder %s7201_s2, %s6282_s5  ;;  %s1190_s15 = int_to_ptr.vmem [resolvable:$true] %s1189_s15 }
 0x103   : > { %s6287_s26 = scalar_lea.hbm %s8088_s14, 32  ;;  %p6288_p13 = scmp.lt.s32.totalorder %s7201_s2, %s8088_s14 }
 0x104   : > { %p6285_p8 = pnand %p6283_p6, %p7125_p12  ;;  %p6289_p2 = scmp.lt.s32.totalorder %s6287_s26, %s6282_s5 }
 0x106   : > { %p6286_p7 = pneg %p6285_p8  ;;  %p6290_p1 = por %p6289_p2, %p6288_p13 }
 0x108   : > { %p6291_p9 = pnand %p6290_p1, %p6286_p7 }
 0x10a   : > { %6294 = shalt.err (!%p6291_p9)
}
 0x10b   : > { %s6295_s12 = scalar_lea.vmem %s1190_s15, 16  ;;  %s6731_s27 = smov [#allocation20]  }
 0x10c   : > { %p6296_p0 = scmp.ne.s32.totalorder %s1190_s15, %s6295_s12  ;;  %s6300_s22 = sshll.u32 %s6731_s27, 4  ;;  %s6301_s22 = int_to_ptr.vmem [resolvable:$false] %s6300_s22 }
 0x10d   : > { %s6302_s0 = scalar_lea.vmem %s6301_s22, 32  ;;  %p6303_p4 = scmp.lt.s32.totalorder %s1190_s15, %s6301_s22 }
 0x10e   : > { %p6298_p3 = pnand %p6296_p0, %p7125_p12  ;;  %p6304_p11 = scmp.lt.s32.totalorder %s6302_s0, %s6295_s12 }
 0x110   : > { %p6299_p5 = pneg %p6298_p3  ;;  %p6305_p6 = por %p6304_p11, %p6303_p4 }
 0x112   : > { %p6306_p8 = pnand %p6305_p6, %p6299_p5 }
 0x114   : > { %6309 = shalt.err (!%p6306_p8)
}
 0x115   : > { %5859 = dma.hbm_to_vmem [thread:$0]  (!%p7112_p10), %s7201_s2, 16, %s1190_s15, %s7091_s25  }
 0x116   : > { %p5351_p7 = scmp.ge.s32.totalorder %s6690_s28, 1  ;;  %p917_p13 = scmp.lt.s32.totalorder %s6690_s28, 5 }
 0x117   : > { %s6732_s5 = smov [#allocation7]   ;;  %s7240_s12 = scalar_lea.hbm %s8087_s8, %s7089_s7 }
 0x118   : > { %p7232_p2 = pnand %p5351_p7, %p917_p13  ;;  %s930_s26 = sshll.u32 %s6732_s5, 4  ;;  %s7236_s26 = int_to_ptr.vmem [resolvable:$true] %s930_s26 }
 0x119   : > { %s1199_s2 = scalar_lea.vmem [#allocation21], %s7086_s18  ;;  %p8117_p9 = scmp.eq.s32.totalorder %s6991_s1, 0 }
 0x11a   : > { %s8116_s20 = scalar_select %p7232_p2, 1, 0 }
 0x11b   : > { %p5819_p1 = pneg %p7232_p2  ;;  %s1206_s15 = sshll.u32 %s1199_s2, 4  ;;  %s1207_s15 = int_to_ptr.vmem [resolvable:$true] %s1206_s15 }
 0x11c   : > { %s6733_s22 = smov [#allocation9]   ;;  %s6310_s5 = scalar_lea.hbm %s7240_s12, 16 }
 0x11d   : > { %p7247_p0 = pnand %p5819_p1, %p8117_p9  ;;  %s941_s0 = sshll.u32 %s6733_s22, 4  ;;  %s942_s0 = int_to_ptr.vmem [resolvable:$true] %s941_s0 }
 0x11e   : > { %p6311_p3 = scmp.ne.s32.totalorder %s7240_s12, %s6310_s5  ;;  %s6315_s4 = scalar_lea.hbm %s8087_s8, 32 }
 0x11f   : > { %s8118_s27 = scalar_select %p7247_p0, 1, 0 }
 0x120   : > { %p6313_p5 = pnand %p6311_p3, %p7125_p12  ;;  %p6316_p11 = scmp.lt.s32.totalorder %s7240_s12, %s8087_s8 }
 0x121   : > { %p6317_p6 = scmp.lt.s32.totalorder %s6315_s4, %s6310_s5 }
 0x122   : > { %p6314_p4 = pneg %p6313_p5 }
 0x123   : > { %p6318_p8 = por %p6317_p6, %p6316_p11 }
 0x125   : > { %p6319_p7 = pnand %p6318_p8, %p6314_p4 }
 0x127   : > { %6322 = shalt.err (!%p6319_p7)
}
 0x128   : > { %s6323_s2 = scalar_lea.vmem %s1207_s15, 16  ;;  %s6734_s6 = smov [#allocation21]  }
 0x129   : > { %p6324_p13 = scmp.ne.s32.totalorder %s1207_s15, %s6323_s2  ;;  %s6328_s14 = sshll.u32 %s6734_s6, 4  ;;  %s6329_s14 = int_to_ptr.vmem [resolvable:$false] %s6328_s14 }
 0x12a   : > { %s6330_s22 = scalar_lea.vmem %s6329_s14, 32  ;;  %p6331_p2 = scmp.lt.s32.totalorder %s1207_s15, %s6329_s14 }
 0x12b   : > { %p6326_p1 = pnand %p6324_p13, %p7125_p12  ;;  %p6332_p0 = scmp.lt.s32.totalorder %s6330_s22, %s6323_s2 }
 0x12d   : > { %p6327_p9 = pneg %p6326_p1  ;;  %p6333_p3 = por %p6332_p0, %p6331_p2 }
 0x12f   : > { %p6334_p5 = pnand %p6333_p3, %p6327_p9 }
 0x131   : > { %6337 = shalt.err (!%p6334_p5)
}
 0x132   : > { %5862 = dma.hbm_to_vmem [thread:$0]  (!%p7112_p10), %s7240_s12, 16, %s1207_s15, %s7091_s25  }
 0x133   : > { %p8119_p4 = scmp.ne.s32.totalorder %s8118_s27, 0  ;;  %s6349_s14 = scalar_lea.vmem %s7236_s26, 16 }
 0x134   : > { %p6350_p2 = scmp.ne.s32.totalorder %s7236_s26, %s6349_s14  ;;  %s6356_s4 = scalar_lea.vmem %s7236_s26, 32 }
 0x135   : > { %p7266_p11 = pneg %p8119_p4  ;;  %p6357_p8 = scmp.lt.s32.totalorder %s7236_s26, %s7236_s26 }
 0x136   : > { %p6358_p7 = scmp.lt.s32.totalorder %s6356_s4, %s6349_s14 }
 0x137   : > { %s8120_s6 = scalar_select %p7266_p11, 1, 0 }
 0x138   : > { %p6352_p0 = pnand %p6350_p2, %p7266_p11  ;;  %p6359_p13 = por %p6358_p7, %p6357_p8 }
 0x13a   : > { %p6353_p6 = pneg %p6352_p0 }
 0x13c   : > { %p6360_p1 = pnand %p6359_p13, %p6353_p6 }
 0x13e   : > { %6363 = shalt.err (!%p6360_p1)
}
 0x13f   : > { %s8121_s13 = sld [smem:[#allocation35_spill]]  ;;  %s6375_s12 = scalar_lea.vmem %s942_s0, 16 }
 0x140   : > { %p6376_p9 = scmp.ne.s32.totalorder %s942_s0, %s6375_s12  ;;  %s6382_s15 = scalar_lea.vmem %s942_s0, 32 }
 0x141   : > { %p6383_p2 = scmp.lt.s32.totalorder %s942_s0, %s942_s0  ;;  %p6384_p0 = scmp.lt.s32.totalorder %s6382_s15, %s6375_s12 }
 0x142   : > { %p6378_p3 = pnand %p6376_p9, %p7266_p11 }
 0x143   : > { %p6385_p10 = por %p6384_p0, %p6383_p2 }
 0x144   : > { %p6379_p5 = pneg %p6378_p3 }
 0x145   : > { %5822 = dma.hbm_to_vmem [thread:$0]  (!%p8119_p4), %s8121_s13, 16, %s7236_s26, [#allocation8]  }
 0x146   : > { %p6386_p12 = pnand %p6385_p10, %p6379_p5 }
 0x148   : > { %6389 = shalt.err (!%p6386_p12)
}
 0x149   : > { %s8122_s17 = sld [smem:[#allocation36_spill]]  ;;  %s6735_s26 = smov [#allocation10]  }
 0x14a   : > { %s8123_s5 = sld [smem:[#allocation59_spill]]  ;;  %s955_s2 = sshll.u32 %s6735_s26, 4  ;;  %s956_s2 = int_to_ptr.vmem [resolvable:$true] %s955_s2 }
 0x14b   : > { %s1224_s14 = scalar_lea.vmem [#allocation22], %s7086_s18  ;;  %s6401_s8 = scalar_lea.vmem %s956_s2, 16 }
 0x14c   : > { %s1231_s4 = sshll.u32 %s1224_s14, 4  ;;  %p6402_p6 = scmp.ne.s32.totalorder %s956_s2, %s6401_s8  ;;  %s1232_s4 = int_to_ptr.vmem [resolvable:$true] %s1231_s4 }
 0x14d   : > { %s6408_s12 = scalar_lea.vmem %s956_s2, 32  ;;  %p6409_p8 = scmp.lt.s32.totalorder %s956_s2, %s956_s2 }
 0x14e   : > { %p6404_p10 = pnand %p6402_p6, %p7266_p11  ;;  %p6410_p7 = scmp.lt.s32.totalorder %s6408_s12, %s6401_s8 }
 0x14f   : > { %5825 = dma.hbm_to_vmem [thread:$0]  (!%p8119_p4), %s8122_s17, 16, %s942_s0, [#allocation8]  }
 0x150   : > { %s7288_s22 = scalar_lea.hbm %s8123_s5, %s7089_s7  ;;  %p6405_p12 = pneg %p6404_p10 }
 0x151   : > { %p6411_p13 = por %p6410_p7, %p6409_p8 }
 0x153   : > { %p6412_p1 = pnand %p6411_p13, %p6405_p12 }
 0x155   : > { %6415 = shalt.err (!%p6412_p1)
}
 0x156   : > { %s8124_s0 = sld [smem:[#allocation38_spill]]  ;;  %s6416_s15 = scalar_lea.hbm %s7288_s22, 16 }
 0x157   : > { %p6417_p9 = scmp.ne.s32.totalorder %s7288_s22, %s6416_s15  ;;  %p8125_p3 = scmp.ne.s32.totalorder %s8115_s19, 0 }
 0x158   : > { %s6421_s8 = scalar_lea.hbm %s8123_s5, 32  ;;  %p6422_p0 = scmp.lt.s32.totalorder %s7288_s22, %s8123_s5 }
 0x159   : > { %p6419_p5 = pnand %p6417_p9, %p8125_p3  ;;  %p6423_p6 = scmp.lt.s32.totalorder %s6421_s8, %s6416_s15 }
 0x15b   : > { %p6420_p2 = pneg %p6419_p5  ;;  %p6424_p10 = por %p6423_p6, %p6422_p0 }
 0x15c   : > { %5828 = dma.hbm_to_vmem [thread:$0]  (!%p8119_p4), %s8124_s0, 16, %s956_s2, [#allocation11]  }
 0x15d   : > { %p6425_p12 = pnand %p6424_p10, %p6420_p2 }
 0x15f   : > { %6428 = shalt.err (!%p6425_p12)
}
 0x160   : > { %s6429_s26 = scalar_lea.vmem %s1232_s4, 16  ;;  %s6736_s14 = smov [#allocation22]  }
 0x161   : > { %p6430_p8 = scmp.ne.s32.totalorder %s1232_s4, %s6429_s26  ;;  %s6434_s2 = sshll.u32 %s6736_s14, 4  ;;  %s6435_s2 = int_to_ptr.vmem [resolvable:$false] %s6434_s2 }
 0x162   : > { %s6436_s12 = scalar_lea.vmem %s6435_s2, 32  ;;  %p6437_p1 = scmp.lt.s32.totalorder %s1232_s4, %s6435_s2 }
 0x163   : > { %p6432_p7 = pnand %p6430_p8, %p8125_p3  ;;  %p6438_p4 = scmp.lt.s32.totalorder %s6436_s12, %s6429_s26 }
 0x165   : > { %p6433_p13 = pneg %p6432_p7  ;;  %p6439_p9 = por %p6438_p4, %p6437_p1 }
 0x167   : > { %p6440_p5 = pnand %p6439_p9, %p6433_p13 }
 0x169   : > { %6443 = shalt.err (!%p6440_p5)
}
 0x16a   : > { %p8126_p11 = scmp.ne.s32.totalorder %s8114_s23, 0  ;;  %s6737_s0 = smov [#allocation12]  }
 0x16b   : > { %s966_s15 = sshll.u32 %s6737_s0, 4  ;;  %s6738_s8 = smov [#allocation13]   ;;  %s967_s15 = int_to_ptr.vmem [resolvable:$true] %s966_s15 }
 0x16c   : > { %5865 = dma.hbm_to_vmem [thread:$0]  (!%p8126_p11), %s7288_s22, 16, %s1232_s4, %s7091_s25  }
 0x16d   : > { %s977_s5 = sshll.u32 %s6738_s8, 4  ;;  %s6455_s13 = scalar_lea.vmem %s967_s15, 16  ;;  %s978_s5 = int_to_ptr.vmem [resolvable:$true] %s977_s5 }
 0x16e   : > { %p6456_p2 = scmp.ne.s32.totalorder %s967_s15, %s6455_s13  ;;  %p8127_p0 = scmp.ne.s32.totalorder %s8120_s6, 0 }
 0x16f   : > { %s6462_s26 = scalar_lea.vmem %s967_s15, 32  ;;  %p6463_p4 = scmp.lt.s32.totalorder %s967_s15, %s967_s15 }
 0x170   : > { %p6458_p6 = pnand %p6456_p2, %p8127_p0  ;;  %p6464_p12 = scmp.lt.s32.totalorder %s6462_s26, %s6455_s13 }
 0x172   : > { %p6459_p10 = pneg %p6458_p6  ;;  %p6465_p8 = por %p6464_p12, %p6463_p4 }
 0x174   : > { %p6466_p7 = pnand %p6465_p8, %p6459_p10 }
 0x176   : > { %6469 = shalt.err (!%p6466_p7)
}
 0x177   : > { %p8128_p13 = scmp.ne.s32.totalorder %s8118_s27, 0  ;;  %s8129_s14 = sld [smem:[#allocation39_spill]] }
 0x178   : > { %s6481_s22 = scalar_lea.vmem %s978_s5, 16  ;;  %s6488_s4 = scalar_lea.vmem %s978_s5, 32 }
 0x179   : > { %p6482_p1 = scmp.ne.s32.totalorder %s978_s5, %s6481_s22  ;;  %p6489_p2 = scmp.lt.s32.totalorder %s978_s5, %s978_s5 }
 0x17a   : > { %p6490_p6 = scmp.lt.s32.totalorder %s6488_s4, %s6481_s22 }
 0x17b   : > { %p6484_p9 = pnand %p6482_p1, %p8127_p0 }
 0x17c   : > { %p6491_p11 = por %p6490_p6, %p6489_p2 }
 0x17d   : > { %5831 = dma.hbm_to_vmem [thread:$0]  (!%p8128_p13), %s8129_s14, 16, %s967_s15, [#allocation11]  }
 0x17e   : > { %p6485_p5 = pneg %p6484_p9 }
 0x180   : > { %p6492_p3 = pnand %p6491_p11, %p6485_p5 }
 0x182   : > { %6495 = shalt.err (!%p6492_p3)
}
 0x183   : > { %s8130_s13 = sld [smem:[#allocation40_spill]]  ;;  %s6739_s2 = smov [#allocation24]  }
 0x184   : > { %s1005_s12 = sshll.u32 %s6739_s2, 4  ;;  %s1006_s12 = int_to_ptr.vmem [resolvable:$true] %s1005_s12 }
 0x185   : > { %s6507_s0 = scalar_lea.vmem %s1006_s12, 256  ;;  %p6515_p8 = scmp.lt.s32.totalorder %s1006_s12, %s1006_s12 }
 0x186   : > { %p6508_p10 = scmp.ne.s32.totalorder %s1006_s12, %s6507_s0  ;;  %p6516_p7 = scmp.lt.s32.totalorder %s6507_s0, %s6507_s0 }
 0x188   : > { %p6510_p4 = pnand %p6508_p10, %p8127_p0  ;;  %p6517_p1 = por %p6516_p7, %p6515_p8 }
 0x189   : > { %5834 = dma.hbm_to_vmem [thread:$0]  (!%p8128_p13), %s8130_s13, 16, %s978_s5, [#allocation14]  }
 0x18a   : > { %p6511_p12 = pneg %p6510_p4 }
 0x18c   : > { %p6518_p9 = pnand %p6517_p1, %p6511_p12 }
 0x18e   : > { %6521 = shalt.err (!%p6518_p9)
}
 0x18f   : > { %s6740_s15 = smov 64   ;;  %s8131_s8 = sld [smem:[#allocation64_spill]] }
 0x190   : > { %s8132_s26 = sld [smem:[#allocation61_spill]]  ;;  %s6741_s5 = smov 4  }
 0x191   : > { %s1249_s22 = scalar_lea.vmem [#allocation23], %s7086_s18  ;;  %p8134_p3 = scmp.ne.s32.totalorder %s8115_s19, 0 }
 0x192   : > { %s1256_s4 = sshll.u32 %s1249_s22, 4  ;;  %s1257_s4 = int_to_ptr.vmem [resolvable:$true] %s1256_s4 }
 0x195   : > { %5837 = dma.hbm_to_vmem [thread:$0]  (!%p8128_p13), %s8131_s8, 256, %s1006_s12, [#allocation8], %s6740_s15, %s6740_s15, %s6741_s5  }
 0x196   : > { %s8133_s14 = smov %s8132_s26  ;;  %s1254_s6 = scalar_lea.hbm %s8132_s26, %s7089_s7 }
 0x197   : > { %s6522_s13 = scalar_lea.hbm %s1254_s6, 16  ;;  %s6527_s2 = scalar_lea.hbm %s8133_s14, 32 }
 0x198   : > { %p6523_p11 = scmp.ne.s32.totalorder %s1254_s6, %s6522_s13  ;;  %p6528_p2 = scmp.lt.s32.totalorder %s1254_s6, %s8133_s14 }
 0x199   : > { %p6529_p6 = scmp.lt.s32.totalorder %s6527_s2, %s6522_s13 }
 0x19a   : > { %p6525_p0 = pnand %p6523_p11, %p8134_p3 }
 0x19b   : > { %p6530_p10 = por %p6529_p6, %p6528_p2 }
 0x19c   : > { %p6526_p5 = pneg %p6525_p0 }
 0x19e   : > { %p6531_p4 = pnand %p6530_p10, %p6526_p5 }
 0x1a0   : > { %6534 = shalt.err (!%p6531_p4)
}
 0x1a1   : > { %s6535_s0 = scalar_lea.vmem %s1257_s4, 16  ;;  %s6742_s18 = smov [#allocation23]  }
 0x1a2   : > { %p6536_p12 = scmp.ne.s32.totalorder %s1257_s4, %s6535_s0  ;;  %s6540_s7 = sshll.u32 %s6742_s18, 4  ;;  %s6541_s7 = int_to_ptr.vmem [resolvable:$false] %s6540_s7 }
 0x1a3   : > { %s6542_s27 = scalar_lea.vmem %s6541_s7, 32  ;;  %p6543_p7 = scmp.lt.s32.totalorder %s1257_s4, %s6541_s7 }
 0x1a4   : > { %p6538_p13 = pnand %p6536_p12, %p8134_p3  ;;  %p6544_p1 = scmp.lt.s32.totalorder %s6542_s27, %s6535_s0 }
 0x1a6   : > { %p6539_p8 = pneg %p6538_p13  ;;  %p6545_p9 = por %p6544_p1, %p6543_p7 }
 0x1a8   : > { %p6546_p11 = pnand %p6545_p9, %p6539_p8 }
 0x1aa   : > { %6549 = shalt.err (!%p6546_p11)
}
 0x1ab   : > { %p8135_p0 = scmp.ne.s32.totalorder %s8114_s23, 0  ;;  %p8136_p5 = scmp.ne.s32.totalorder %s8116_s20, 0 }
 0x1ac   : > { %s1267_s19 = sand.u32 (!%p8136_p5), 1, %s6991_s1   ;;  %s8043_s12 = sand.u32 (!%p8136_p5), 1, %s6666_s16  }
 0x1ad   : > { %5868 = dma.hbm_to_vmem [thread:$0]  (!%p8135_p0), %s1254_s6, 16, %s1257_s4, %s7091_s25  }
 0x1ae   : > { %1265 = sbr.rel (%p8136_p5) target bundleno = 6167 (0x1817), region = 152  ;;  %s7342_s15 = sshll.u32 (!%p8136_p5), %s8043_s12, 3 }
 0x1af   : > { %s1268_s8 = scalar_lea.sflag (!%p8136_p5), [#allocation5], %s1267_s19  ;;  %p8137_p3 = scmp.ne.s32.totalorder (!%p8136_p5), %s8103_s3, 0 }
 0x1b3   : > { %6621 = dma.done.wait (%p8137_p3), %s1268_s8, 128  }
 0x1b4   : > { %6623 = vsyncadd (%p8137_p3), %s1268_s8, 4294967168  ;;  %p8138_p2 = scmp.eq.s32.totalorder %s6991_s1, 0 }
 0x1b6   : > { %6625 = dma.done.wait (%p8138_p2), [#allocation8], 32   ;;  %p8139_p6 = pmov %p8138_p2 }
 0x1b7   : > { %p8140_p10 = pmov %p8138_p2 }
 0x1b8   : > { %6627 = vsyncadd (%p8139_p6), [#allocation8], 4294967264 }
 0x1b9   : > { %6629 = dma.done.wait (%p8140_p10), [#allocation11], 32   ;;  %p8141_p4 = pmov %p8138_p2 }
 0x1ba   : > { %p8142_p12 = pmov %p8138_p2 }
 0x1bb   : > { %6631 = vsyncadd (%p8141_p4), [#allocation11], 4294967264 }
 0x1bc   : > { %6633 = dma.done.wait (%p8142_p12), [#allocation14], 16   ;;  %p8143_p13 = pmov %p8138_p2 }
 0x1bd   : > { %s8144_s3 = sld [smem:[#allocation79_spill]]  ;;  %s7362_s25 = sand.u32 1, %s6654_s10  }
 0x1be   : > { %6635 = vsyncadd (%p8143_p13), [#allocation14], 4294967280 }
 0x1c3   : > { %p8145_p8 = scmp.ne.s32.totalorder %s8144_s3, 0 }
 0x1c5   : > { %6637 = dma.done.wait (%p8145_p8), %s1268_s8, 144  }
 0x1c6   : > { %6639 = vsyncadd (%p8145_p8), %s1268_s8, 4294967152  ;;  %p8146_p7 = pmov %p8138_p2 }
 0x1c7   : > { %p8147_p1 = pmov %p8138_p2 }
 0x1c8   : > { %6641 = dma.done.wait (%p8146_p7), [#allocation8], 256  }
 0x1c9   : > { %6643 = vsyncadd (%p8147_p1), [#allocation8], 4294967040  ;;  %s8148_s18 = sld [smem:[#allocation72_spill]]  ;;  %s1528_s10 = scalar_lea.vmem [#allocation25], %s7342_s15 }
 0x1ca   : > { %s8149_s7 = sld [smem:[#allocation71_spill]] }
 0x1cb   : > { %s8150_s27 = sld [smem:[#allocation34_spill]] }
 0x1cc   : > { %s8151_s19 = sld [smem:[#allocation47_spill]] }
 0x1cd   : > { %s8152_s8 = sld [smem:[#allocation48_spill]] }
 0x1ce   : > { %s8153_s3 = sld [smem:[#allocation49_spill]] }
 0x1cf   : > { %s8154_s12 = sld [smem:[#allocation52_spill]]  ;;  %p1529_p9 = scmp.lt.s32.totalorder %s8148_s18, 1 }
 0x1d0   : > { %s8155_s6 = sld [smem:[#allocation53_spill]]  ;;  %p1534_p11 = scmp.lt.s32.totalorder %s8149_s7, 1 }
 0x1d1   : > { %s8156_s22 = sld [smem:[#allocation54_spill]]  ;;  %s8203_s18 = smov (!%p1529_p9, %s8148_s18), 1 }
 0x1d2   : > { %s8157_s4 = sld [smem:[#allocation58_spill]]  ;;  %s5497_s1 = sshll.u32 %s8203_s18, 4 }
 0x1d3   : > { %s8158_s13 = sld [smem:[#allocation60_spill]]  ;;  %s1533_s2 = scalar_lea.vmem %s8150_s27, %s5497_s1 }
 0x1d4   : > { %s7385_s0 = scalar_select %p1534_p11, %s8149_s7, 1 }
 0x1d5   : > { %p5395_p0 = scmp.ne.s32.totalorder %s8149_s7, 0 }
 0x1d6   : > { %s5498_s5 = sshll.u32 %s7385_s0, 4  ;;  %s1546_s26 = scalar_lea.vmem %s8153_s3, %s7385_s0 }
 0x1d7   : > { %s7390_s20 = scalar_lea.vmem %s8151_s19, %s5498_s5  ;;  %s7393_s23 = scalar_lea.vmem %s8152_s8, %s5498_s5 }
 0x1d8   : > { %s7398_s14 = scalar_lea.vmem %s8154_s12, %s5498_s5  ;;  %s7401_s17 = scalar_lea.vmem %s8155_s6, %s5498_s5 }
 0x1d9   : > { %s7404_s21 = scalar_lea.vmem %s8156_s22, %s5498_s5  ;;  %s7407_s24 = scalar_lea.vmem %s8157_s4, %s5498_s5 }
 0x1da   : > { %s5504_s30 = sshll.u32 %s7385_s0, 6  ;;  %1576 = sbr.rel (%p5395_p0) target bundleno = 1302 (0x516), region = 220 }
 0x1db   : > { %s7411_s11 = scalar_lea.vmem %s8158_s13, %s5504_s30  ;;  %s8159_s12 = scalar_lea.vmem (!%p5395_p0), [#allocation4], %s7342_s15 }
 0x1dc   : > { %s8160_s30 = sld [smem:[#allocation37_spill]] (!%p5395_p0) }
 0x1dd   : > { %s8161_s5 = sld [smem:[#allocation43_spill]] (!%p5395_p0) }
 0x1de   : > { %s8162_s6 = sld [smem:[#allocation41_spill]] (!%p5395_p0) }
 0x1df   : > { %v1577_v0 = vld [vmem:[%s1533_s2] sm:$0xff]  ;;  %vm1581_vm0 = vcmask 523264   ;;  %v1578_v1 = vld [vmem:[%s1533_s2 + $0x8] sm:$0xff]  ;;  %v6743_v22 = vmov 0.0   ;;  %vm6744_vm1 = vmmov 0   ;;  %s8163_s22 = sld [smem:[#allocation42_spill]] }
 0x1e0   : > { %v1582_v2 = vsel %vm1581_vm0, %v1577_v0, 0.0  ;;  %v1585_v3 = vsel %vm1581_vm0, %v1578_v1, 0.0  ;;  %v1757_v4 = vld [vmem:[%s8159_s12] sm:$0xff]  ;;  %5577 = vmatprep.subr.bf16.mxu0 %v6743_v22  ;;  %5585 = vmatprep.mubr.msk.bf16.mxu0 %vm6744_vm1, %v6743_v22  ;;  %v5396_v38 = vld [vmem:[#allocation7] ss:$0 sm:$0xff]  ;;  %s8164_s4 = sld [smem:[#allocation44_spill]] }
 0x1e1   : > { %1583 = vadd.xlane.f32.xlu0 %v1582_v2  ;;  %v1760_v5 = vsel %vm1581_vm0, %v1757_v4, 0.0  ;;  %5589 = vmatprep.subr.bf16.mxu1 %v6743_v22  ;;  %v5397_v45 = vld [vmem:[#allocation9] ss:$0 sm:$0xff]  ;;  %v5398_v57 = vld [vmem:[#allocation10] ss:$0 sm:$0xff]  ;;  %vm1711_vm2 = vcmask 261120  }
 0x1e2   : > { %v6032_v20 = vld [vmem:[%s8160_s30 + $0x18] sm:$0xff]   ;;  %v6033_v23 = vld [vmem:[%s8160_s30 + $0x10] sm:$0xff]   ;;  %5597 = vmatprep.mubr.msk.bf16.mxu1 %vm6744_vm1, %v6743_v22  ;;  %v6034_v24 = vld [vmem:[%s8160_s30 + $0x8] sm:$0xff]  }
 0x1e3   : > { %5578 = vmatpush3.bf16.msra.mxu0 %v6032_v20  ;;  %v6035_v25 = vld [vmem:[%s8160_s30] sm:$0xff]   ;;  %v6036_v26 = vld [vmem:[%s8161_s5 + $0x18] sm:$0xff]   ;;  %v6037_v27 = vld [vmem:[%s8161_s5 + $0x10] sm:$0xff]  }
 0x1e4   : > { %5579 = vmatprep.subr.bf16.mxu0 %v6743_v22  ;;  %5590 = vmatpush3.bf16.msra.mxu1 %v6036_v26  ;;  %v6038_v28 = vld [vmem:[%s8161_s5 + $0x8] sm:$0xff]   ;;  %v6039_v29 = vld [vmem:[%s8161_s5] sm:$0xff]  }
 0x1e5   : > { %1586 = vadd.xlane.f32.xlu0 %v1585_v3  ;;  %5591 = vmatprep.subr.bf16.mxu1 %v6743_v22  ;;  %v5406_v51 = vld [vmem:[%s8162_s6] ss:$0 sm:$0xff] }
 0x1e6   : > { %v5407_v53 = vld [vmem:[%s8163_s22] ss:$0 sm:$0xff] }
 0x1e7   : > { %5580 = vmatpush3.bf16.msra.mxu0 %v6033_v23  ;;  %v5408_v2 = vld [vmem:[%s8164_s4] ss:$0 sm:$0xff] }
 0x1e8   : > { %5581 = vmatprep.subr.bf16.mxu0 %v6743_v22  ;;  %5592 = vmatpush3.bf16.msra.mxu1 %v6037_v27  ;;  %v5405_v27 = vld [vmem:[#allocation13] ss:$0 sm:$0xff] }
 0x1e9   : > { %1761 = vadd.xlane.f32.xlu0 %v1760_v5  ;;  %5593 = vmatprep.subr.bf16.mxu1 %v6743_v22 }
 0x1eb   : > { %5582 = vmatpush3.bf16.msra.mxu0 %v6034_v24 }
 0x1ec   : > { %5583 = vmatprep.subr.bf16.mxu0 %v6743_v22  ;;  %5594 = vmatpush3.bf16.msra.mxu1 %v6038_v28 }
 0x1ed   : > { %5595 = vmatprep.subr.bf16.mxu1 %v6743_v22 }
 0x1ef   : > { %5584 = vmatpush3.bf16.msra.mxu0 %v6035_v25  ;;  %v5404_v25 = vld [vmem:[#allocation12] ss:$0 sm:$0xff] }
 0x1f0   : > { %5596 = vmatpush3.bf16.msra.mxu1 %v6039_v29 }
 0x26a   : > { %v1584_v6 = vpop.xlane.xlu0 %1583 }
 0x26b   : > { %v1589_v7 = vmul.f32 0.015625, %v1584_v6 }
 0x26d   : > { %v1591_v8 = vsub.f32 %v1577_v0, %v1589_v7 }
 0x26e   : > { %v1587_v9 = vpop.xlane.xlu0 %1586 }
 0x26f   : > { %v1590_v10 = vmul.f32 0.015625, %v1587_v9  ;;  %v1593_v11 = vmul.f32 %v1591_v8, %v1591_v8 }
 0x271   : > { %v1592_v12 = vsub.f32 %v1578_v1, %v1590_v10  ;;  %v1595_v13 = vsel %vm1581_vm0, %v1593_v11, 0.0 }
 0x272   : > { %1596 = vadd.xlane.f32.xlu1 %v1595_v13  ;;  %v1762_v16 = vpop.xlane.xlu0 %1761 }
 0x273   : > { %v1594_v14 = vmul.f32 %v1592_v12, %v1592_v12  ;;  %v1763_v17 = vmul.f32 0.015625, %v1762_v16 }
 0x275   : > { %v1598_v15 = vsel %vm1581_vm0, %v1594_v14, 0.0  ;;  %v1764_v18 = vsub.f32 %v1757_v4, %v1763_v17 }
 0x276   : > { %1599 = vadd.xlane.f32.xlu1 %v1598_v15 }
 0x277   : > { %v1765_v19 = vmul.f32 %v1764_v18, %v1764_v18 }
 0x279   : > { %v1766_v21 = vsel %vm1581_vm0, %v1765_v19, 0.0 }
 0x27a   : > { %1767 = vadd.xlane.f32.xlu1 %v1766_v21 }
 0x2fb   : > { %v1597_v30 = vpop.xlane.xlu1 %1596 }
 0x2fc   : > { %v1601_v31 = vmul.f32 0.015625, %v1597_v30 }
 0x2fe   : > { %v1603_v32 = vadd.f32 1e-05, %v1601_v31 }
 0x2ff   : > { %v1600_v33 = vpop.xlane.xlu1 %1599 }
 0x300   : > { %6040 = vrsqrt.f32 %v1603_v32  ;;  %v1602_v34 = vmul.f32 0.015625, %v1600_v33 }
 0x302   : > { %v1604_v35 = vadd.f32 1e-05, %v1602_v34 }
 0x303   : > { %v1768_v39 = vpop.xlane.xlu1 %1767 }
 0x304   : > { %6042 = vrsqrt.f32 %v1604_v35  ;;  %v1769_v40 = vmul.f32 0.015625, %v1768_v39 }
 0x306   : > { %v1770_v44 = vadd.f32 1e-05, %v1769_v40 }
 0x308   : > { %6044 = vrsqrt.f32 %v1770_v44 }
 0x30d   : > { %v6041_v36 = vpop.eup %6040 }
 0x30e   : > { %v1607_v37 = vmul.f32 %v6041_v36, %v1591_v8 }
 0x310   : > { %v1615_v43 = vmul.f32 %v5396_v38, %v1607_v37 }
 0x311   : > { %v6043_v41 = vpop.eup %6042 }
 0x312   : > { %v1608_v42 = vmul.f32 %v6043_v41, %v1592_v12  ;;  %v1623_v47 = vadd.f32 %v5397_v45, %v1615_v43 }
 0x314   : > { %v1616_v46 = vmul.f32 %v5396_v38, %v1608_v42 }
 0x315   : > { %v6045_v50 = vpop.eup %6044 }
 0x316   : > { %v1624_v48 = vadd.f32 %v5397_v45, %v1616_v46  ;;  %v1772_v52 = vmul.f32 %v6045_v50, %v1764_v18 }
 0x318   : > { %v1633_v49 = vpack.c.bf16 %v1624_v48, %v1623_v47  ;;  %v1779_v54 = vmul.f32 %v5406_v51, %v1772_v52 }
 0x31a   : > { %5586 = vmatmul.mubr.msk.bf16.vlgmr.msra.gmra.mxu0 %vm1581_vm0, %v1633_v49  ;;  %v1786_v55 = vadd.f32 %v5407_v53, %v1779_v54 }
 0x31c   : > { %v1795_v56 = vpack.c.bf16 %v1786_v55, %v1786_v55 }
 0x31e   : > { %5598 = vmatmul.mubr.msk.bf16.vlgmr.msra.gmra.mxu1 %vm1581_vm0, %v1795_v56 }
 0x3da   : > { %v1702_v58 = vpop.f32.mrf.mxu0 }
 0x3db   : > { %v1703_v59 = vadd.f32 %v5398_v57, %v1702_v58 }
 0x3dc   : > { %v5587_v60 = vpop.f32.mrf.mxu0 }
 0x3dd   : > { %v1712_v61 = vsel %vm1711_vm2, %v1703_v59, 0.0 }
 0x3de   : > { %1713 = vadd.xlane.f32.xlu0 %v1712_v61  ;;  %v1705_v62 = vpop.f32.mrf.mxu0  ;;  %v1864_v3 = vpop.f32.mrf.mxu1 }
 0x3df   : > { %v1706_v63 = vadd.f32 %v5398_v57, %v1705_v62  ;;  %v1865_v4 = vadd.f32 %v5408_v2, %v1864_v3 }
 0x3e0   : > { %v5588_v0 = vpop.f32.mrf.mxu0  ;;  %v5599_v5 = vpop.f32.mrf.mxu1 }
 0x3e1   : > { %v1715_v1 = vsel %vm1711_vm2, %v1706_v63, 0.0  ;;  %1870 = vst.msk [vmem:[#allocation2] sm:$0xff] %vm1711_vm2, %v1865_v4 }
 0x3e2   : > { %1716 = vadd.xlane.f32.xlu1 %v1715_v1  ;;  %v1867_v6 = vpop.f32.mrf.mxu1 }
 0x3e4   : > { %v5600_v7 = vpop.f32.mrf.mxu1 }
 0x467   : > { %v1714_v8 = vpop.xlane.xlu0 %1713 }
 0x468   : > { %v1719_v9 = vmul.f32 0.03125, %v1714_v8 }
 0x46a   : > { %v1721_v10 = vsub.f32 %v1703_v59, %v1719_v9 }
 0x46b   : > { %v1717_v11 = vpop.xlane.xlu1 %1716 }
 0x46c   : > { %v1720_v12 = vmul.f32 0.03125, %v1717_v11  ;;  %v1723_v13 = vmul.f32 %v1721_v10, %v1721_v10 }
 0x46e   : > { %v1722_v14 = vsub.f32 %v1706_v63, %v1720_v12  ;;  %v1725_v15 = vsel %vm1711_vm2, %v1723_v13, 0.0 }
 0x46f   : > { %1726 = vadd.xlane.f32.xlu0 %v1725_v15 }
 0x470   : > { %v1724_v16 = vmul.f32 %v1722_v14, %v1722_v14 }
 0x472   : > { %v1728_v17 = vsel %vm1711_vm2, %v1724_v16, 0.0 }
 0x473   : > { %1729 = vadd.xlane.f32.xlu1 %v1728_v17 }
 0x4f8   : > { %v1727_v18 = vpop.xlane.xlu0 %1726 }
 0x4f9   : > { %v1731_v19 = vmul.f32 0.03125, %v1727_v18 }
 0x4fb   : > { %v1733_v20 = vadd.f32 1e-05, %v1731_v19 }
 0x4fc   : > { %v1730_v21 = vpop.xlane.xlu1 %1729 }
 0x4fd   : > { %6046 = vrsqrt.f32 %v1733_v20  ;;  %v1732_v22 = vmul.f32 0.03125, %v1730_v21 }
 0x4ff   : > { %v1734_v23 = vadd.f32 1e-05, %v1732_v22 }
 0x501   : > { %6048 = vrsqrt.f32 %v1734_v23 }
 0x50a   : > { %v6047_v24 = vpop.eup %6046 }
 0x50b   : > { %v1737_v26 = vmul.f32 %v6047_v24, %v1721_v10 }
 0x50d   : > { %v1745_v28 = vmul.f32 %v5404_v25, %v1737_v26 }
 0x50e   : > { %v6049_v29 = vpop.eup %6048 }
 0x50f   : > { %v1753_v30 = vadd.f32 %v5405_v27, %v1745_v28  ;;  %v1738_v31 = vmul.f32 %v6049_v29, %v1722_v14 }
 0x511   : > { %1755 = vst.msk [vmem:[#allocation3] sm:$0xff] %vm1711_vm2, %v1753_v30  ;;  %v1746_v32 = vmul.f32 %v5404_v25, %v1738_v31 }
 0x513   : > { %v1754_v33 = vadd.f32 %v5405_v27, %v1746_v32 }
 0x515   : > { %1756 = vst.msk [vmem:[#allocation3 + $0x8] sm:$0xff] %vm1711_vm2, %v1754_v33 }
 0x516 PF: > { %v7443_v34 = vld [vmem:[#allocation2] sm:$0xff]  ;;  %vm1876_vm3 = vcmask 261120   ;;  %v6050_v41 = vld [vmem:[%s7390_s20 + $0x8] sm:$0xff]   ;;  %v6745_v42 = vmov 0.0   ;;  %vm6746_vm4 = vmmov 0   ;;  %s8165_s13 = scalar_lea.vmem [#allocation15], %s7362_s25  ;;  %v1981_v1 = vlaneseq }
 0x517   : > { %v1877_v35 = vsel %vm1876_vm3, %v7443_v34, 0.0  ;;  %5601 = vmatprep.subr.bf16.mxu1 %v6745_v42  ;;  %5605 = vmatprep.mubr.msk.bf16.mxu1 %vm6746_vm4, %v6745_v42  ;;  %v6051_v43 = vld [vmem:[%s7390_s20] sm:$0xff]   ;;  %s8166_s2 = scalar_lea.vmem [#allocation16], %s7362_s25  ;;  %s6747_s20 = smov 104   ;;  %v6751_v63 = vmov 1983009808  }
 0x518   : > { %1878 = vadd.xlane.f32.xlu0 %v1877_v35  ;;  %5602 = vmatpush3.bf16.msra.mxu1 %v6050_v41  ;;  %v5414_v48 = vld [vmem:[%s8165_s13] ss:$0 sm:$0xff]  ;;  %s6748_s18 = smov 120   ;;  %s6749_s7 = smov 112   ;;  %v1979_v0 = vunpack.c.l.s4 %v6751_v63  ;;  %v6752_v3 = vmov 1934713408  }
 0x519   : > { %5627 = vmatprep.subr.bf16.mxu0 %v6745_v42  ;;  %5603 = vmatprep.subr.bf16.mxu1 %v6745_v42  ;;  %v5415_v50 = vld [vmem:[%s8166_s2] ss:$0 sm:$0xff]  ;;  %s6750_s27 = smov 96   ;;  %v2011_v4 = vunpack.c.l.s4 %v6752_v3  ;;  %v1982_v6 = vshrl.u32 %v1981_v1, 7  ;;  %vm2423_vm5 = vcmask 64512   ;;  %s6753_s19 = smov 64  }
 0x51a   : > { %5629 = vmatprep.mubr.msk.bf16.mxu0 %vm6746_vm4, %v6745_v42  ;;  %v1980_v5 = vunpack.c.0.s8 %v1979_v0  ;;  %vm2663_vm6 = vcmask 1043456   ;;  %s6755_s8 = smov 8   ;;  %s6756_s1 = smov 24   ;;  %vm2994_vm7 = vcmask 130048   ;;  %vm2996_vm8 = vcmask 195584  }
 0x51b   : > { %v2012_v8 = vunpack.c.0.s8 %v2011_v4  ;;  %s8173_s0 = scalar_lea.vmem [#allocation22], %s7362_s25  ;;  %s8174_s12 = scalar_lea.vmem [#allocation23], %s7362_s25 }
 0x51c   : > { %5604 = vmatpush3.bf16.msra.mxu1 %v6051_v43  ;;  %v7497_v9 = vsub.s32 %v1980_v5, %v1982_v6 }
 0x51d   : > { %5609 = vmatprep.subr.bf16.mxu1 %v6745_v42  ;;  %v7499_v15 = vsub.s32 %v2012_v8, %v1982_v6 }
 0x5a1   : > { %v1879_v36 = vpop.xlane.xlu0 %1878 }
 0x5a2   : > { %v1881_v37 = vmul.f32 0.03125, %v1879_v36 }
 0x5a4   : > { %v1882_v38 = vsub.f32 %v7443_v34, %v1881_v37 }
 0x5a6   : > { %v1883_v39 = vmul.f32 %v1882_v38, %v1882_v38 }
 0x5a8   : > { %v1884_v40 = vsel %vm1876_vm3, %v1883_v39, 0.0 }
 0x5a9   : > { %1885 = vadd.xlane.f32.xlu0 %v1884_v40 }
 0x632   : > { %v1886_v44 = vpop.xlane.xlu0 %1885 }
 0x633   : > { %v1887_v45 = vmul.f32 0.03125, %v1886_v44 }
 0x635   : > { %v1888_v46 = vadd.f32 1e-05, %v1887_v45 }
 0x637   : > { %6070 = vrsqrt.f32 %v1888_v46 }
 0x644   : > { %v6071_v47 = vpop.eup %6070 }
 0x645   : > { %v1890_v49 = vmul.f32 %v6071_v47, %v1882_v38 }
 0x647   : > { %v1897_v51 = vmul.f32 %v5414_v48, %v1890_v49 }
 0x649   : > { %v1904_v52 = vadd.f32 %v5415_v50, %v1897_v51 }
 0x64b   : > { %v1909_v53 = vpack.c.bf16 %v1904_v52, %v1904_v52 }
 0x64d   : > { %5606 = vmatmul.mubr.msk.bf16.vlgmr.msra.gmra.mxu1 %vm1876_vm3, %v1909_v53 }
 0x64e   : > { %5611 = vmatprep.mubr.msk.bf16.mxu1 %vm6746_vm4, %v6745_v42 }
 0x70d   : > { %v7466_v54 = vpop.f32.mrf.mxu1 }
 0x70e   : > { %2117 = vrot.lane.b32.xlu0 %v7466_v54, %s6747_s20  ;;  %2113 = vrot.lane.b32.xlu1 %v7466_v54, %s6748_s18  ;;  %v7473_v56 = vmul.f32 0.35355338, %v7466_v54 }
 0x70f   : > { %v5607_v55 = vpop.f32.mrf.mxu1 }
 0x711   : > { %v1962_v57 = vpop.f32.mrf.mxu1 }
 0x712   : > { %2115 = vrot.lane.b32.xlu1 %v7466_v54, %s6749_s7  ;;  %1973 = vrot.lane.b32.xlu0 %v7473_v56, %s6747_s20 }
 0x713   : > { %v5608_v58 = vpop.f32.mrf.mxu1 }
 0x716   : > { %2119 = vrot.lane.b32.xlu1 %v7466_v54, %s6750_s27 }
 0x780   : > { %v7481_v59 = vpop.permute.xlu1 %2113  ;;  %v7489_v61 = vpop.permute.xlu0 %2117 }
 0x781   : > { %2121 = vrot.lane.b32.xlu1 %v7481_v59, %s6750_s27 }
 0x784   : > { %v7485_v60 = vpop.permute.xlu1 %2115  ;;  %v1974_v25 = vpop.permute.xlu0 %1973 }
 0x785   : > { %2123 = vrot.lane.b32.xlu1 %v7485_v60, %s6750_s27 }
 0x788   : > { %v2120_v62 = vpop.permute.xlu1 %2119 }
 0x789   : > { %2125 = vrot.lane.b32.xlu1 %v7489_v61, %s6750_s27 }
 0x78d   : > { %1967 = vrot.lane.b32.xlu1 %v7473_v56, %s6748_s18 }
 0x791   : > { %1970 = vrot.lane.b32.xlu1 %v7473_v56, %s6749_s7 }
 0x7f3   : > { %v2122_v2 = vpop.permute.xlu1 %2121 }
 0x7f7   : > { %v2124_v7 = vpop.permute.xlu1 %2123 }
 0x7f8   : > { %v2131_v10 = vcombine.low %v2120_v62, %v2124_v7  ;;  %v2132_v11 = vcombine.high %v2120_v62, %v2124_v7 }
 0x7fa   : > { %v2139_v16 = vrot.slane %v2131_v10, %v7497_v9  ;;  %v2146_v17 = vrot.slane %v2132_v11, %v7497_v9 }
 0x7fb   : > { %v2126_v12 = vpop.permute.xlu1 %2125 }
 0x7fc   : > { %v2147_v13 = vcombine.low %v2122_v2, %v2126_v12  ;;  %v2148_v14 = vcombine.high %v2122_v2, %v2126_v12 }
 0x7fe   : > { %v2155_v18 = vrot.slane %v2147_v13, %v7497_v9  ;;  %v2162_v19 = vrot.slane %v2148_v14, %v7497_v9 }
 0x7ff   : > { %v1968_v20 = vpop.permute.xlu1 %1967 }
 0x800   : > { %v2163_v21 = vcombine.low %v2139_v16, %v2155_v18  ;;  %v2164_v22 = vcombine.high %v2139_v16, %v2155_v18  ;;  %v2179_v23 = vcombine.low %v2146_v17, %v2162_v19  ;;  %v2180_v24 = vcombine.high %v2146_v17, %v2162_v19 }
 0x801   : > { %v1992_v30 = vcombine.low %v1968_v20, %v1974_v25  ;;  %v1993_v31 = vcombine.high %v1968_v20, %v1974_v25 }
 0x802   : > { %v2171_v26 = vrot.slane %v2163_v21, %v7499_v15  ;;  %v2178_v27 = vrot.slane %v2164_v22, %v7499_v15  ;;  %v2187_v28 = vrot.slane %v2179_v23, %v7499_v15  ;;  %v2194_v29 = vrot.slane %v2180_v24, %v7499_v15 }
 0x803   : > { %v1971_v32 = vpop.permute.xlu1 %1970  ;;  %v2000_v45 = vrot.slane %v1992_v30, %v7497_v9  ;;  %v2007_v46 = vrot.slane %v1993_v31, %v7497_v9 }
 0x804   : > { %v2199_v33 = vcombine.low %v2171_v26, %v2178_v27  ;;  %v5421_v35 = vcombine.high %v2171_v26, %v2178_v27  ;;  %v2215_v36 = vcombine.low %v2187_v28, %v2194_v29  ;;  %v5422_v37 = vcombine.high %v2187_v28, %v2194_v29 }
 0x805   : > { %v1976_v38 = vcombine.low %v7473_v56, %v1971_v32  ;;  %v1977_v39 = vcombine.high %v7473_v56, %v1971_v32 }
 0x806   : > { %v2206_v40 = vrot.slane %v2199_v33, %v7497_v9  ;;  %v2214_v41 = vrot.slane %v5421_v35, %v7497_v9  ;;  %v2222_v43 = vrot.slane %v2215_v36, %v7497_v9  ;;  %v2230_v44 = vrot.slane %v5422_v37, %v7497_v9 }
 0x807   : > { %v1984_v47 = vrot.slane %v1976_v38, %v7497_v9  ;;  %v1991_v48 = vrot.slane %v1977_v39, %v7497_v9 }
 0x808   : > { %v2231_v49 = vcombine.low %v2206_v40, %v2214_v41  ;;  %v2247_v50 = vcombine.low %v2222_v43, %v2230_v44  ;;  %v2232_v51 = vcombine.high %v2206_v40, %v2214_v41  ;;  %v2248_v52 = vcombine.high %v2222_v43, %v2230_v44 }
 0x809   : > { %v2008_v53 = vcombine.low %v1984_v47, %v2000_v45  ;;  %v2009_v55 = vcombine.high %v1984_v47, %v2000_v45  ;;  %v2024_v56 = vcombine.low %v1991_v48, %v2007_v46  ;;  %v2025_v57 = vcombine.high %v1991_v48, %v2007_v46 }
 0x80a   : > { %v2239_v58 = vrot.slane %v2231_v49, %v7499_v15  ;;  %v2255_v62 = vrot.slane %v2247_v50, %v7499_v15  ;;  %v2246_v63 = vrot.slane %v2232_v51, %v7499_v15  ;;  %v2262_v0 = vrot.slane %v2248_v52, %v7499_v15 }
 0x80b   : > { %v2016_v1 = vrot.slane %v2008_v53, %v7499_v15  ;;  %v2023_v2 = vrot.slane %v2009_v55, %v7499_v15  ;;  %v2032_v3 = vrot.slane %v2024_v56, %v7499_v15  ;;  %v2039_v4 = vrot.slane %v2025_v57, %v7499_v15 }
 0x80c   : > { %v2263_v5 = vcombine.low %v2239_v58, %v2255_v62  ;;  %v2266_v6 = vcombine.high %v2246_v63, %v2262_v0  ;;  %v2264_v21 = vcombine.high %v2239_v58, %v2255_v62  ;;  %v2265_v37 = vcombine.low %v2246_v63, %v2262_v0 }
 0x80d   : > { %v2044_v7 = vcombine.low %v2016_v1, %v2023_v2  ;;  %v5419_v8 = vcombine.high %v2016_v1, %v2023_v2  ;;  %v2060_v10 = vcombine.low %v2032_v3, %v2039_v4  ;;  %v5420_v11 = vcombine.high %v2032_v3, %v2039_v4 }
 0x80e   : > { %v2419_v12 = vpack.c.bf16 %v2263_v5, %v2263_v5  ;;  %v2422_v13 = vpack.c.bf16 %v2266_v6, %v2266_v6  ;;  %v2420_v31 = vpack.c.bf16 %v2264_v21, %v2264_v21  ;;  %v2421_v39 = vpack.c.bf16 %v2265_v37, %v2265_v37 }
 0x80f   : > { %v2051_v14 = vrot.slane %v2044_v7, %v7497_v9  ;;  %v2059_v16 = vrot.slane %v5419_v8, %v7497_v9  ;;  %v2067_v17 = vrot.slane %v2060_v10, %v7497_v9  ;;  %v2075_v18 = vrot.slane %v5420_v11, %v7497_v9 }
 0x810   : > { %v2428_v19 = vsel %vm2423_vm5, %v2419_v12, 0  ;;  %v2566_v20 = vsel %vm2423_vm5, %v2422_v13, 0  ;;  %v2474_v36 = vsel %vm2423_vm5, %v2420_v31, 0  ;;  %v2520_v41 = vsel %vm2423_vm5, %v2421_v39, 0 }
 0x811   : > { %v2076_v22 = vcombine.low %v2051_v14, %v2059_v16  ;;  %v2092_v23 = vcombine.low %v2067_v17, %v2075_v18  ;;  %5610 = vmatpush3.bf16.xpose.msra.mxu1 %v2428_v19  ;;  %5628 = vmatpush3.bf16.xpose.msra.mxu0 %v2566_v20  ;;  %v2077_v24 = vcombine.high %v2051_v14, %v2059_v16 }
 0x812   : > { %5615 = vmatprep.subr.bf16.mxu1 %v6745_v42  ;;  %v2093_v25 = vcombine.high %v2067_v17, %v2075_v18  ;;  %5639 = vmatprep.subr.bf16.mxu0 %v6745_v42 }
 0x813   : > { %v2084_v26 = vrot.slane %v2076_v22, %v7499_v15  ;;  %v2100_v27 = vrot.slane %v2092_v23, %v7499_v15  ;;  %v2091_v28 = vrot.slane %v2077_v24, %v7499_v15 }
 0x814   : > { %v2107_v29 = vrot.slane %v2093_v25, %v7499_v15 }
 0x815   : > { %v2108_v30 = vcombine.low %v2084_v26, %v2100_v27  ;;  %v2109_v38 = vcombine.high %v2084_v26, %v2100_v27 }
 0x816   : > { %v2111_v32 = vcombine.high %v2091_v28, %v2107_v29  ;;  %v2110_v43 = vcombine.low %v2091_v28, %v2107_v29 }
 0x817   : > { %v2415_v33 = vpack.c.bf16 %v2108_v30, %v2108_v30  ;;  %v2416_v40 = vpack.c.bf16 %v2109_v38, %v2109_v38 }
 0x818   : > { %v2418_v35 = vpack.c.bf16 %v2111_v32, %v2111_v32  ;;  %v2417_v44 = vpack.c.bf16 %v2110_v43, %v2110_v43 }
 0x819   : > { %5612 = vmatmul.mubr.msk.bf16.vlgmr.msra.gmra.mxu1 %vm2423_vm5, %v2415_v33 }
 0x81a   : > { %5630 = vmatmul.mubr.msk.bf16.vlgmr.msra.gmra.mxu0 %vm2423_vm5, %v2418_v35  ;;  %5616 = vmatpush3.bf16.xpose.msra.mxu1 %v2474_v36 }
 0x81b   : > { %5617 = vmatprep.mubr.msk.bf16.mxu1 %vm6746_vm4, %v6745_v42  ;;  %5621 = vmatprep.subr.bf16.mxu1 %v6745_v42 }
 0x81c   : > { %5641 = vmatprep.mubr.msk.bf16.mxu0 %vm6746_vm4, %v6745_v42 }
 0x821   : > { %5618 = vmatmul.mubr.msk.bf16.vlgmr.msra.gmra.mxu1 %vm2423_vm5, %v2416_v40 }
 0x822   : > { %5622 = vmatpush3.bf16.xpose.msra.mxu1 %v2520_v41  ;;  %5623 = vmatprep.mubr.msk.bf16.mxu1 %vm6746_vm4, %v6745_v42 }
 0x823   : > { %5633 = vmatprep.subr.bf16.mxu1 %v6745_v42 }
 0x829   : > { %5624 = vmatmul.mubr.msk.bf16.vlgmr.msra.gmra.mxu1 %vm2423_vm5, %v2417_v44 }
 0x82a   : > { %5635 = vmatprep.mubr.msk.bf16.mxu1 %vm6746_vm4, %v6745_v42 }
 0x8d9   : > { %v2464_v45 = vpop.f32.mrf.mxu1 }
 0x8da   : > { %v2602_v46 = vpop.f32.mrf.mxu0  ;;  %v2608_v47 = vsel %vm2423_vm5, %v2464_v45, -inf }
 0x8db   : > { %2609 = vmax.xlane.f32.xlu1 %v2608_v47  ;;  %v5613_v48 = vpop.f32.mrf.mxu1  ;;  %v2617_v52 = vsel %vm2423_vm5, %v2602_v46, -inf }
 0x8dc   : > { %v5631_v49 = vpop.f32.mrf.mxu0 }
 0x8dd   : > { %v2467_v50 = vpop.f32.mrf.mxu1 }
 0x8de   : > { %v2605_v51 = vpop.f32.mrf.mxu0 }
 0x8df   : > { %2618 = vmax.xlane.f32.xlu1 %v2617_v52  ;;  %v5614_v53 = vpop.f32.mrf.mxu1 }
 0x8e0   : > { %v5632_v55 = vpop.f32.mrf.mxu0 }
 0x8e1   : > { %v2510_v56 = vpop.f32.mrf.mxu1 }
 0x8e2   : > { %v2611_v57 = vsel %vm2423_vm5, %v2510_v56, -inf }
 0x8e3   : > { %2612 = vmax.xlane.f32.xlu0 %v2611_v57  ;;  %v5619_v58 = vpop.f32.mrf.mxu1 }
 0x8e5   : > { %v2513_v62 = vpop.f32.mrf.mxu1 }
 0x8e7   : > { %v5620_v63 = vpop.f32.mrf.mxu1 }
 0x8e9   : > { %v2556_v0 = vpop.f32.mrf.mxu1 }
 0x8ea   : > { %v2614_v1 = vsel %vm2423_vm5, %v2556_v0, -inf }
 0x8eb   : > { %2615 = vmax.xlane.f32.xlu0 %v2614_v1  ;;  %v5625_v2 = vpop.f32.mrf.mxu1 }
 0x8ed   : > { %v2559_v3 = vpop.f32.mrf.mxu1 }
 0x8ef   : > { %v5626_v4 = vpop.f32.mrf.mxu1 }
 0x8f0   : > { %2269 = vrot.lane.b32.xlu1 %v7481_v59, %s6753_s19 }
 0x901   : > { %2267 = vrot.lane.b32.xlu0 %v7466_v54, %s6753_s19 }
 0x964   : > { %v2610_v5 = vpop.xlane.xlu1 %2609 }
 0x965   : > { %v2620_v6 = vsub.f32 %v2464_v45, %v2610_v5 }
 0x967   : > { %v2624_v7 = vmul.f32 1.442695, %v2620_v6 }
 0x968   : > { %v2619_v54 = vpop.xlane.xlu1 %2618 }
 0x969   : > { %6072 = vpow2.f32 %v2624_v7  ;;  %v2623_v16 = vsub.f32 %v2602_v46, %v2619_v54 }
 0x96b   : > { %v2630_v17 = vmul.f32 1.442695, %v2623_v16 }
 0x96c   : > { %v2613_v8 = vpop.xlane.xlu0 %2612  ;;  %v2270_v25 = vpop.permute.xlu1 %2269 }
 0x96d   : > { %v2621_v10 = vsub.f32 %v2510_v56, %v2613_v8 }
 0x96f   : > { %v2626_v11 = vmul.f32 1.442695, %v2621_v10 }
 0x971   : > { %6074 = vpow2.f32 %v2626_v11 }
 0x972   : > { %6076 = vpow2.f32 %v2630_v17 }
 0x974   : > { %v2616_v18 = vpop.xlane.xlu0 %2615 }
 0x975   : > { %v2622_v19 = vsub.f32 %v2556_v0, %v2616_v18 }
 0x976   : > { %v7561_v12 = vpop.eup %6072 }
 0x977   : > { %v2632_v13 = vsel %vm2423_vm5, %v7561_v12, 0.0  ;;  %v2628_v20 = vmul.f32 1.442695, %v2622_v19 }
 0x978   : > { %2633 = vadd.xlane.f32.xlu0 %v2632_v13 }
 0x979   : > { %6078 = vpow2.f32 %v2628_v20 }
 0x97e   : > { %v7565_v14 = vpop.eup %6074 }
 0x97f   : > { %v2635_v59 = vsel %vm2423_vm5, %v7565_v14, 0.0  ;;  %v7571_v21 = vpop.eup %6076 }
 0x980   : > { %2636 = vadd.xlane.f32.xlu1 %v2635_v59  ;;  %v2641_v22 = vsel %vm2423_vm5, %v7571_v21, 0.0 }
 0x986   : > { %v7575_v23 = vpop.eup %6078 }
 0x98e   : > { %2273 = vrot.lane.b32.xlu0 %v7489_v61, %s6753_s19  ;;  %v2638_v61 = vsel %vm2423_vm5, %v7575_v23, 0.0 }
 0x991   : > { %2271 = vrot.lane.b32.xlu1 %v7485_v60, %s6753_s19  ;;  %v2268_v60 = vpop.permute.xlu0 %2267 }
 0x9ad   : > { %2642 = vadd.xlane.f32.xlu0 %v2641_v22 }
 0x9b5   : > { %2639 = vadd.xlane.f32.xlu1 %v2638_v61 }
 0xa01   : > { %v2634_v24 = vpop.xlane.xlu0 %2633 }
 0xa02   : > { %6080 = vrcp.f32 %v2634_v24 }
 0xa05   : > { %v2274_v26 = vpop.permute.xlu0 %2273 }
 0xa06   : > { %v2295_v28 = vcombine.low %v2270_v25, %v2274_v26  ;;  %v2296_v29 = vcombine.high %v2270_v25, %v2274_v26 }
 0xa08   : > { %v2303_v33 = vrot.slane %v2295_v28, %v7497_v9  ;;  %v2310_v35 = vrot.slane %v2296_v29, %v7497_v9 }
 0xa09   : > { %v2637_v27 = vpop.xlane.xlu1 %2636 }
 0xa0a   : > { %6082 = vrcp.f32 %v2637_v27 }
 0xa0d   : > { %v2272_v30 = vpop.permute.xlu1 %2271 }
 0xa0e   : > { %v2279_v31 = vcombine.low %v2268_v60, %v2272_v30  ;;  %v2280_v32 = vcombine.high %v2268_v60, %v2272_v30 }
 0xa0f   : > { %v6081_v63 = vpop.eup %6080 }
 0xa10   : > { %v2287_v36 = vrot.slane %v2279_v31, %v7497_v9  ;;  %v2294_v37 = vrot.slane %v2280_v32, %v7497_v9  ;;  %v2648_v13 = vmul.f32 %v6081_v63, %v7561_v12 }
 0xa12   : > { %v2311_v38 = vcombine.low %v2287_v36, %v2303_v33  ;;  %v2312_v39 = vcombine.high %v2287_v36, %v2303_v33  ;;  %v2327_v40 = vcombine.low %v2294_v37, %v2310_v35  ;;  %v2328_v41 = vcombine.high %v2294_v37, %v2310_v35 }
 0xa13   : > { %v2652_v19 = vpack.c.bf16 %v2648_v13, %v2648_v13 }
 0xa14   : > { %v2319_v43 = vrot.slane %v2311_v38, %v7499_v15  ;;  %v2326_v44 = vrot.slane %v2312_v39, %v7499_v15  ;;  %v2335_v45 = vrot.slane %v2327_v40, %v7499_v15  ;;  %v2342_v46 = vrot.slane %v2328_v41, %v7499_v15 }
 0xa16   : > { %v2347_v47 = vcombine.low %v2319_v43, %v2326_v44  ;;  %v5423_v48 = vcombine.high %v2319_v43, %v2326_v44  ;;  %v2363_v49 = vcombine.low %v2335_v45, %v2342_v46  ;;  %v5424_v50 = vcombine.high %v2335_v45, %v2342_v46 }
 0xa17   : > { %v6083_v4 = vpop.eup %6082 }
 0xa18   : > { %v2354_v51 = vrot.slane %v2347_v47, %v7497_v9  ;;  %v2362_v52 = vrot.slane %v5423_v48, %v7497_v9  ;;  %v2370_v53 = vrot.slane %v2363_v49, %v7497_v9  ;;  %v2378_v55 = vrot.slane %v5424_v50, %v7497_v9 }
 0xa19   : > { %v2649_v59 = vmul.f32 %v6083_v4, %v7565_v14 }
 0xa1a   : > { %v2379_v56 = vcombine.low %v2354_v51, %v2362_v52  ;;  %v2395_v57 = vcombine.low %v2370_v53, %v2378_v55  ;;  %v2380_v58 = vcombine.high %v2354_v51, %v2362_v52  ;;  %v2396_v62 = vcombine.high %v2370_v53, %v2378_v55 }
 0xa1b   : > { %v2653_v20 = vpack.c.bf16 %v2649_v59, %v2649_v59 }
 0xa1c   : > { %v2387_v0 = vrot.slane %v2379_v56, %v7499_v15  ;;  %v2403_v1 = vrot.slane %v2395_v57, %v7499_v15  ;;  %v2394_v2 = vrot.slane %v2380_v58, %v7499_v15  ;;  %v2410_v3 = vrot.slane %v2396_v62, %v7499_v15  ;;  %v6052_v57 = vld [vmem:[%s7393_s23 + $0x8] sm:$0xff]  }
 0xa1e   : > { %v2411_v5 = vcombine.low %v2387_v0, %v2403_v1  ;;  %v2412_v6 = vcombine.high %v2387_v0, %v2403_v1  ;;  %v2413_v7 = vcombine.low %v2394_v2, %v2410_v3  ;;  %v2414_v8 = vcombine.high %v2394_v2, %v2410_v3 }
 0xa20   : > { %v2656_v10 = vpack.c.bf16 %v2411_v5, %v2411_v5  ;;  %v2657_v11 = vpack.c.bf16 %v2412_v6, %v2412_v6  ;;  %v2658_v17 = vpack.c.bf16 %v2413_v7, %v2413_v7  ;;  %v2659_v18 = vpack.c.bf16 %v2414_v8, %v2414_v8  ;;  %v6053_v6 = vld [vmem:[%s7393_s23] sm:$0xff]   ;;  %s6754_s23 = smov 16  }
 0xa22   : > { %v2665_v54 = vsel %vm2663_vm6, %v2656_v10, 0  ;;  %v2711_v16 = vsel %vm2663_vm6, %v2657_v11, 0  ;;  %v2757_v12 = vsel %vm2663_vm6, %v2658_v17, 0  ;;  %v2803_v14 = vsel %vm2663_vm6, %v2659_v18, 0 }
 0xa23   : > { %5634 = vmatpush3.bf16.msra.mxu1 %v2665_v54  ;;  %5640 = vmatpush3.bf16.msra.mxu0 %v2711_v16 }
 0xa24   : > { %5645 = vmatprep.subr.bf16.mxu1 %v6745_v42  ;;  %5651 = vmatprep.subr.bf16.mxu0 %v6745_v42 }
 0xa26   : > { %5636 = vmatmul.mubr.msk.bf16.vlgmr.msra.gmra.mxu1 %vm2423_vm5, %v2652_v19  ;;  %5642 = vmatmul.mubr.msk.bf16.vlgmr.msra.gmra.mxu0 %vm2423_vm5, %v2653_v20 }
 0xa27   : > { %5646 = vmatpush3.bf16.msra.mxu1 %v2757_v12  ;;  %5652 = vmatpush3.bf16.msra.mxu0 %v2803_v14 }
 0xa28   : > { %5653 = vmatprep.mubr.msk.bf16.mxu0 %vm6746_vm4, %v6745_v42  ;;  %5647 = vmatprep.mubr.msk.bf16.mxu1 %vm6746_vm4, %v6745_v42 }
 0xa29   : > { %5657 = vmatprep.subr.bf16.mxu1 %v6745_v42  ;;  %5665 = vmatprep.subr.bf16.mxu0 %v6745_v42 }
 0xa36   : > { %v2643_v22 = vpop.xlane.xlu0 %2642 }
 0xa37   : > { %6084 = vrcp.f32 %v2643_v22 }
 0xa3e   : > { %v2640_v61 = vpop.xlane.xlu1 %2639 }
 0xa3f   : > { %6086 = vrcp.f32 %v2640_v61 }
 0xa44   : > { %v6085_v60 = vpop.eup %6084 }
 0xa45   : > { %v2651_v24 = vmul.f32 %v6085_v60, %v7571_v21 }
 0xa47   : > { %v2655_v25 = vpack.c.bf16 %v2651_v24, %v2651_v24 }
 0xa49   : > { %5654 = vmatmul.mubr.msk.bf16.vlgmr.msra.gmra.mxu0 %vm2423_vm5, %v2655_v25 }
 0xa4a   : > { %5669 = vmatprep.mubr.msk.bf16.mxu0 %vm6746_vm4, %v6745_v42 }
 0xa4c   : > { %v6087_v26 = vpop.eup %6086 }
 0xa4d   : > { %v2650_v27 = vmul.f32 %v6087_v26, %v7575_v23 }
 0xa4f   : > { %v2654_v28 = vpack.c.bf16 %v2650_v27, %v2650_v27 }
 0xa51   : > { %5648 = vmatmul.mubr.msk.bf16.vlgmr.msra.gmra.mxu1 %vm2423_vm5, %v2654_v28 }
 0xa52   : > { %5661 = vmatprep.mubr.msk.bf16.mxu1 %vm6746_vm4, %v6745_v42  ;;  %5658 = vmatpush3.bf16.msra.mxu1 %v6052_v57 }
 0xa53   : > { %5659 = vmatprep.subr.bf16.mxu1 %v6745_v42 }
 0xa56   : > { %5660 = vmatpush3.bf16.msra.mxu1 %v6053_v6 }
 0xa57   : > { %5673 = vmatprep.subr.bf16.mxu1 %v6745_v42 }
 0xae6   : > { %v2701_v29 = vpop.f32.mrf.mxu1  ;;  %v2747_v30 = vpop.f32.mrf.mxu0 }
 0xae8   : > { %v5637_v31 = vpop.f32.mrf.mxu1  ;;  %v5643_v32 = vpop.f32.mrf.mxu0 }
 0xae9   : > { %v5438_v31 = vld [vmem:[%s1546_s26] ss:$0 sm:$0xff]  ;;  %s8172_s26 = scalar_lea.vmem [#allocation21], %s7362_s25 }
 0xaea   : > { %v2704_v21 = vpop.f32.mrf.mxu1  ;;  %v2750_v33 = vpop.f32.mrf.mxu0 }
 0xaec   : > { %v5638_v35 = vpop.f32.mrf.mxu1  ;;  %v5644_v36 = vpop.f32.mrf.mxu0 }
 0xb09   : > { %v2839_v37 = vpop.f32.mrf.mxu0 }
 0xb0a   : > { %v2861_v23 = vcombine.low %v2747_v30, %v2839_v37  ;;  %v2862_v41 = vcombine.high %v2747_v30, %v2839_v37 }
 0xb0b   : > { %v5655_v38 = vpop.f32.mrf.mxu0 }
 0xb0c   : > { %v2869_v47 = vrot.slane %v2861_v23, %v7497_v9  ;;  %v2876_v48 = vrot.slane %v2862_v41, %v7497_v9  ;;  %v6054_v38 = vld [vmem:[%s7401_s17 + $0x8] sm:$0xff]   ;;  %v1873_v23 = vld [vmem:[#allocation3 + $0x8] sm:$0xff] }
 0xb0d   : > { %v2842_v39 = vpop.f32.mrf.mxu0 }
 0xb0e   : > { %v6055_v39 = vld [vmem:[%s7401_s17] sm:$0xff]   ;;  %s8168_s17 = scalar_lea.vmem [#allocation17], %s7362_s25 }
 0xb0f   : > { %v5656_v40 = vpop.f32.mrf.mxu0 }
 0xb10   : > { %v1872_v40 = vld [vmem:[#allocation3] sm:$0xff] }
 0xb11   : > { %v2793_v43 = vpop.f32.mrf.mxu1  ;;  %v3160_v41 = vpack.c.bf16 %v1873_v23, %v1872_v40 }
 0xb12   : > { %v2845_v44 = vcombine.low %v2701_v29, %v2793_v43  ;;  %v2846_v45 = vcombine.high %v2701_v29, %v2793_v43 }
 0xb13   : > { %v5649_v46 = vpop.f32.mrf.mxu1 }
 0xb14   : > { %v2853_v49 = vrot.slane %v2845_v44, %v7497_v9  ;;  %v2860_v50 = vrot.slane %v2846_v45, %v7497_v9 }
 0xb15   : > { %v2796_v51 = vpop.f32.mrf.mxu1 }
 0xb16   : > { %v2877_v52 = vcombine.low %v2853_v49, %v2869_v47  ;;  %v2878_v53 = vcombine.high %v2853_v49, %v2869_v47  ;;  %v2893_v55 = vcombine.low %v2860_v50, %v2876_v48  ;;  %v2894_v56 = vcombine.high %v2860_v50, %v2876_v48  ;;  %v6056_v47 = vld [vmem:[%s7398_s14 + $0x8] sm:$0xff]   ;;  %v6057_v48 = vld [vmem:[%s7398_s14] sm:$0xff]   ;;  %s8169_s14 = scalar_lea.vmem [#allocation18], %s7362_s25 }
 0xb17   : > { %v5650_v58 = vpop.f32.mrf.mxu1  ;;  %5666 = vmatpush3.bf16.msra.mxu0 %v6056_v47 }
 0xb18   : > { %v2885_v62 = vrot.slane %v2877_v52, %v7499_v15  ;;  %v2892_v63 = vrot.slane %v2878_v53, %v7499_v15  ;;  %v2901_v0 = vrot.slane %v2893_v55, %v7499_v15  ;;  %v2908_v1 = vrot.slane %v2894_v56, %v7499_v15  ;;  %5667 = vmatprep.subr.bf16.mxu0 %v6745_v42  ;;  %v5439_v58 = vld [vmem:[%s8168_s17] ss:$0 sm:$0xff] }
 0xb1a   : > { %v2913_v2 = vcombine.low %v2885_v62, %v2892_v63  ;;  %v5433_v3 = vcombine.high %v2885_v62, %v2892_v63  ;;  %v2929_v4 = vcombine.low %v2901_v0, %v2908_v1  ;;  %v5434_v5 = vcombine.high %v2901_v0, %v2908_v1  ;;  %v5440_v63 = vld [vmem:[%s8169_s14] ss:$0 sm:$0xff] }
 0xb1b   : > { %5668 = vmatpush3.bf16.msra.mxu0 %v6057_v48 }
 0xb1c   : > { %v2920_v7 = vrot.slane %v2913_v2, %v7497_v9  ;;  %v2928_v8 = vrot.slane %v5433_v3, %v7497_v9  ;;  %v2936_v10 = vrot.slane %v2929_v4, %v7497_v9  ;;  %v2944_v11 = vrot.slane %v5434_v5, %v7497_v9  ;;  %5681 = vmatprep.subr.bf16.mxu0 %v6745_v42 }
 0xb1e   : > { %v2946_v13 = vcombine.high %v2920_v7, %v2928_v8  ;;  %v2962_v59 = vcombine.high %v2936_v10, %v2944_v11  ;;  %v2945_v54 = vcombine.low %v2920_v7, %v2928_v8  ;;  %v2961_v16 = vcombine.low %v2936_v10, %v2944_v11 }
 0xb20   : > { %v2960_v17 = vrot.slane %v2946_v13, %v7499_v15  ;;  %v2976_v18 = vrot.slane %v2962_v59, %v7499_v15  ;;  %v2953_v19 = vrot.slane %v2945_v54, %v7499_v15  ;;  %v2969_v20 = vrot.slane %v2961_v16, %v7499_v15 }
 0xb22   : > { %v2979_v12 = vcombine.low %v2960_v17, %v2976_v18  ;;  %v2978_v14 = vcombine.high %v2953_v19, %v2969_v20  ;;  %v2977_v22 = vcombine.low %v2953_v19, %v2969_v20  ;;  %v2980_v61 = vcombine.high %v2960_v17, %v2976_v18 }
 0xb24   : > { %2986 = vrot.lane.b32.xlu1 %v2979_v12, %s6754_s23  ;;  %2982 = vrot.lane.b32.xlu0 %v2978_v14, %s6755_s8 }
 0xb28   : > { %2990 = vrot.lane.b32.xlu1 %v2980_v61, %s6756_s1 }
 0xb96   : > { %v2987_v60 = vpop.permute.xlu1 %2986  ;;  %v2983_v24 = vpop.permute.xlu0 %2982 }
 0xb97   : > { %v2993_v25 = vsel %vm2423_vm5, %v2977_v22, %v2983_v24 }
 0xb98   : > { %v2995_v27 = vsel %vm2994_vm7, %v2993_v25, %v2987_v60 }
 0xb9a   : > { %v2991_v26 = vpop.permute.xlu1 %2990 }
 0xb9b   : > { %v2997_v28 = vsel %vm2996_vm8, %v2995_v27, %v2991_v26 }
 0xb9c   : > { %v3002_v29 = vpack.c.bf16 %v2997_v28, %v2997_v28 }
 0xb9e   : > { %5662 = vmatmul.mubr.msk.bf16.vlgmr.msra.gmra.mxu1 %vm1876_vm3, %v3002_v29 }
 0xb9f   : > { %5677 = vmatprep.mubr.msk.bf16.mxu1 %vm6746_vm4, %v6745_v42  ;;  %5674 = vmatpush3.bf16.msra.mxu1 %v6054_v38 }
 0xba0   : > { %5675 = vmatprep.subr.bf16.mxu1 %v6745_v42 }
 0xba3   : > { %5676 = vmatpush3.bf16.msra.mxu1 %v6055_v39 }
 0xba4   : > { %5687 = vmatprep.subr.bf16.mxu1 %v6745_v42 }
 0xba6   : > { %5678 = vmatmul.mubr.msk.bf16.vlgmr.msra.gmra.mxu1 %vm1876_vm3, %v3160_v41 }
 0xba7   : > { %5689 = vmatprep.mubr.msk.bf16.mxu1 %vm6746_vm4, %v6745_v42 }
 0xc5e   : > { %v3052_v30 = vpop.f32.mrf.mxu1 }
 0xc5f   : > { %v3058_v32 = vadd.f32 %v3052_v30, %v7443_v34 }
 0xc60   : > { %v5663_v21 = vpop.f32.mrf.mxu1 }
 0xc61   : > { %v7652_v33 = vadd.f32 %v5438_v31, %v3058_v32 }
 0xc62   : > { %v3055_v35 = vpop.f32.mrf.mxu1 }
 0xc63   : > { %v3069_v36 = vsel %vm1876_vm3, %v7652_v33, 0.0 }
 0xc64   : > { %3070 = vadd.xlane.f32.xlu0 %v3069_v36  ;;  %v5664_v37 = vpop.f32.mrf.mxu1 }
 0xc66   : > { %v7669_v49 = vpop.f32.mrf.mxu1 }
 0xc68   : > { %v5679_v50 = vpop.f32.mrf.mxu1 }
 0xc6a   : > { %v7673_v51 = vpop.f32.mrf.mxu1 }
 0xc6c   : > { %v5680_v52 = vpop.f32.mrf.mxu1 }
 0xc7a   : > { %3366 = vrot.lane.b32.xlu0 %v7669_v49, %s6748_s18 }
 0xc7e   : > { %3372 = vrot.lane.b32.xlu0 %v7669_v49, %s6749_s7 }
 0xc82   : > { %3378 = vrot.lane.b32.xlu0 %v7669_v49, %s6747_s20 }
 0xced   : > { %v3071_v34 = vpop.xlane.xlu0 %3070 }
 0xcee   : > { %v3072_v43 = vmul.f32 0.03125, %v3071_v34 }
 0xcf0   : > { %v3073_v44 = vsub.f32 %v7652_v33, %v3072_v43 }
 0xcf1   : > { %v7692_v3 = vpop.permute.xlu0 %3366 }
 0xcf2   : > { %v3074_v45 = vmul.f32 %v3073_v44, %v3073_v44 }
 0xcf4   : > { %v3075_v46 = vsel %vm1876_vm3, %v3074_v45, 0.0 }
 0xcf5   : > { %3076 = vadd.xlane.f32.xlu1 %v3075_v46  ;;  %v7696_v5 = vpop.permute.xlu0 %3372 }
 0xcf6   : > { %v3384_v10 = vcombine.low %v7669_v49, %v7696_v5  ;;  %v3385_v11 = vcombine.high %v7669_v49, %v7696_v5 }
 0xcf8   : > { %v3392_v19 = vrot.slane %v3384_v10, %v7497_v9  ;;  %v3399_v20 = vrot.slane %v3385_v11, %v7497_v9 }
 0xcf9   : > { %v7700_v7 = vpop.permute.xlu0 %3378 }
 0xcfa   : > { %v3400_v13 = vcombine.low %v7692_v3, %v7700_v7  ;;  %v3401_v59 = vcombine.high %v7692_v3, %v7700_v7 }
 0xcfc   : > { %v3408_v12 = vrot.slane %v3400_v13, %v7497_v9  ;;  %v3415_v14 = vrot.slane %v3401_v59, %v7497_v9 }
 0xcfe   : > { %v3416_v25 = vcombine.low %v3392_v19, %v3408_v12  ;;  %v3417_v26 = vcombine.high %v3392_v19, %v3408_v12  ;;  %v3432_v27 = vcombine.low %v3399_v20, %v3415_v14  ;;  %v3433_v28 = vcombine.high %v3399_v20, %v3415_v14 }
 0xd00   : > { %v3424_v21 = vrot.slane %v3416_v25, %v7499_v15  ;;  %v3431_v35 = vrot.slane %v3417_v26, %v7499_v15  ;;  %v3440_v36 = vrot.slane %v3432_v27, %v7499_v15  ;;  %v3447_v37 = vrot.slane %v3433_v28, %v7499_v15 }
 0xd02   : > { %v3520_v41 = vcombine.low %v3424_v21, %v3431_v35  ;;  %v5449_v34 = vcombine.high %v3424_v21, %v3431_v35  ;;  %v3536_v43 = vcombine.low %v3440_v36, %v3447_v37 }
 0xd04   : > { %v3527_v50 = vrot.slane %v3520_v41, %v7497_v9  ;;  %v3535_v52 = vrot.slane %v5449_v34, %v7497_v9 }
 0xd06   : > { %3368 = vrot.lane.b32.xlu1 %v7673_v51, %s6748_s18 }
 0xd0a   : > { %3374 = vrot.lane.b32.xlu1 %v7673_v51, %s6749_s7 }
 0xd0e   : > { %3380 = vrot.lane.b32.xlu1 %v7673_v51, %s6747_s20 }
 0xd7e   : > { %v3077_v53 = vpop.xlane.xlu1 %3076 }
 0xd7f   : > { %v3078_v55 = vmul.f32 0.03125, %v3077_v53  ;;  %v3543_v53 = vrot.slane %v3536_v43, %v7497_v9 }
 0xd81   : > { %v3079_v56 = vadd.f32 1e-05, %v3078_v55 }
 0xd82   : > { %v7694_v4 = vpop.permute.xlu1 %3368 }
 0xd83   : > { %6088 = vrsqrt.f32 %v3079_v56 }
 0xd86   : > { %v7698_v6 = vpop.permute.xlu1 %3374 }
 0xd87   : > { %v3452_v54 = vcombine.low %v7673_v51, %v7698_v6  ;;  %v3453_v16 = vcombine.high %v7673_v51, %v7698_v6 }
 0xd89   : > { %v3460_v22 = vrot.slane %v3452_v54, %v7497_v9  ;;  %v3467_v61 = vrot.slane %v3453_v16, %v7497_v9 }
 0xd8a   : > { %v7702_v8 = vpop.permute.xlu1 %3380 }
 0xd8b   : > { %v3468_v17 = vcombine.low %v7694_v4, %v7702_v8  ;;  %v3469_v18 = vcombine.high %v7694_v4, %v7702_v8 }
 0xd8d   : > { %v3476_v60 = vrot.slane %v3468_v17, %v7497_v9  ;;  %v3483_v24 = vrot.slane %v3469_v18, %v7497_v9 }
 0xd8f   : > { %v3484_v29 = vcombine.low %v3460_v22, %v3476_v60  ;;  %v3485_v30 = vcombine.high %v3460_v22, %v3476_v60  ;;  %v3500_v31 = vcombine.low %v3467_v61, %v3483_v24  ;;  %v3501_v32 = vcombine.high %v3467_v61, %v3483_v24 }
 0xd90   : > { %v6089_v57 = vpop.eup %6088 }
 0xd91   : > { %v3081_v62 = vmul.f32 %v6089_v57, %v3073_v44  ;;  %v3492_v38 = vrot.slane %v3484_v29, %v7499_v15  ;;  %v3499_v39 = vrot.slane %v3485_v30, %v7499_v15  ;;  %v3508_v40 = vrot.slane %v3500_v31, %v7499_v15 }
 0xd92   : > { %v3515_v23 = vrot.slane %v3501_v32, %v7499_v15  ;;  %v5450_v44 = vcombine.high %v3440_v36, %v3447_v37 }
 0xd93   : > { %v3088_v0 = vmul.f32 %v5439_v58, %v3081_v62  ;;  %v3588_v45 = vcombine.low %v3492_v38, %v3499_v39  ;;  %v5451_v46 = vcombine.high %v3492_v38, %v3499_v39 }
 0xd94   : > { %v3604_v47 = vcombine.low %v3508_v40, %v3515_v23  ;;  %v5452_v48 = vcombine.high %v3508_v40, %v3515_v23  ;;  %v3551_v55 = vrot.slane %v5450_v44, %v7497_v9 }
 0xd95   : > { %v3095_v1 = vadd.f32 %v5440_v63, %v3088_v0  ;;  %v3595_v56 = vrot.slane %v3588_v45, %v7497_v9  ;;  %v3603_v57 = vrot.slane %v5451_v46, %v7497_v9  ;;  %v3552_v63 = vcombine.low %v3527_v50, %v3535_v52 }
 0xd96   : > { %v3611_v58 = vrot.slane %v3604_v47, %v7497_v9  ;;  %v3619_v62 = vrot.slane %v5452_v48, %v7497_v9  ;;  %v3568_v0 = vcombine.low %v3543_v53, %v3551_v55 }
 0xd97   : > { %v3100_v2 = vpack.c.bf16 %v3095_v1, %v3095_v1  ;;  %v3553_v1 = vcombine.high %v3527_v50, %v3535_v52  ;;  %v3620_v10 = vcombine.low %v3595_v56, %v3603_v57  ;;  %v3621_v13 = vcombine.high %v3595_v56, %v3603_v57 }
 0xd98   : > { %v3636_v11 = vcombine.low %v3611_v58, %v3619_v62  ;;  %v3637_v59 = vcombine.high %v3611_v58, %v3619_v62  ;;  %v3560_v54 = vrot.slane %v3552_v63, %v7499_v15  ;;  %v3576_v16 = vrot.slane %v3568_v0, %v7499_v15 }
 0xd99   : > { %5670 = vmatmul.mubr.msk.bf16.vlgmr.msra.gmra.mxu0 %vm1876_vm3, %v3100_v2  ;;  %v3569_v2 = vcombine.high %v3543_v53, %v3551_v55  ;;  %v3567_v17 = vrot.slane %v3553_v1, %v7499_v15  ;;  %v3628_v19 = vrot.slane %v3620_v10, %v7499_v15  ;;  %v3635_v12 = vrot.slane %v3621_v13, %v7499_v15 }
 0xd9a   : > { %5683 = vmatprep.mubr.msk.bf16.mxu0 %vm6746_vm4, %v6745_v42  ;;  %v3644_v20 = vrot.slane %v3636_v11, %v7499_v15  ;;  %v3651_v14 = vrot.slane %v3637_v59, %v7499_v15  ;;  %v3584_v22 = vcombine.low %v3560_v54, %v3576_v16  ;;  %v3585_v61 = vcombine.high %v3560_v54, %v3576_v16 }
 0xd9b   : > { %v3583_v18 = vrot.slane %v3569_v2, %v7499_v15 }
 0xd9c   : > { %v3652_v25 = vcombine.low %v3628_v19, %v3644_v20  ;;  %v3653_v26 = vcombine.high %v3628_v19, %v3644_v20  ;;  %v3654_v27 = vcombine.low %v3635_v12, %v3651_v14  ;;  %v3655_v28 = vcombine.high %v3635_v12, %v3651_v14 }
 0xd9d   : > { %v3586_v60 = vcombine.low %v3567_v17, %v3583_v18  ;;  %v3587_v24 = vcombine.high %v3567_v17, %v3583_v18 }
 0xd9e   : > { %v3956_v29 = vpack.c.bf16 %v3652_v25, %v3584_v22  ;;  %v3957_v30 = vpack.c.bf16 %v3653_v26, %v3585_v61 }
 0xd9f   : > { %v3958_v31 = vpack.c.bf16 %v3654_v27, %v3586_v60  ;;  %v3959_v32 = vpack.c.bf16 %v3655_v28, %v3587_v24 }
 0xda0   : > { %v3964_v21 = vsel %vm2423_vm5, %v3956_v29, 0  ;;  %v4010_v35 = vsel %vm2423_vm5, %v3957_v30, 0 }
 0xda1   : > { %5682 = vmatpush3.bf16.xpose.msra.mxu0 %v3964_v21  ;;  %5688 = vmatpush3.bf16.xpose.msra.mxu1 %v4010_v35  ;;  %v4056_v60 = vsel %vm2423_vm5, %v3958_v31, 0  ;;  %v4102_v24 = vsel %vm2423_vm5, %v3959_v32, 0 }
 0xda2   : > { %5693 = vmatprep.subr.bf16.mxu0 %v6745_v42  ;;  %5699 = vmatprep.subr.bf16.mxu1 %v6745_v42 }
 0xe59   : > { %v3150_v36 = vpop.f32.mrf.mxu0 }
 0xe5a   : > { %v3217_v37 = vmul.f32 0.35355338, %v3150_v36 }
 0xe5b   : > { %v5671_v38 = vpop.f32.mrf.mxu0 }
 0xe5c   : > { %3219 = vrot.lane.b32.xlu0 %v3217_v37, %s6748_s18  ;;  %3222 = vrot.lane.b32.xlu1 %v3217_v37, %s6749_s7 }
 0xe5d   : > { %v3153_v39 = vpop.f32.mrf.mxu0 }
 0xe5f   : > { %v5672_v40 = vpop.f32.mrf.mxu0 }
 0xe60   : > { %3225 = vrot.lane.b32.xlu0 %v3217_v37, %s6747_s20  ;;  %3658 = vrot.lane.b32.xlu1 %v7673_v51, %s6750_s27 }
 0xe64   : > { %3656 = vrot.lane.b32.xlu0 %v7669_v49, %s6750_s27  ;;  %3660 = vrot.lane.b32.xlu1 %v7692_v3, %s6750_s27 }
 0xe68   : > { %3662 = vrot.lane.b32.xlu0 %v7694_v4, %s6750_s27 }
 0xece   : > { %v3220_v23 = vpop.permute.xlu0 %3219  ;;  %v3223_v41 = vpop.permute.xlu1 %3222 }
 0xecf   : > { %v3228_v34 = vcombine.low %v3217_v37, %v3223_v41  ;;  %v3229_v43 = vcombine.high %v3217_v37, %v3223_v41 }
 0xed1   : > { %v3236_v47 = vrot.slane %v3228_v34, %v7497_v9  ;;  %v3243_v51 = vrot.slane %v3229_v43, %v7497_v9 }
 0xed2   : > { %v3226_v44 = vpop.permute.xlu0 %3225 }
 0xed3   : > { %v3244_v45 = vcombine.low %v3220_v23, %v3226_v44  ;;  %v3245_v46 = vcombine.high %v3220_v23, %v3226_v44 }
 0xed5   : > { %v3252_v48 = vrot.slane %v3244_v45, %v7497_v9  ;;  %v3259_v49 = vrot.slane %v3245_v46, %v7497_v9 }
 0xed7   : > { %v3260_v50 = vcombine.low %v3236_v47, %v3252_v48  ;;  %v3261_v3 = vcombine.high %v3236_v47, %v3252_v48  ;;  %v3276_v52 = vcombine.low %v3243_v51, %v3259_v49  ;;  %v3277_v53 = vcombine.high %v3243_v51, %v3259_v49  ;;  %v3659_v48 = vpop.permute.xlu1 %3658  ;;  %v3657_v49 = vpop.permute.xlu0 %3656 }
 0xed9   : > { %v3268_v4 = vrot.slane %v3260_v50, %v7499_v15  ;;  %v3275_v55 = vrot.slane %v3261_v3, %v7499_v15  ;;  %v3284_v56 = vrot.slane %v3276_v52, %v7499_v15  ;;  %v3291_v57 = vrot.slane %v3277_v53, %v7499_v15 }
 0xedb   : > { %v3296_v58 = vcombine.low %v3268_v4, %v3275_v55  ;;  %v5447_v62 = vcombine.high %v3268_v4, %v3275_v55  ;;  %v3312_v63 = vcombine.low %v3284_v56, %v3291_v57  ;;  %v5448_v0 = vcombine.high %v3284_v56, %v3291_v57  ;;  %v3663_v50 = vpop.permute.xlu0 %3662  ;;  %v3661_v3 = vpop.permute.xlu1 %3660 }
 0xedd   : > { %v3303_v1 = vrot.slane %v3296_v58, %v7497_v9  ;;  %v3311_v2 = vrot.slane %v5447_v62, %v7497_v9  ;;  %v3319_v10 = vrot.slane %v3312_v63, %v7497_v9  ;;  %v3327_v11 = vrot.slane %v5448_v0, %v7497_v9 }
 0xedf   : > { %v3328_v13 = vcombine.low %v3303_v1, %v3311_v2  ;;  %v3344_v59 = vcombine.low %v3319_v10, %v3327_v11  ;;  %v3329_v54 = vcombine.high %v3303_v1, %v3311_v2  ;;  %v3345_v16 = vcombine.high %v3319_v10, %v3327_v11 }
 0xee1   : > { %v3336_v17 = vrot.slane %v3328_v13, %v7499_v15  ;;  %v3352_v18 = vrot.slane %v3344_v59, %v7499_v15  ;;  %v3343_v22 = vrot.slane %v3329_v54, %v7499_v15  ;;  %v3359_v61 = vrot.slane %v3345_v16, %v7499_v15 }
 0xee3   : > { %v3360_v19 = vcombine.low %v3336_v17, %v3352_v18  ;;  %v3361_v20 = vcombine.high %v3336_v17, %v3352_v18  ;;  %v3362_v25 = vcombine.low %v3343_v22, %v3359_v61  ;;  %v3363_v26 = vcombine.high %v3343_v22, %v3359_v61 }
 0xee5   : > { %v3952_v12 = vpack.c.bf16 %v3360_v19, %v3360_v19  ;;  %v3953_v14 = vpack.c.bf16 %v3361_v20, %v3361_v20  ;;  %v3954_v27 = vpack.c.bf16 %v3362_v25, %v3362_v25  ;;  %v3955_v28 = vpack.c.bf16 %v3363_v26, %v3363_v26 }
 0xee7   : > { %5684 = vmatmul.mubr.msk.bf16.vlgmr.msra.gmra.mxu0 %vm2423_vm5, %v3952_v12  ;;  %5690 = vmatmul.mubr.msk.bf16.vlgmr.msra.gmra.mxu1 %vm2423_vm5, %v3953_v14 }
 0xee8   : > { %5694 = vmatpush3.bf16.xpose.msra.mxu0 %v4056_v60  ;;  %5700 = vmatpush3.bf16.xpose.msra.mxu1 %v4102_v24 }
 0xee9   : > { %5695 = vmatprep.mubr.msk.bf16.mxu0 %vm6746_vm4, %v6745_v42  ;;  %5701 = vmatprep.mubr.msk.bf16.mxu1 %vm6746_vm4, %v6745_v42 }
 0xeea   : > { %5705 = vmatprep.subr.bf16.mxu0 %v6745_v42  ;;  %5711 = vmatprep.subr.bf16.mxu1 %v6745_v42 }
 0xeef   : > { %5696 = vmatmul.mubr.msk.bf16.vlgmr.msra.gmra.mxu0 %vm2423_vm5, %v3954_v27  ;;  %5702 = vmatmul.mubr.msk.bf16.vlgmr.msra.gmra.mxu1 %vm2423_vm5, %v3955_v28 }
 0xef0   : > { %5707 = vmatprep.mubr.msk.bf16.mxu0 %vm6746_vm4, %v6745_v42  ;;  %5713 = vmatprep.mubr.msk.bf16.mxu1 %vm6746_vm4, %v6745_v42 }
 0xfa7   : > { %v4000_v29 = vpop.f32.mrf.mxu0  ;;  %v4046_v30 = vpop.f32.mrf.mxu1 }
 0xfa8   : > { %v4144_v31 = vsel %vm2994_vm7, %v4000_v29, -inf  ;;  %v4147_v32 = vsel %vm2994_vm7, %v4046_v30, -inf }
 0xfa9   : > { %4145 = vmax.xlane.f32.xlu1 %v4144_v31  ;;  %v5685_v21 = vpop.f32.mrf.mxu0  ;;  %4148 = vmax.xlane.f32.xlu0 %v4147_v32  ;;  %v5691_v35 = vpop.f32.mrf.mxu1 }
 0xfab   : > { %v4003_v36 = vpop.f32.mrf.mxu0  ;;  %v4049_v37 = vpop.f32.mrf.mxu1 }
 0xfad   : > { %v5686_v38 = vpop.f32.mrf.mxu0  ;;  %v5692_v39 = vpop.f32.mrf.mxu1 }
 0xfaf   : > { %v4092_v40 = vpop.f32.mrf.mxu0  ;;  %v4138_v23 = vpop.f32.mrf.mxu1 }
 0xfb0   : > { %v4150_v41 = vsel %vm2994_vm7, %v4092_v40, -inf  ;;  %v4153_v34 = vsel %vm2994_vm7, %v4138_v23, -inf }
 0xfb1   : > { %v5697_v43 = vpop.f32.mrf.mxu0  ;;  %4151 = vmax.xlane.f32.xlu0 %v4150_v41  ;;  %4154 = vmax.xlane.f32.xlu1 %v4153_v34  ;;  %v5703_v44 = vpop.f32.mrf.mxu1 }
 0xfb3   : > { %v4095_v45 = vpop.f32.mrf.mxu0  ;;  %v4141_v46 = vpop.f32.mrf.mxu1 }
 0xfb5   : > { %v5698_v47 = vpop.f32.mrf.mxu0  ;;  %v5704_v51 = vpop.f32.mrf.mxu1 }
 0xfc2   : > { %3664 = vrot.lane.b32.xlu1 %v7696_v5, %s6750_s27 }
 0xfc7   : > { %3666 = vrot.lane.b32.xlu0 %v7698_v6, %s6750_s27 }
0x1032   : > { %v4146_v52 = vpop.xlane.xlu1 %4145  ;;  %v4149_v53 = vpop.xlane.xlu0 %4148 }
0x1033   : > { %v4156_v4 = vsub.f32 %v4000_v29, %v4146_v52  ;;  %v4157_v55 = vsub.f32 %v4046_v30, %v4149_v53 }
0x1035   : > { %v4160_v56 = vmul.f32 1.442695, %v4156_v4  ;;  %v4162_v57 = vmul.f32 1.442695, %v4157_v55 }
0x1037   : > { %6090 = vpow2.f32 %v4160_v56 }
0x1038   : > { %6092 = vpow2.f32 %v4162_v57 }
0x103a   : > { %v4155_v63 = vpop.xlane.xlu1 %4154  ;;  %v4152_v0 = vpop.xlane.xlu0 %4151 }
0x103b   : > { %v4159_v1 = vsub.f32 %v4138_v23, %v4155_v63  ;;  %v4158_v2 = vsub.f32 %v4092_v40, %v4152_v0 }
0x103d   : > { %v4166_v10 = vmul.f32 1.442695, %v4159_v1  ;;  %v4164_v11 = vmul.f32 1.442695, %v4158_v2 }
0x103e   : > { %v3665_v16 = vpop.permute.xlu1 %3664 }
0x103f   : > { %6094 = vpow2.f32 %v4166_v10  ;;  %v3680_v12 = vcombine.low %v3657_v49, %v3665_v16  ;;  %v3681_v14 = vcombine.high %v3657_v49, %v3665_v16 }
0x1040   : > { %6096 = vpow2.f32 %v4164_v11 }
0x1041   : > { %v3688_v31 = vrot.slane %v3680_v12, %v7497_v9  ;;  %v3695_v32 = vrot.slane %v3681_v14, %v7497_v9 }
0x1044   : > { %v7807_v58 = vpop.eup %6090 }
0x1045   : > { %v7809_v62 = vpop.eup %6092  ;;  %v4168_v5 = vsel %vm2994_vm7, %v7807_v58, 0.0 }
0x1046   : > { %4169 = vadd.xlane.f32.xlu0 %v4168_v5  ;;  %v4171_v6 = vsel %vm2994_vm7, %v7809_v62, 0.0 }
0x1047   : > { %4172 = vadd.xlane.f32.xlu1 %v4171_v6 }
0x104c   : > { %v7819_v13 = vpop.eup %6094 }
0x104d   : > { %v7821_v59 = vpop.eup %6096  ;;  %v4177_v54 = vsel %vm2994_vm7, %v7819_v13, 0.0 }
0x1058   : > { %3668 = vrot.lane.b32.xlu1 %v7700_v7, %s6750_s27  ;;  %v4174_v7 = vsel %vm2994_vm7, %v7821_v59, 0.0 }
0x105c   : > { %3670 = vrot.lane.b32.xlu0 %v7702_v8, %s6750_s27  ;;  %v3667_v8 = vpop.permute.xlu0 %3666 }
0x105d   : > { %v3748_v19 = vcombine.low %v3659_v48, %v3667_v8  ;;  %v3749_v20 = vcombine.high %v3659_v48, %v3667_v8 }
0x105f   : > { %v3756_v25 = vrot.slane %v3748_v19, %v7497_v9  ;;  %v3763_v28 = vrot.slane %v3749_v20, %v7497_v9 }
0x107b   : > { %4178 = vadd.xlane.f32.xlu0 %v4177_v54 }
0x107c   : > { %4175 = vadd.xlane.f32.xlu1 %v4174_v7 }
0x10cf   : > { %v4170_v17 = vpop.xlane.xlu0 %4169 }
0x10d0   : > { %v4173_v18 = vpop.xlane.xlu1 %4172  ;;  %6098 = vrcp.f32 %v4170_v17 }
0x10d1   : > { %6100 = vrcp.f32 %v4173_v18 }
0x10d3   : > { %v3671_v22 = vpop.permute.xlu0 %3670 }
0x10d4   : > { %v3764_v61 = vcombine.low %v3663_v50, %v3671_v22  ;;  %v3765_v60 = vcombine.high %v3663_v50, %v3671_v22  ;;  %v3669_v24 = vpop.permute.xlu1 %3668 }
0x10d5   : > { %v3696_v26 = vcombine.low %v3661_v3, %v3669_v24  ;;  %v3697_v27 = vcombine.high %v3661_v3, %v3669_v24 }
0x10d6   : > { %v3772_v29 = vrot.slane %v3764_v61, %v7497_v9  ;;  %v3779_v30 = vrot.slane %v3765_v60, %v7497_v9 }
0x10d7   : > { %v3704_v21 = vrot.slane %v3696_v26, %v7497_v9  ;;  %v3711_v35 = vrot.slane %v3697_v27, %v7497_v9 }
0x10d8   : > { %v3780_v36 = vcombine.low %v3756_v25, %v3772_v29  ;;  %v3781_v37 = vcombine.high %v3756_v25, %v3772_v29  ;;  %v3796_v38 = vcombine.low %v3763_v28, %v3779_v30  ;;  %v3797_v39 = vcombine.high %v3763_v28, %v3779_v30 }
0x10d9   : > { %v3712_v40 = vcombine.low %v3688_v31, %v3704_v21  ;;  %v3713_v23 = vcombine.high %v3688_v31, %v3704_v21  ;;  %v3728_v41 = vcombine.low %v3695_v32, %v3711_v35  ;;  %v3729_v34 = vcombine.high %v3695_v32, %v3711_v35 }
0x10da   : > { %v3788_v43 = vrot.slane %v3780_v36, %v7499_v15  ;;  %v3795_v44 = vrot.slane %v3781_v37, %v7499_v15  ;;  %v3804_v45 = vrot.slane %v3796_v38, %v7499_v15  ;;  %v3811_v46 = vrot.slane %v3797_v39, %v7499_v15 }
0x10db   : > { %v3720_v47 = vrot.slane %v3712_v40, %v7499_v15  ;;  %v3727_v51 = vrot.slane %v3713_v23, %v7499_v15  ;;  %v3736_v48 = vrot.slane %v3728_v41, %v7499_v15  ;;  %v3743_v49 = vrot.slane %v3729_v34, %v7499_v15 }
0x10dc   : > { %v3884_v50 = vcombine.low %v3788_v43, %v3795_v44  ;;  %v5455_v3 = vcombine.high %v3788_v43, %v3795_v44  ;;  %v3900_v52 = vcombine.low %v3804_v45, %v3811_v46  ;;  %v5456_v53 = vcombine.high %v3804_v45, %v3811_v46 }
0x10dd   : > { %v3816_v4 = vcombine.low %v3720_v47, %v3727_v51  ;;  %v5453_v55 = vcombine.high %v3720_v47, %v3727_v51  ;;  %v3832_v56 = vcombine.low %v3736_v48, %v3743_v49  ;;  %v5454_v57 = vcombine.high %v3736_v48, %v3743_v49  ;;  %v6099_v19 = vpop.eup %6098 }
0x10de   : > { %v3891_v5 = vrot.slane %v3884_v50, %v7497_v9  ;;  %v3899_v6 = vrot.slane %v5455_v3, %v7497_v9  ;;  %v3907_v63 = vrot.slane %v3900_v52, %v7497_v9  ;;  %v3915_v0 = vrot.slane %v5456_v53, %v7497_v9  ;;  %v6101_v14 = vpop.eup %6100 }
0x10df   : > { %v3823_v1 = vrot.slane %v3816_v4, %v7497_v9  ;;  %v3831_v2 = vrot.slane %v5453_v55, %v7497_v9  ;;  %v3839_v10 = vrot.slane %v3832_v56, %v7497_v9  ;;  %v3847_v11 = vrot.slane %v5454_v57, %v7497_v9 }
0x10e0   : > { %v3916_v54 = vcombine.low %v3891_v5, %v3899_v6  ;;  %v3932_v7 = vcombine.low %v3907_v63, %v3915_v0  ;;  %v3917_v27 = vcombine.high %v3891_v5, %v3899_v6  ;;  %v3933_v28 = vcombine.high %v3907_v63, %v3915_v0 }
0x10e1   : > { %v3848_v8 = vcombine.low %v3823_v1, %v3831_v2  ;;  %v3864_v16 = vcombine.low %v3839_v10, %v3847_v11  ;;  %v3849_v17 = vcombine.high %v3823_v1, %v3831_v2  ;;  %v3865_v18 = vcombine.high %v3839_v10, %v3847_v11 }
0x10e2   : > { %v3924_v20 = vrot.slane %v3916_v54, %v7499_v15  ;;  %v3940_v12 = vrot.slane %v3932_v7, %v7499_v15  ;;  %v4184_v31 = vmul.f32 %v6099_v19, %v7807_v58  ;;  %v4185_v32 = vmul.f32 %v6101_v14, %v7809_v62 }
0x10e3   : > { %v3856_v22 = vrot.slane %v3848_v8, %v7499_v15  ;;  %v3872_v61 = vrot.slane %v3864_v16, %v7499_v15  ;;  %v3863_v60 = vrot.slane %v3849_v17, %v7499_v15  ;;  %v3879_v24 = vrot.slane %v3865_v18, %v7499_v15 }
0x10e4   : > { %v3948_v25 = vcombine.low %v3924_v20, %v3940_v12  ;;  %v3949_v26 = vcombine.high %v3924_v20, %v3940_v12  ;;  %v3931_v21 = vrot.slane %v3917_v27, %v7499_v15  ;;  %v3947_v35 = vrot.slane %v3933_v28, %v7499_v15 }
0x10e5   : > { %v3880_v29 = vcombine.low %v3856_v22, %v3872_v61  ;;  %v3881_v30 = vcombine.high %v3856_v22, %v3872_v61  ;;  %v3882_v38 = vcombine.low %v3863_v60, %v3879_v24  ;;  %v3883_v39 = vcombine.high %v3863_v60, %v3879_v24  ;;  %v6058_v22 = vld [vmem:[%s7404_s21 + $0x8] sm:$0xff]  }
0x10e6   : > { %v3950_v40 = vcombine.low %v3931_v21, %v3947_v35  ;;  %v3951_v23 = vcombine.high %v3931_v21, %v3947_v35  ;;  %v4188_v41 = vpack.c.bf16 %v4184_v31, %v4184_v31  ;;  %v4189_v34 = vpack.c.bf16 %v4185_v32, %v4185_v32  ;;  %v6059_v35 = vld [vmem:[%s7404_s21] sm:$0xff]   ;;  %s8170_s21 = scalar_lea.vmem [#allocation19], %s7362_s25 }
0x10e7   : > { %v4192_v36 = vpack.c.bf16 %v3948_v25, %v3880_v29  ;;  %v4193_v37 = vpack.c.bf16 %v3949_v26, %v3881_v30 }
0x10e8   : > { %v4194_v58 = vpack.c.bf16 %v3950_v40, %v3882_v38  ;;  %v4195_v62 = vpack.c.bf16 %v3951_v23, %v3883_v39 }
0x10e9   : > { %5706 = vmatpush3.bf16.msra.mxu0 %v4192_v36  ;;  %5712 = vmatpush3.bf16.msra.mxu1 %v4193_v37 }
0x10ea   : > { %5717 = vmatprep.subr.bf16.mxu0 %v6745_v42  ;;  %5723 = vmatprep.subr.bf16.mxu1 %v6745_v42 }
0x10ec   : > { %5708 = vmatmul.mubr.msk.bf16.vlgmr.msra.gmra.mxu0 %vm2994_vm7, %v4188_v41  ;;  %5714 = vmatmul.mubr.msk.bf16.vlgmr.msra.gmra.mxu1 %vm2994_vm7, %v4189_v34 }
0x10ed   : > { %5718 = vmatpush3.bf16.msra.mxu0 %v4194_v58  ;;  %5724 = vmatpush3.bf16.msra.mxu1 %v4195_v62 }
0x10ee   : > { %5719 = vmatprep.mubr.msk.bf16.mxu0 %vm6746_vm4, %v6745_v42  ;;  %5725 = vmatprep.mubr.msk.bf16.mxu1 %vm6746_vm4, %v6745_v42 }
0x10ef   : > { %5729 = vmatprep.subr.bf16.mxu0 %v6745_v42  ;;  %5737 = vmatprep.subr.bf16.mxu1 %v6745_v42 }
0x1104   : > { %v4179_v43 = vpop.xlane.xlu0 %4178 }
0x1105   : > { %6102 = vrcp.f32 %v4179_v43  ;;  %v4176_v44 = vpop.xlane.xlu1 %4175 }
0x1106   : > { %6104 = vrcp.f32 %v4176_v44 }
0x1112   : > { %v6103_v45 = vpop.eup %6102 }
0x1113   : > { %v6105_v46 = vpop.eup %6104  ;;  %v4187_v47 = vmul.f32 %v6103_v45, %v7819_v13 }
0x1114   : > { %v4186_v51 = vmul.f32 %v6105_v46, %v7821_v59 }
0x1115   : > { %v4191_v48 = vpack.c.bf16 %v4187_v47, %v4187_v47 }
0x1116   : > { %v4190_v49 = vpack.c.bf16 %v4186_v51, %v4186_v51 }
0x1117   : > { %5726 = vmatmul.mubr.msk.bf16.vlgmr.msra.gmra.mxu1 %vm2994_vm7, %v4191_v48 }
0x1118   : > { %5720 = vmatmul.mubr.msk.bf16.vlgmr.msra.gmra.mxu0 %vm2994_vm7, %v4190_v49  ;;  %5741 = vmatprep.mubr.msk.bf16.mxu1 %vm6746_vm4, %v6745_v42 }
0x1119   : > { %5733 = vmatprep.mubr.msk.bf16.mxu0 %vm6746_vm4, %v6745_v42  ;;  %5730 = vmatpush3.bf16.msra.mxu0 %v6058_v22  ;;  %v6067_v22 = vld [vmem:[%s7411_s11 + $0x10] sm:$0xff]  }
0x111a   : > { %5731 = vmatprep.subr.bf16.mxu0 %v6745_v42 }
0x111d   : > { %5732 = vmatpush3.bf16.msra.mxu0 %v6059_v35 }
0x111e   : > { %5745 = vmatprep.subr.bf16.mxu0 %v6745_v42 }
0x11ac   : > { %v4233_v50 = vpop.f32.mrf.mxu0  ;;  %v4276_v3 = vpop.f32.mrf.mxu1 }
0x11ae   : > { %v5709_v52 = vpop.f32.mrf.mxu0  ;;  %v5715_v53 = vpop.f32.mrf.mxu1 }
0x11b0   : > { %v4236_v4 = vpop.f32.mrf.mxu0  ;;  %v4279_v13 = vpop.f32.mrf.mxu1 }
0x11b2   : > { %v5710_v55 = vpop.f32.mrf.mxu0  ;;  %v5716_v59 = vpop.f32.mrf.mxu1 }
0x11d7   : > { %v4362_v56 = vpop.f32.mrf.mxu1 }
0x11d8   : > { %v4319_v57 = vpop.f32.mrf.mxu0  ;;  %v4384_v5 = vcombine.low %v4276_v3, %v4362_v56  ;;  %v4385_v6 = vcombine.high %v4276_v3, %v4362_v56 }
0x11d9   : > { %v4368_v63 = vcombine.low %v4233_v50, %v4319_v57  ;;  %v4369_v0 = vcombine.high %v4233_v50, %v4319_v57  ;;  %v5727_v1 = vpop.f32.mrf.mxu1  ;;  %v5470_v50 = vld [vmem:[%s8170_s21] ss:$0 sm:$0xff] }
0x11da   : > { %v4392_v2 = vrot.slane %v4384_v5, %v7497_v9  ;;  %v4399_v10 = vrot.slane %v4385_v6, %v7497_v9  ;;  %v5721_v11 = vpop.f32.mrf.mxu0  ;;  %v6063_v1 = vld [vmem:[%s7411_s11 + $0x30] sm:$0xff]  }
0x11db   : > { %v4376_v54 = vrot.slane %v4368_v63, %v7497_v9  ;;  %v4383_v7 = vrot.slane %v4369_v0, %v7497_v9  ;;  %v4365_v8 = vpop.f32.mrf.mxu1  ;;  %v6061_v63 = vld [vmem:[%s7407_s24] sm:$0xff]   ;;  %v6062_v0 = vld [vmem:[%s7411_s11 + $0x38] sm:$0xff]  }
0x11dc   : > { %v4322_v16 = vpop.f32.mrf.mxu0 }
0x11dd   : > { %v4400_v17 = vcombine.low %v4376_v54, %v4392_v2  ;;  %v4401_v18 = vcombine.high %v4376_v54, %v4392_v2  ;;  %v4416_v19 = vcombine.low %v4383_v7, %v4399_v10  ;;  %v4417_v20 = vcombine.high %v4383_v7, %v4399_v10  ;;  %v5728_v12 = vpop.f32.mrf.mxu1  ;;  %v5472_v16 = vld [vmem:[%s8172_s26] ss:$0 sm:$0xff] }
0x11de   : > { %v5722_v14 = vpop.f32.mrf.mxu0  ;;  %v6065_v12 = vld [vmem:[%s7411_s11 + $0x20] sm:$0xff]  }
0x11df   : > { %v4408_v61 = vrot.slane %v4400_v17, %v7499_v15  ;;  %v4415_v60 = vrot.slane %v4401_v18, %v7499_v15  ;;  %v4424_v24 = vrot.slane %v4416_v19, %v7499_v15  ;;  %v4431_v25 = vrot.slane %v4417_v20, %v7499_v15  ;;  %v6064_v20 = vld [vmem:[%s7411_s11 + $0x28] sm:$0xff]   ;;  %v6066_v14 = vld [vmem:[%s7411_s11 + $0x18] sm:$0xff]  }
0x11e1   : > { %v4436_v26 = vcombine.low %v4408_v61, %v4415_v60  ;;  %v5465_v27 = vcombine.high %v4408_v61, %v4415_v60  ;;  %v4452_v28 = vcombine.low %v4424_v24, %v4431_v25  ;;  %v5466_v29 = vcombine.high %v4424_v24, %v4431_v25  ;;  %v6068_v61 = vld [vmem:[%s7411_s11 + $0x8] sm:$0xff]   ;;  %v6069_v60 = vld [vmem:[%s7411_s11] sm:$0xff]   ;;  %s8175_s11 = sld [smem:[#allocation71_spill]] }
0x11e2   : > { %v5473_v24 = vld [vmem:[%s8173_s0] ss:$0 sm:$0xff] }
0x11e3   : > { %v4443_v30 = vrot.slane %v4436_v26, %v7497_v9  ;;  %v4451_v31 = vrot.slane %v5465_v27, %v7497_v9  ;;  %v4459_v32 = vrot.slane %v4452_v28, %v7497_v9  ;;  %v4467_v21 = vrot.slane %v5466_v29, %v7497_v9 }
0x11e5   : > { %v4469_v36 = vcombine.high %v4443_v30, %v4451_v31  ;;  %v4485_v37 = vcombine.high %v4459_v32, %v4467_v21  ;;  %v4468_v38 = vcombine.low %v4443_v30, %v4451_v31  ;;  %v4484_v39 = vcombine.low %v4459_v32, %v4467_v21 }
0x11e7   : > { %v4483_v40 = vrot.slane %v4469_v36, %v7499_v15  ;;  %v4499_v23 = vrot.slane %v4485_v37, %v7499_v15  ;;  %v4476_v41 = vrot.slane %v4468_v38, %v7499_v15  ;;  %v4492_v34 = vrot.slane %v4484_v39, %v7499_v15  ;;  %p5486_p5 = scmp.ne.s32.totalorder %s8175_s11, 1 }
0x11e8   : > { %s8177_s6 = sld [smem:[#allocation63_spill]] (!%p5486_p5) }
0x11e9   : > { %v4502_v58 = vcombine.low %v4483_v40, %v4499_v23  ;;  %v4501_v62 = vcombine.high %v4476_v41, %v4492_v34  ;;  %v4500_v9 = vcombine.low %v4476_v41, %v4492_v34  ;;  %v4503_v43 = vcombine.high %v4483_v40, %v4499_v23  ;;  %s8178_s22 = sld [smem:[#allocation65_spill]] (!%p5486_p5) }
0x11eb   : > { %4509 = vrot.lane.b32.xlu1 %v4502_v58, %s6754_s23  ;;  %4505 = vrot.lane.b32.xlu0 %v4501_v62, %s6755_s8 }
0x11ef   : > { %4513 = vrot.lane.b32.xlu1 %v4503_v43, %s6756_s1 }
0x125d   : > { %v4510_v44 = vpop.permute.xlu1 %4509  ;;  %v4506_v45 = vpop.permute.xlu0 %4505 }
0x125e   : > { %v4516_v46 = vsel %vm2423_vm5, %v4500_v9, %v4506_v45 }
0x125f   : > { %v4517_v51 = vsel %vm2994_vm7, %v4516_v46, %v4510_v44 }
0x1261   : > { %v4514_v47 = vpop.permute.xlu1 %4513 }
0x1262   : > { %v4518_v15 = vsel %vm2996_vm8, %v4517_v51, %v4514_v47 }
0x1263   : > { %v4523_v48 = vpack.c.bf16 %v4518_v15, %v4518_v15 }
0x1265   : > { %5734 = vmatmul.mubr.msk.bf16.vlgmr.msra.gmra.mxu0 %vm1876_vm3, %v4523_v48 }
0x1266   : > { %5761 = vmatprep.mubr.msk.bf16.mxu0 %vm6746_vm4, %v6745_v42  ;;  %5746 = vmatpush3.bf16.msra.mxu0 %v6062_v0 }
0x1267   : > { %5747 = vmatprep.subr.bf16.mxu0 %v6745_v42 }
0x126a   : > { %5748 = vmatpush3.bf16.msra.mxu0 %v6063_v1 }
0x126b   : > { %5749 = vmatprep.subr.bf16.mxu0 %v6745_v42 }
0x126e   : > { %5750 = vmatpush3.bf16.msra.mxu0 %v6064_v20 }
0x126f   : > { %5751 = vmatprep.subr.bf16.mxu0 %v6745_v42 }
0x1272   : > { %5752 = vmatpush3.bf16.msra.mxu0 %v6065_v12 }
0x1273   : > { %5753 = vmatprep.subr.bf16.mxu0 %v6745_v42 }
0x1276   : > { %5754 = vmatpush3.bf16.msra.mxu0 %v6066_v14 }
0x1277   : > { %5755 = vmatprep.subr.bf16.mxu0 %v6745_v42 }
0x127a   : > { %5756 = vmatpush3.bf16.msra.mxu0 %v6067_v22 }
0x127b   : > { %5757 = vmatprep.subr.bf16.mxu0 %v6745_v42 }
0x127e   : > { %5758 = vmatpush3.bf16.msra.mxu0 %v6068_v61 }
0x127f   : > { %5759 = vmatprep.subr.bf16.mxu0 %v6745_v42 }
0x1282   : > { %5760 = vmatpush3.bf16.msra.mxu0 %v6069_v60 }
0x1325   : > { %v4573_v49 = vpop.f32.mrf.mxu0 }
0x1326   : > { %v4579_v3 = vadd.f32 %v4573_v49, %v7652_v33  ;;  %v6060_v33 = vld [vmem:[%s7407_s24 + $0x8] sm:$0xff]   ;;  %s8171_s24 = scalar_lea.vmem [#allocation20], %s7362_s25  ;;  %s8176_s25 = sld [smem:[#allocation62_spill]] (!%p5486_p5) }
0x1327   : > { %v5735_v52 = vpop.f32.mrf.mxu0  ;;  %5738 = vmatpush3.bf16.msra.mxu1 %v6060_v33  ;;  %v5471_v7 = vld [vmem:[%s8171_s24] ss:$0 sm:$0xff] }
0x1328   : > { %v7911_v53 = vadd.f32 %v5470_v50, %v4579_v3  ;;  %5739 = vmatprep.subr.bf16.mxu1 %v6745_v42  ;;  %v5485_v42 = vld [vmem:[%s8174_s12] ss:$0 sm:$0xff] }
0x1329   : > { %v4576_v4 = vpop.f32.mrf.mxu0 }
0x132a   : > { %v4590_v13 = vsel %vm1876_vm3, %v7911_v53, 0.0 }
0x132b   : > { %4591 = vadd.xlane.f32.xlu0 %v4590_v13  ;;  %v5736_v55 = vpop.f32.mrf.mxu0  ;;  %5740 = vmatpush3.bf16.msra.mxu1 %v6061_v63 }
0x13b4   : > { %v4592_v59 = vpop.xlane.xlu0 %4591 }
0x13b5   : > { %v4593_v56 = vmul.f32 0.03125, %v4592_v59 }
0x13b7   : > { %v4594_v57 = vsub.f32 %v7911_v53, %v4593_v56 }
0x13b9   : > { %v4595_v5 = vmul.f32 %v4594_v57, %v4594_v57 }
0x13bb   : > { %v4596_v6 = vsel %vm1876_vm3, %v4595_v5, 0.0 }
0x13bc   : > { %4597 = vadd.xlane.f32.xlu1 %v4596_v6 }
0x1445   : > { %v4598_v2 = vpop.xlane.xlu1 %4597 }
0x1446   : > { %v4599_v10 = vmul.f32 0.03125, %v4598_v2 }
0x1448   : > { %v4600_v11 = vadd.f32 1e-05, %v4599_v10 }
0x144a   : > { %6106 = vrsqrt.f32 %v4600_v11 }
0x1457   : > { %v6107_v54 = vpop.eup %6106 }
0x1458   : > { %v4602_v8 = vmul.f32 %v6107_v54, %v4594_v57 }
0x145a   : > { %v4609_v17 = vmul.f32 %v5471_v7, %v4602_v8 }
0x145c   : > { %v4616_v18 = vadd.f32 %v5472_v16, %v4609_v17 }
0x145e   : > { %v4621_v19 = vpack.c.bf16 %v4616_v18, %v4616_v18 }
0x1460   : > { %5742 = vmatmul.mubr.msk.bf16.vlgmr.msra.gmra.mxu1 %vm1876_vm3, %v4621_v19 }
0x1520   : > { %v4678_v25 = vpop.f32.mrf.mxu1 }
0x1521   : > { %v4679_v26 = vadd.f32 %v5473_v24, %v4678_v25 }
0x1522   : > { %v5743_v27 = vpop.f32.mrf.mxu1 }
0x1523   : > { %v4685_v28 = vmul.f32 0.70710677, %v4679_v26  ;;  %v4684_v32 = vmul.f32 0.5, %v4679_v26 }
0x1524   : > { %v4681_v29 = vpop.f32.mrf.mxu1 }
0x1525   : > { %6108 = verf.f32 %v4685_v28 }
0x1526   : > { %v5744_v30 = vpop.f32.mrf.mxu1 }
0x1532   : > { %v6109_v31 = vpop.eup %6108 }
0x1533   : > { %v4687_v21 = vadd.f32 1.0, %v6109_v31 }
0x1535   : > { %v4688_v35 = vmul.f32 %v4687_v21, %v4684_v32 }
0x1537   : > { %v4705_v36 = vpack.c.bf16 %v4688_v35, %v4688_v35 }
0x1539   : > { %5762 = vmatmul.mubr.bf16.vlgmr.msra.gmra.mxu0 %v4705_v36 }
0x15f9   : > { %v4788_v37 = vpop.f32.mrf.mxu0 }
0x15fa   : > { %v4794_v38 = vadd.f32 %v4788_v37, %v7911_v53 }
0x15fb   : > { %v5763_v39 = vpop.f32.mrf.mxu0  ;;  %4807 = sbr.rel (%p5486_p5) target bundleno = 6141 (0x17fd), region = 224 }
0x15fc   : > { %v4802_v40 = vadd.f32 %v5485_v42, %v4794_v38 }
0x15fd   : > { %v4791_v23 = vpop.f32.mrf.mxu0 }
0x15fe   : > { %4803 = vst.msk [vmem:[#allocation2] sm:$0xff] %vm1876_vm3, %v4802_v40 }
0x15ff   : > { %v5764_v41 = vpop.f32.mrf.mxu0 }
0x1600   : > { %v4810_v34 = vsel %vm1876_vm3, %v4802_v40, 0.0  ;;  %v6110_v45 = vld [vmem:[#allocation24 + $0x8] sm:$0xff]   ;;  %v6757_v46 = vmov 0.0   ;;  %vm6758_vm9 = vmmov 0   ;;  %v6111_v47 = vld [vmem:[#allocation24] sm:$0xff]   ;;  %vm4904_vm10 = vcmask 523264  }
0x1601   : > { %4811 = vadd.xlane.f32.xlu0 %v4810_v34  ;;  %5765 = vmatprep.subr.bf16.mxu0 %v6757_v46  ;;  %v5487_v50 = vld [vmem:[%s8176_s25] ss:$0 sm:$0xff] }
0x1602   : > { %5769 = vmatprep.mubr.msk.bf16.mxu0 %vm6758_vm9, %v6757_v46  ;;  %5766 = vmatpush3.bf16.msra.mxu0 %v6110_v45  ;;  %v5488_v52 = vld [vmem:[%s8177_s6] ss:$0 sm:$0xff] }
0x1603   : > { %5767 = vmatprep.subr.bf16.mxu0 %v6757_v46  ;;  %v5489_v55 = vld [vmem:[%s8178_s22] ss:$0 sm:$0xff] }
0x1606   : > { %5768 = vmatpush3.bf16.msra.mxu0 %v6111_v47 }
0x168a   : > { %v4812_v58 = vpop.xlane.xlu0 %4811 }
0x168b   : > { %v4813_v62 = vmul.f32 0.03125, %v4812_v58 }
0x168d   : > { %v4814_v9 = vsub.f32 %v4802_v40, %v4813_v62 }
0x168f   : > { %v4815_v43 = vmul.f32 %v4814_v9, %v4814_v9 }
0x1691   : > { %v4816_v44 = vsel %vm1876_vm3, %v4815_v43, 0.0 }
0x1692   : > { %4817 = vadd.xlane.f32.xlu0 %v4816_v44 }
0x171b   : > { %v4818_v51 = vpop.xlane.xlu0 %4817 }
0x171c   : > { %v4819_v15 = vmul.f32 0.03125, %v4818_v51 }
0x171e   : > { %v4820_v48 = vadd.f32 1e-05, %v4819_v15 }
0x1720   : > { %6112 = vrsqrt.f32 %v4820_v48 }
0x172d   : > { %v6113_v49 = vpop.eup %6112 }
0x172e   : > { %v4822_v3 = vmul.f32 %v6113_v49, %v4814_v9 }
0x1730   : > { %v4829_v53 = vmul.f32 %v5487_v50, %v4822_v3 }
0x1732   : > { %v4836_v4 = vadd.f32 %v5488_v52, %v4829_v53 }
0x1734   : > { %v4841_v13 = vpack.c.bf16 %v4836_v4, %v4836_v4 }
0x1736   : > { %5770 = vmatmul.mubr.msk.bf16.vlgmr.msra.gmra.mxu0 %vm1876_vm3, %v4841_v13 }
0x17f6   : > { %v4898_v59 = vpop.f32.mrf.mxu0 }
0x17f7   : > { %v4899_v56 = vadd.f32 %v5489_v55, %v4898_v59 }
0x17f8   : > { %v5771_v57 = vpop.f32.mrf.mxu0 }
0x17f9   : > { %4905 = vst.msk [vmem:[%s1528_s10] sm:$0xff] %vm4904_vm10, %v4899_v56 }
0x17fa   : > { %v4901_v5 = vpop.f32.mrf.mxu0 }
0x17fc   : > { %v5772_v6 = vpop.f32.mrf.mxu0 }
0x17fd PF: > { %s8179_s4 = sld [smem:[#allocation72_spill]]  ;;  %s4920_s18 = sshll.u32 %s1528_s10, 4  ;;  %s4921_s18 = int_to_ptr.vmem [resolvable:$true] %s4920_s18 }
0x17fe   : > { %s8180_s13 = sld [smem:[#allocation66_spill]]  ;;  %s8181_s7 = sand.u32 1, %s6666_s16  }
0x17ff   : > { %s4907_s27 = scalar_lea.sflag [#allocation6], %s8181_s7  ;;  %s6550_s19 = scalar_lea.vmem %s4921_s18, 128 }
0x1800   : > { %p6551_p3 = scmp.ne.s32.totalorder %s4921_s18, %s6550_s19  ;;  %p8182_p2 = scmp.ne.s32.totalorder %s8109_s29, 0 }
0x1801   : > { %s6759_s23 = smov [#allocation25]  }
0x1802   : > { %p6552_p6 = pnand %p6551_p3, %p8182_p2  ;;  %s6554_s8 = sshll.u32 %s6759_s23, 4  ;;  %s6555_s8 = int_to_ptr.vmem [resolvable:$false] %s6554_s8 }
0x1803   : > { %s5494_s2 = sshll.u32 %s8179_s4, 7  ;;  %s6556_s3 = scalar_lea.vmem %s6555_s8, 256 }
0x1804   : > { %s4918_s20 = scalar_lea.hbm %s8180_s13, %s5494_s2  ;;  %p6553_p10 = pneg %p6552_p6 }
0x1805   : > { %p6557_p4 = scmp.lt.s32.totalorder %s4921_s18, %s6555_s8  ;;  %p6558_p12 = scmp.lt.s32.totalorder %s6556_s3, %s6550_s19 }
0x1807   : > { %p6559_p13 = por %p6558_p12, %p6557_p4 }
0x1809   : > { %p6560_p8 = pnand %p6559_p13, %p6553_p10 }
0x180b   : > { %6563 = shalt.err (!%p6560_p8)
}
0x180c   : > { %s6564_s1 = scalar_lea.hbm %s4918_s20, 128  ;;  %s6568_s10 = scalar_lea.hbm %s8180_s13, 256 }
0x180d   : > { %p6565_p7 = scmp.ne.s32.totalorder %s4918_s20, %s6564_s1  ;;  %p6569_p11 = scmp.lt.s32.totalorder %s4918_s20, %s8180_s13 }
0x180e   : > { %p6570_p0 = scmp.lt.s32.totalorder %s6568_s10, %s6564_s1 }
0x180f   : > { %p6566_p1 = pnand %p6565_p7, %p8182_p2 }
0x1810   : > { %p6571_p5 = por %p6570_p0, %p6569_p11 }
0x1811   : > { %p6567_p9 = pneg %p6566_p1 }
0x1813   : > { %p6572_p3 = pnand %p6571_p5, %p6567_p9 }
0x1815   : > { %6575 = shalt.err (!%p6572_p3)
}
0x1816   : > { %5817 = dma.vmem_to_hbm [thread:$0]  (%p8182_p2), %s4921_s18, 128, %s4918_s20, %s4907_s27  }
0x1817 PF: > { %s8183_s15 = sld [smem:[#allocation69_spill]]  ;;  %p5886_p6 = scmp.ge.s32.totalorder %s6690_s28, 2 }
0x1818   : > { %p8184_p10 = scmp.ne.s32.totalorder %s8110_s9, 0 }
0x181a   : > { %p5870_p4 = pnand %p5886_p6, %p8184_p10 }
0x181c   : > { %p5871_p12 = pneg %p5870_p4 }
0x181d   : > { %s4932_s17 = sand.u32 1, %s8183_s15  }
0x181e   : > { %s4933_s14 = scalar_lea.sflag [#allocation6], %s4932_s17 }
0x181f   : > { %6645 = dma.done.wait (%p5871_p12), %s4933_s14, 128  }
0x1820   : > { %6647 = vsyncadd (%p5871_p12), %s4933_s14, 4294967168  ;;  %s86_s28 = sadd.s32 1, %s6690_s28   ;;  %s8185_s7 = sld [smem:[#allocation67_spill]] }
0x1821   : > { %p83_p13 = scmp.ge.s32.totalorder %s86_s28, 6   ;;  %s8186_s10 = sld [smem:[#allocation68_spill]] }
0x1822   : > { %s8187_s11 = sld [smem:[#allocation77_spill]]  ;;  %s8194_s15 = smov %s6666_s16 }
0x1823   : > { %s8188_s29 = sld [smem:[#allocation70_spill]] }
0x1824   : > { %s8189_s18 = sld [smem:[#allocation78_spill]] }
0x1825   : > { %s8190_s0 = sld [smem:[#allocation73_spill]]  ;;  %85 = sbr.rel (!%p83_p13) target bundleno = 83 (0x53), region = 388 }
0x1826   : > { %s8191_s22 = sld [smem:[#allocation74_spill]] }
0x1827   : > { %s8192_s23 = sld [smem:[#allocation75_spill]] }
0x1828   : > { %s8193_s26 = sld [smem:[#allocation76_spill]] }
0x1829   : > { %s8195_s16 = smov %s8188_s29 }
0x182a   :  { %4938 = vsyncpa [#allocation5], 1 }
0x182b   :  { %4940 = vsyncpa [#allocation5 + $0x1], 1 }
0x182c   :  { %4941 = vsyncpa [#allocation8], 1 }
0x182d   :  { %4942 = vsyncpa [#allocation11], 1 }
0x182e   :  { %4943 = vsyncpa [#allocation14], 1 }
0x182f   :  { %4944 = vsyncpa [#allocation6], 1 }
0x1830   :  { %4946 = vsyncpa [#allocation6 + $0x1], 1 }

</bundles_post_ra>
